<compile_context>
chip_gen: v6e
topology: v6e:2x2x1
jax: 0.10.0
libtpu: 0.0.40
codegen_flags: <defaults>
</compile_context>

<pallas_src>
import functools

import jax
import jax.numpy as jnp
from jax import lax
from jax.experimental import pallas as pl
from jax.experimental.pallas import tpu as pltpu

EPS = 1e-5  # nn.InstanceNorm2d default eps


# ----------------------------- fused kernel ---------------------------------
def _pin_resnet_block_kernel(x_ref, s_ref, la_ref, r_ref, lb_ref,
                             moda_ref, modb_ref, out_ref,
                             hbuf, zbuf, cbuf, *, C, H, W, P):
    CH = C * H
    PW = P * W
    inv_hw = 1.0 / float(H * W)
    s_hw = s_ref[0]                                    # (H, PW) f32 style slab

    # Lane mask selecting the first packed batch item's W-lane segment.
    lane = lax.broadcasted_iota(jnp.int32, (1, PW), 1)
    lmask = lane < W

    def seg_mean(rowsum):
        # rowsum: (1, PW) column sums.  Per-lane-segment mean, broadcast back
        # over the full 128-lane width (segments = packed batch items).
        s0 = jnp.sum(jnp.where(lmask, rowsum, 0.0), axis=1, keepdims=True)
        tot = jnp.sum(rowsum, axis=1, keepdims=True)
        return jnp.where(lmask, s0, tot - s0) * inv_hw

    def stage(l_ref, mod_ref, src_bf, relu):
        """Conv3x3(reflect) + InstanceNorm + PIN modulation (+ ReLU)."""
        # ---- reflect-padded 3x3 conv as ONE deep MXU contraction ------------
        for k in range(3):  # Z_k = src @ R_k (exact: R is a 0/1 permutation)
            zk = jnp.dot(src_bf, r_ref[k], preferred_element_type=jnp.float32)
            zbuf[k * CH:(k + 1) * CH, :] = zk.astype(jnp.bfloat16)
        # Y = L_cat @ [Z_0; Z_1; Z_2]   (M=C*H, K=3*C*H, N=P*W), f32 accum.
        cbuf[...] = jnp.dot(l_ref[...], zbuf[...],
                            preferred_element_type=jnp.float32)

        # ---- per-channel InstanceNorm + PIN (+ ReLU), f32 -------------------
        outs = []
        for o in range(C):
            y = cbuf[o * H:(o + 1) * H, :]                      # (H, PW)
            mean = seg_mean(jnp.sum(y, axis=0, keepdims=True))
            ctr = y - mean
            var = seg_mean(jnp.sum(ctr * ctr, axis=0, keepdims=True))
            xn = ctr * lax.rsqrt(var + EPS)
            # PIN: conv2(conv1(s)) folded to a rank-1 affine map of s; the
            # '+1' of (1 + gamma) is already folded into mod_ref[1, o].
            gamma = mod_ref[0, o] * s_hw + mod_ref[1, o]
            beta = mod_ref[2, o] * s_hw + mod_ref[3, o]
            v = gamma * xn + beta
            if relu:
                v = jnp.maximum(v, 0.0)
            outs.append(v)
        return jnp.concatenate(outs, axis=0)                    # (C*H, PW) f32

    # ---- Stage A: conv -> IN -> PIN -> ReLU; activation stays in VMEM ------
    hA = stage(la_ref, moda_ref, x_ref[0].astype(jnp.bfloat16), relu=True)
    hbuf[...] = hA.astype(jnp.bfloat16)

    # ---- Stage B: conv -> IN -> PIN, plus residual (single full-slab store) -
    hB = stage(lb_ref, modb_ref, hbuf[...], relu=False)
    out_ref[0] = x_ref[0] + hB


# --------------------- host-side operator construction ----------------------
def _reflect_index(idx, n):
    # ReflectionPad2d(1) index map on [-1, n]:  -1 -> 1,  n -> n - 2.
    return jnp.where(idx < 0, -idx,
                     jnp.where(idx > n - 1, 2 * (n - 1) - idx, idx))


def _right_shift_matrix(n, dw):
    # (X @ R)[:, w] == X[:, reflect(w + dw)]
    w_out = jnp.arange(n)
    src = _reflect_index(w_out + dw, n)
    return (jnp.arange(n)[:, None] == src[None, :]).astype(jnp.float32)


def _down_shift_matrix(n, dh):
    # (V @ X)[h, :] == X[reflect(h + dh), :]
    h_out = jnp.arange(n)
    src = _reflect_index(h_out + dh, n)
    return (src[:, None] == jnp.arange(n)[None, :]).astype(jnp.float32)


def _left_operator_cat(w_conv, H):
    # L_cat = [L_0 | L_1 | L_2] with (H, H) block (o, i) of L_kw equal to
    # sum_kh w[o, i, kh, kw] * V_kh, so L_cat @ [X@R_0; X@R_1; X@R_2] is the
    # reflect-padded 3x3 conv of the channel-major slab X (shape (C*H, PW)).
    vs = [_down_shift_matrix(H, dh) for dh in (-1, 0, 1)]
    ls = []
    for kw in range(3):
        l = sum(jnp.kron(w_conv[:, :, kh, kw], vs[kh]) for kh in range(3))
        ls.append(l)
    return jnp.concatenate(ls, axis=1)                  # (C*H, 3*C*H)


def _fold_pin(w1, b1, w2, b2, C):
    # conv2(conv1(s)) with 1-channel input is a rank-1 affine map of s:
    #   out[m] = a[m] * s + c[m],  a = w2 @ w1,  c = w2 @ b1 + b2.
    # '+1' of (1 + gamma) folded into c_gamma.
    w1v = w1.reshape(C)
    w2m = w2.reshape(2 * C, C)
    a = w2m @ w1v
    c = w2m @ b1 + b2
    return jnp.stack([a[:C], c[:C] + 1.0, a[C:], c[C:]]).astype(jnp.float32)


def prepare_operators(p, *, C, H, W, P):
    """Build the dense conv operators ONCE (outside the per-call jit path)."""
    la = _left_operator_cat(p["wA"], H).astype(jnp.bfloat16)
    lb = _left_operator_cat(p["wB"], H).astype(jnp.bfloat16)
    eye_p = jnp.eye(P, dtype=jnp.float32)
    r = jnp.stack([jnp.kron(eye_p, _right_shift_matrix(W, dw))
                   for dw in (-1, 0, 1)]).astype(jnp.bfloat16)
    moda = _fold_pin(p["w1A"], p["b1A"], p["w2A"], p["b2A"], C)
    modb = _fold_pin(p["w1B"], p["b1B"], p["w2B"], p["b2B"], C)
    # Conv biases bA/bB intentionally dropped: InstanceNorm (affine=False)
    # subtracts the per-channel mean, so a per-channel bias cancels exactly.
    return {"la": la, "lb": lb, "r": r, "moda": moda, "modb": modb}


# --------------------------------- wrapper -----------------------------------
def pin_resnet_block(x, s, ops):
    """PINResnetBlock.forward (reflect padding, no dropout, bias=True)."""
    B, C, H, W = x.shape
    assert H == 64 and W == 64, "PIN (hw=64) requires 64x64 feature maps"
    assert s.shape == (B, H * W)
    PW = ops["r"].shape[-1]
    P = PW // W
    assert B % P == 0
    G = B // P
    CH = C * H

    # Pack P batch items into the lane dimension (lanes = P*W = 128 for P=2).
    x_pk = x.reshape(G, P, C, H, W).transpose(0, 2, 3, 1, 4).reshape(G, CH, PW)
    s_pk = s.reshape(G, P, H, W).transpose(0, 2, 1, 3).reshape(G, H, PW)

    out = pl.pallas_call(
        functools.partial(_pin_resnet_block_kernel, C=C, H=H, W=W, P=P),
        out_shape=jax.ShapeDtypeStruct((G, CH, PW), jnp.float32),
        grid=(G,),
        in_specs=[
            pl.BlockSpec((1, CH, PW), lambda g: (g, 0, 0)),        # x slab f32
            pl.BlockSpec((1, H, PW), lambda g: (g, 0, 0)),         # style s
            pl.BlockSpec((CH, 3 * CH), lambda g: (0, 0)),          # L_cat A bf16
            pl.BlockSpec((3, PW, PW), lambda g: (0, 0, 0)),        # R (shared)
            pl.BlockSpec((CH, 3 * CH), lambda g: (0, 0)),          # L_cat B bf16
            pl.BlockSpec(memory_space=pltpu.MemorySpace.SMEM),     # PIN consts A
            pl.BlockSpec(memory_space=pltpu.MemorySpace.SMEM),     # PIN consts B
        ],
        out_specs=pl.BlockSpec((1, CH, PW), lambda g: (g, 0, 0)),
        scratch_shapes=[
            pltpu.VMEM((CH, PW), jnp.bfloat16),       # hbuf: stage-A activation
            pltpu.VMEM((3 * CH, PW), jnp.bfloat16),   # zbuf: stacked shifted X
            pltpu.VMEM((CH, PW), jnp.float32),        # cbuf: conv output (f32)
        ],
        compiler_params=pltpu.CompilerParams(
            dimension_semantics=("parallel",)),
    )(x_pk, s_pk, ops["la"], ops["r"], ops["lb"], ops["moda"], ops["modb"])

    # Unpack lane segments back into the batch dimension.
    return (out.reshape(G, C, H, P, W).transpose(0, 3, 1, 2, 4)
               .reshape(B, C, H, W))


# ----------------------------- pure-JAX reference ----------------------------
def _conv_nchw(x, w, b):
    y = lax.conv_general_dilated(x, w, (1, 1), "VALID",
                                 dimension_numbers=("NCHW", "OIHW", "NCHW"))
    return y + b[None, :, None, None]


def pin_resnet_block_ref(x, s, p):
    def pin(h_in, w1, b1, w2, b2):
        B = s.shape[0]
        m = s.reshape(B, 1, 64, 64)
        m = _conv_nchw(m, w1, b1)
        m = _conv_nchw(m, w2, b2)
        C = h_in.shape[1]
        gamma, beta = m[:, :C], m[:, C:]
        mean = h_in.mean(axis=(2, 3), keepdims=True)
        var = ((h_in - mean) ** 2).mean(axis=(2, 3), keepdims=True)
        xn = (h_in - mean) * lax.rsqrt(var + EPS)
        return (1.0 + gamma) * xn + beta

    def conv3x3_reflect(h_in, w, b):
        hp = jnp.pad(h_in, ((0, 0), (0, 0), (1, 1), (1, 1)), mode="reflect")
        return _conv_nchw(hp, w, b)

    h = conv3x3_reflect(x, p["wA"], p["bA"])
    h = pin(h, p["w1A"], p["b1A"], p["w2A"], p["b2A"])
    h = jnp.maximum(h, 0.0)
    h = conv3x3_reflect(h, p["wB"], p["bB"])
    h = pin(h, p["w1B"], p["b1B"], p["w2B"], p["b2B"])
    return x + h


if __name__ == "__main__":
    dim, B, H, W = 4, 2, 64, 64   # hw=64: PIN has no transposed-conv branch
    key = jax.random.PRNGKey(0)
    keys = jax.random.split(key, 14)
    p = {
        "wA":  0.1 * jax.random.normal(keys[0], (dim, dim, 3, 3), jnp.float32),
        "bA":  0.1 * jax.random.normal(keys[1], (dim,), jnp.float32),
        "w1A": 0.1 * jax.random.normal(keys[2], (dim, 1, 1, 1), jnp.float32),
        "b1A": 0.1 * jax.random.normal(keys[3], (dim,), jnp.float32),
        "w2A": 0.1 * jax.random.normal(keys[4], (2 * dim, dim, 1, 1), jnp.float32),
        "b2A": 0.1 * jax.random.normal(keys[5], (2 * dim,), jnp.float32),
        "wB":  0.1 * jax.random.normal(keys[6], (dim, dim, 3, 3), jnp.float32),
        "bB":  0.1 * jax.random.normal(keys[7], (dim,), jnp.float32),
        "w1B": 0.1 * jax.random.normal(keys[8], (dim, 1, 1, 1), jnp.float32),
        "b1B": 0.1 * jax.random.normal(keys[9], (dim,), jnp.float32),
        "w2B": 0.1 * jax.random.normal(keys[10], (2 * dim, dim, 1, 1), jnp.float32),
        "b2B": 0.1 * jax.random.normal(keys[11], (2 * dim,), jnp.float32),
    }
    x = jax.random.normal(keys[12], (B, dim, H, W), jnp.float32)
    s = jax.random.normal(keys[13], (B, H * W), jnp.float32)

    # Operators are built once (weight-setting time), not per forward call.
    P = 2 if B % 2 == 0 else 1
    ops = prepare_operators(p, C=dim, H=H, W=W, P=P)

    fwd = jax.jit(pin_resnet_block)
    out = jax.block_until_ready(fwd(x, s, ops))

    ref = pin_resnet_block_ref(x, s, p)
    assert out.shape == (B, dim, H, W)
    max_err = float(jnp.max(jnp.abs(out - ref)))
    mean_err = float(jnp.mean(jnp.abs(out - ref)))
    # Tolerance reflects bf16 matmul operands (f32 accumulation) through two
    # conv + InstanceNorm stages on O(1..5)-magnitude values.
    assert max_err < 5e-2, \
        f"mismatch vs reference: max |err| = {max_err}, mean |err| = {mean_err}"
    print("KERNEL_OK")
</pallas_src>

<mosaic_0001>
module attributes {stable_mosaic.version = 11 : i64} {
  func.func @_pin_resnet_block_kernel(%arg0: i32, %arg1: memref<1x256x128xf32, #tpu.memory_space<vmem>>, %arg2: memref<1x64x128xf32, #tpu.memory_space<vmem>>, %arg3: memref<256x768xbf16, #tpu.memory_space<vmem>>, %arg4: memref<3x128x128xbf16, #tpu.memory_space<vmem>>, %arg5: memref<256x768xbf16, #tpu.memory_space<vmem>>, %arg6: memref<4x4xf32, #tpu.memory_space<smem>>, %arg7: memref<4x4xf32, #tpu.memory_space<smem>>, %arg8: memref<1x256x128xf32, #tpu.memory_space<vmem>>, %arg9: memref<256x128xbf16, #tpu.memory_space<vmem>>, %arg10: memref<768x128xbf16, #tpu.memory_space<vmem>>, %arg11: memref<256x128xf32, #tpu.memory_space<vmem>>) attributes {dimension_semantics = [#tpu.dimension_semantics<parallel>], iteration_bounds = array<i64: 1>, scalar_prefetch = 0 : i64, scratch_operands = 3 : i64, tpu.core_type = #tpu.core_type<tc>, window_params = [{transform_indices = @transform_0, window_bounds = array<i64: 1, 256, 128>}, {transform_indices = @transform_1, window_bounds = array<i64: 1, 64, 128>}, {pipeline_mode = #tpu.pipeline_mode<synchronous>, transform_indices = @transform_2, window_bounds = array<i64: 256, 768>}, {pipeline_mode = #tpu.pipeline_mode<synchronous>, transform_indices = @transform_3, window_bounds = array<i64: 3, 128, 128>}, {pipeline_mode = #tpu.pipeline_mode<synchronous>, transform_indices = @transform_4, window_bounds = array<i64: 256, 768>}, {transform_indices = @transform_5, window_bounds = array<i64: 4, 4>}, {transform_indices = @transform_6, window_bounds = array<i64: 4, 4>}, {transform_indices = @transform_7, window_bounds = array<i64: 1, 256, 128>}]} {
    %c0 = arith.constant 0 : index
    %c0_0 = arith.constant 0 : index
    %c0_1 = arith.constant 0 : index
    %0 = vector.load %arg2[%c0, %c0_0, %c0_1] : memref<1x64x128xf32, #tpu.memory_space<vmem>>, vector<1x64x128xf32>
    %1 = vector.shape_cast %0 : vector<1x64x128xf32> to vector<64x128xf32>
    %2 = tpu.iota {dimensions = array<i32: 1>} : vector<1x128xi32>
    %c64_i32 = arith.constant 64 : i32
    %3 = vector.broadcast %c64_i32 : i32 to vector<1x128xi32>
    %4 = arith.cmpi slt, %2, %3 : vector<1x128xi32>
    %c0_2 = arith.constant 0 : index
    %c0_3 = arith.constant 0 : index
    %c0_4 = arith.constant 0 : index
    %5 = vector.load %arg1[%c0_2, %c0_3, %c0_4] : memref<1x256x128xf32, #tpu.memory_space<vmem>>, vector<1x256x128xf32>
    %6 = vector.shape_cast %5 : vector<1x256x128xf32> to vector<256x128xf32>
    %7 = arith.truncf %6 : vector<256x128xf32> to vector<256x128xbf16>
    %c0_5 = arith.constant 0 : index
    %c0_6 = arith.constant 0 : index
    %c0_7 = arith.constant 0 : index
    %8 = vector.load %arg4[%c0_5, %c0_6, %c0_7] : memref<3x128x128xbf16, #tpu.memory_space<vmem>>, vector<1x128x128xbf16>
    %9 = vector.shape_cast %8 : vector<1x128x128xbf16> to vector<128x128xbf16>
    %cst = arith.constant dense<0.000000e+00> : vector<256x128xf32>
    %10 = tpu.matmul %7, %9, %cst {dimension_numbers = #tpu.dot_dimension_numbers<[1], [0], [0], [1], [0, 0, 1, 1], [], []>} : vector<256x128xbf16>, vector<128x128xbf16>, vector<256x128xf32> -> vector<256x128xf32>
    %11 = arith.truncf %10 : vector<256x128xf32> to vector<256x128xbf16>
    %c0_8 = arith.constant 0 : index
    %c0_9 = arith.constant 0 : index
    %12 = vector.load %arg10[%c0_8, %c0_9] : memref<768x128xbf16, #tpu.memory_space<vmem>>, vector<256x128xbf16>
    tpu.vector_store %arg10[%c0_8, %c0_9], %11 {strides = array<i32>} : memref<768x128xbf16, #tpu.memory_space<vmem>>, vector<256x128xbf16>,
    %c1 = arith.constant 1 : index
    %c0_10 = arith.constant 0 : index
    %c0_11 = arith.constant 0 : index
    %13 = vector.load %arg4[%c1, %c0_10, %c0_11] : memref<3x128x128xbf16, #tpu.memory_space<vmem>>, vector<1x128x128xbf16>
    %14 = vector.shape_cast %13 : vector<1x128x128xbf16> to vector<128x128xbf16>
    %cst_12 = arith.constant dense<0.000000e+00> : vector<256x128xf32>
    %15 = tpu.matmul %7, %14, %cst_12 {dimension_numbers = #tpu.dot_dimension_numbers<[1], [0], [0], [1], [0, 0, 1, 1], [], []>} : vector<256x128xbf16>, vector<128x128xbf16>, vector<256x128xf32> -> vector<256x128xf32>
    %16 = arith.truncf %15 : vector<256x128xf32> to vector<256x128xbf16>
    %c256 = arith.constant 256 : index
    %c0_13 = arith.constant 0 : index
    %17 = vector.load %arg10[%c256, %c0_13] : memref<768x128xbf16, #tpu.memory_space<vmem>>, vector<256x128xbf16>
    tpu.vector_store %arg10[%c256, %c0_13], %16 {strides = array<i32>} : memref<768x128xbf16, #tpu.memory_space<vmem>>, vector<256x128xbf16>,
    %c2 = arith.constant 2 : index
    %c0_14 = arith.constant 0 : index
    %c0_15 = arith.constant 0 : index
    %18 = vector.load %arg4[%c2, %c0_14, %c0_15] : memref<3x128x128xbf16, #tpu.memory_space<vmem>>, vector<1x128x128xbf16>
    %19 = vector.shape_cast %18 : vector<1x128x128xbf16> to vector<128x128xbf16>
    %cst_16 = arith.constant dense<0.000000e+00> : vector<256x128xf32>
    %20 = tpu.matmul %7, %19, %cst_16 {dimension_numbers = #tpu.dot_dimension_numbers<[1], [0], [0], [1], [0, 0, 1, 1], [], []>} : vector<256x128xbf16>, vector<128x128xbf16>, vector<256x128xf32> -> vector<256x128xf32>
    %21 = arith.truncf %20 : vector<256x128xf32> to vector<256x128xbf16>
    %c512 = arith.constant 512 : index
    %c0_17 = arith.constant 0 : index
    %22 = vector.load %arg10[%c512, %c0_17] : memref<768x128xbf16, #tpu.memory_space<vmem>>, vector<256x128xbf16>
    tpu.vector_store %arg10[%c512, %c0_17], %21 {strides = array<i32>} : memref<768x128xbf16, #tpu.memory_space<vmem>>, vector<256x128xbf16>,
    %c0_18 = arith.constant 0 : index
    %c0_19 = arith.constant 0 : index
    %23 = vector.load %arg3[%c0_18, %c0_19] : memref<256x768xbf16, #tpu.memory_space<vmem>>, vector<256x768xbf16>
    %c0_20 = arith.constant 0 : index
    %c0_21 = arith.constant 0 : index
    %24 = vector.load %arg10[%c0_20, %c0_21] : memref<768x128xbf16, #tpu.memory_space<vmem>>, vector<768x128xbf16>
    %cst_22 = arith.constant dense<0.000000e+00> : vector<256x128xf32>
    %25 = tpu.matmul %23, %24, %cst_22 {dimension_numbers = #tpu.dot_dimension_numbers<[1], [0], [0], [1], [0, 0, 1, 1], [], []>} : vector<256x768xbf16>, vector<768x128xbf16>, vector<256x128xf32> -> vector<256x128xf32>
    %c0_23 = arith.constant 0 : index
    %c0_24 = arith.constant 0 : index
    %26 = vector.load %arg11[%c0_23, %c0_24] : memref<256x128xf32, #tpu.memory_space<vmem>>, vector<256x128xf32>
    tpu.vector_store %arg11[%c0_23, %c0_24], %25 {strides = array<i32>} : memref<256x128xf32, #tpu.memory_space<vmem>>, vector<256x128xf32>,
    %c0_25 = arith.constant 0 : index
    %c0_26 = arith.constant 0 : index
    %27 = vector.load %arg11[%c0_25, %c0_26] : memref<256x128xf32, #tpu.memory_space<vmem>>, vector<64x128xf32>
    %cst_27 = arith.constant dense<0.000000e+00> : vector<128xf32>
    %28 = vector.multi_reduction <add>, %27, %cst_27 [0] : vector<64x128xf32> to vector<128xf32>
    %29 = vector.shape_cast %28 : vector<128xf32> to vector<1x128xf32>
    %cst_28 = arith.constant 0.000000e+00 : f32
    %30 = vector.broadcast %cst_28 : f32 to vector<1x128xf32>
    %31 = arith.select %4, %29, %30 : vector<1x128xi1>, vector<1x128xf32>
    %cst_29 = arith.constant dense<0.000000e+00> : vector<1xf32>
    %32 = vector.multi_reduction <add>, %31, %cst_29 [1] : vector<1x128xf32> to vector<1xf32>
    %33 = vector.shape_cast %32 : vector<1xf32> to vector<1x1xf32>
    %cst_30 = arith.constant dense<0.000000e+00> : vector<1xf32>
    %34 = vector.multi_reduction <add>, %29, %cst_30 [1] : vector<1x128xf32> to vector<1xf32>
    %35 = vector.shape_cast %34 : vector<1xf32> to vector<1x1xf32>
    %36 = arith.subf %35, %33 : vector<1x1xf32>
    %37 = vector.shape_cast %33 : vector<1x1xf32> to vector<1x1xf32>
    %38 = vector.broadcast %37 : vector<1x1xf32> to vector<1x128xf32>
    %39 = vector.shape_cast %36 : vector<1x1xf32> to vector<1x1xf32>
    %40 = vector.broadcast %39 : vector<1x1xf32> to vector<1x128xf32>
    %41 = arith.select %4, %38, %40 : vector<1x128xi1>, vector<1x128xf32>
    %cst_31 = arith.constant 2.44140625E-4 : f32
    %42 = vector.broadcast %cst_31 : f32 to vector<1x128xf32>
    %43 = arith.mulf %41, %42 : vector<1x128xf32>
    %44 = vector.broadcast %43 : vector<1x128xf32> to vector<64x128xf32>
    %45 = arith.subf %27, %44 : vector<64x128xf32>
    %46 = arith.mulf %45, %45 : vector<64x128xf32>
    %cst_32 = arith.constant dense<0.000000e+00> : vector<128xf32>
    %47 = vector.multi_reduction <add>, %46, %cst_32 [0] : vector<64x128xf32> to vector<128xf32>
    %48 = vector.shape_cast %47 : vector<128xf32> to vector<1x128xf32>
    %cst_33 = arith.constant 0.000000e+00 : f32
    %49 = vector.broadcast %cst_33 : f32 to vector<1x128xf32>
    %50 = arith.select %4, %48, %49 : vector<1x128xi1>, vector<1x128xf32>
    %cst_34 = arith.constant dense<0.000000e+00> : vector<1xf32>
    %51 = vector.multi_reduction <add>, %50, %cst_34 [1] : vector<1x128xf32> to vector<1xf32>
    %52 = vector.shape_cast %51 : vector<1xf32> to vector<1x1xf32>
    %cst_35 = arith.constant dense<0.000000e+00> : vector<1xf32>
    %53 = vector.multi_reduction <add>, %48, %cst_35 [1] : vector<1x128xf32> to vector<1xf32>
    %54 = vector.shape_cast %53 : vector<1xf32> to vector<1x1xf32>
    %55 = arith.subf %54, %52 : vector<1x1xf32>
    %56 = vector.shape_cast %52 : vector<1x1xf32> to vector<1x1xf32>
    %57 = vector.broadcast %56 : vector<1x1xf32> to vector<1x128xf32>
    %58 = vector.shape_cast %55 : vector<1x1xf32> to vector<1x1xf32>
    %59 = vector.broadcast %58 : vector<1x1xf32> to vector<1x128xf32>
    %60 = arith.select %4, %57, %59 : vector<1x128xi1>, vector<1x128xf32>
    %cst_36 = arith.constant 2.44140625E-4 : f32
    %61 = vector.broadcast %cst_36 : f32 to vector<1x128xf32>
    %62 = arith.mulf %60, %61 : vector<1x128xf32>
    %cst_37 = arith.constant 9.99999974E-6 : f32
    %63 = vector.broadcast %cst_37 : f32 to vector<1x128xf32>
    %64 = arith.addf %62, %63 : vector<1x128xf32>
    %65 = math.rsqrt %64 : vector<1x128xf32>
    %66 = vector.broadcast %65 : vector<1x128xf32> to vector<64x128xf32>
    %67 = arith.mulf %45, %66 : vector<64x128xf32>
    %c0_38 = arith.constant 0 : index
    %c0_39 = arith.constant 0 : index
    %68 = memref.load %arg6[%c0_38, %c0_39] : memref<4x4xf32, #tpu.memory_space<smem>>
    %69 = vector.broadcast %68 : f32 to vector<64x128xf32>
    %70 = arith.mulf %69, %1 : vector<64x128xf32>
    %c1_40 = arith.constant 1 : index
    %c0_41 = arith.constant 0 : index
    %71 = memref.load %arg6[%c1_40, %c0_41] : memref<4x4xf32, #tpu.memory_space<smem>>
    %72 = vector.broadcast %71 : f32 to vector<64x128xf32>
    %73 = arith.addf %70, %72 : vector<64x128xf32>
    %c2_42 = arith.constant 2 : index
    %c0_43 = arith.constant 0 : index
    %74 = memref.load %arg6[%c2_42, %c0_43] : memref<4x4xf32, #tpu.memory_space<smem>>
    %75 = vector.broadcast %74 : f32 to vector<64x128xf32>
    %76 = arith.mulf %75, %1 : vector<64x128xf32>
    %c3 = arith.constant 3 : index
    %c0_44 = arith.constant 0 : index
    %77 = memref.load %arg6[%c3, %c0_44] : memref<4x4xf32, #tpu.memory_space<smem>>
    %78 = vector.broadcast %77 : f32 to vector<64x128xf32>
    %79 = arith.addf %76, %78 : vector<64x128xf32>
    %80 = arith.mulf %73, %67 : vector<64x128xf32>
    %81 = arith.addf %80, %79 : vector<64x128xf32>
    %cst_45 = arith.constant 0.000000e+00 : f32
    %82 = vector.broadcast %cst_45 : f32 to vector<64x128xf32>
    %83 = arith.maximumf %81, %82 : vector<64x128xf32>
    %c64 = arith.constant 64 : index
    %c0_46 = arith.constant 0 : index
    %84 = vector.load %arg11[%c64, %c0_46] : memref<256x128xf32, #tpu.memory_space<vmem>>, vector<64x128xf32>
    %cst_47 = arith.constant dense<0.000000e+00> : vector<128xf32>
    %85 = vector.multi_reduction <add>, %84, %cst_47 [0] : vector<64x128xf32> to vector<128xf32>
    %86 = vector.shape_cast %85 : vector<128xf32> to vector<1x128xf32>
    %cst_48 = arith.constant 0.000000e+00 : f32
    %87 = vector.broadcast %cst_48 : f32 to vector<1x128xf32>
    %88 = arith.select %4, %86, %87 : vector<1x128xi1>, vector<1x128xf32>
    %cst_49 = arith.constant dense<0.000000e+00> : vector<1xf32>
    %89 = vector.multi_reduction <add>, %88, %cst_49 [1] : vector<1x128xf32> to vector<1xf32>
    %90 = vector.shape_cast %89 : vector<1xf32> to vector<1x1xf32>
    %cst_50 = arith.constant dense<0.000000e+00> : vector<1xf32>
    %91 = vector.multi_reduction <add>, %86, %cst_50 [1] : vector<1x128xf32> to vector<1xf32>
    %92 = vector.shape_cast %91 : vector<1xf32> to vector<1x1xf32>
    %93 = arith.subf %92, %90 : vector<1x1xf32>
    %94 = vector.shape_cast %90 : vector<1x1xf32> to vector<1x1xf32>
    %95 = vector.broadcast %94 : vector<1x1xf32> to vector<1x128xf32>
    %96 = vector.shape_cast %93 : vector<1x1xf32> to vector<1x1xf32>
    %97 = vector.broadcast %96 : vector<1x1xf32> to vector<1x128xf32>
    %98 = arith.select %4, %95, %97 : vector<1x128xi1>, vector<1x128xf32>
    %cst_51 = arith.constant 2.44140625E-4 : f32
    %99 = vector.broadcast %cst_51 : f32 to vector<1x128xf32>
    %100 = arith.mulf %98, %99 : vector<1x128xf32>
    %101 = vector.broadcast %100 : vector<1x128xf32> to vector<64x128xf32>
    %102 = arith.subf %84, %101 : vector<64x128xf32>
    %103 = arith.mulf %102, %102 : vector<64x128xf32>
    %cst_52 = arith.constant dense<0.000000e+00> : vector<128xf32>
    %104 = vector.multi_reduction <add>, %103, %cst_52 [0] : vector<64x128xf32> to vector<128xf32>
    %105 = vector.shape_cast %104 : vector<128xf32> to vector<1x128xf32>
    %cst_53 = arith.constant 0.000000e+00 : f32
    %106 = vector.broadcast %cst_53 : f32 to vector<1x128xf32>
    %107 = arith.select %4, %105, %106 : vector<1x128xi1>, vector<1x128xf32>
    %cst_54 = arith.constant dense<0.000000e+00> : vector<1xf32>
    %108 = vector.multi_reduction <add>, %107, %cst_54 [1] : vector<1x128xf32> to vector<1xf32>
    %109 = vector.shape_cast %108 : vector<1xf32> to vector<1x1xf32>
    %cst_55 = arith.constant dense<0.000000e+00> : vector<1xf32>
    %110 = vector.multi_reduction <add>, %105, %cst_55 [1] : vector<1x128xf32> to vector<1xf32>
    %111 = vector.shape_cast %110 : vector<1xf32> to vector<1x1xf32>
    %112 = arith.subf %111, %109 : vector<1x1xf32>
    %113 = vector.shape_cast %109 : vector<1x1xf32> to vector<1x1xf32>
    %114 = vector.broadcast %113 : vector<1x1xf32> to vector<1x128xf32>
    %115 = vector.shape_cast %112 : vector<1x1xf32> to vector<1x1xf32>
    %116 = vector.broadcast %115 : vector<1x1xf32> to vector<1x128xf32>
    %117 = arith.select %4, %114, %116 : vector<1x128xi1>, vector<1x128xf32>
    %cst_56 = arith.constant 2.44140625E-4 : f32
    %118 = vector.broadcast %cst_56 : f32 to vector<1x128xf32>
    %119 = arith.mulf %117, %118 : vector<1x128xf32>
    %cst_57 = arith.constant 9.99999974E-6 : f32
    %120 = vector.broadcast %cst_57 : f32 to vector<1x128xf32>
    %121 = arith.addf %119, %120 : vector<1x128xf32>
    %122 = math.rsqrt %121 : vector<1x128xf32>
    %123 = vector.broadcast %122 : vector<1x128xf32> to vector<64x128xf32>
    %124 = arith.mulf %102, %123 : vector<64x128xf32>
    %c0_58 = arith.constant 0 : index
    %c1_59 = arith.constant 1 : index
    %125 = memref.load %arg6[%c0_58, %c1_59] : memref<4x4xf32, #tpu.memory_space<smem>>
    %126 = vector.broadcast %125 : f32 to vector<64x128xf32>
    %127 = arith.mulf %126, %1 : vector<64x128xf32>
    %c1_60 = arith.constant 1 : index
    %c1_61 = arith.constant 1 : index
    %128 = memref.load %arg6[%c1_60, %c1_61] : memref<4x4xf32, #tpu.memory_space<smem>>
    %129 = vector.broadcast %128 : f32 to vector<64x128xf32>
    %130 = arith.addf %127, %129 : vector<64x128xf32>
    %c2_62 = arith.constant 2 : index
    %c1_63 = arith.constant 1 : index
    %131 = memref.load %arg6[%c2_62, %c1_63] : memref<4x4xf32, #tpu.memory_space<smem>>
    %132 = vector.broadcast %131 : f32 to vector<64x128xf32>
    %133 = arith.mulf %132, %1 : vector<64x128xf32>
    %c3_64 = arith.constant 3 : index
    %c1_65 = arith.constant 1 : index
    %134 = memref.load %arg6[%c3_64, %c1_65] : memref<4x4xf32, #tpu.memory_space<smem>>
    %135 = vector.broadcast %134 : f32 to vector<64x128xf32>
    %136 = arith.addf %133, %135 : vector<64x128xf32>
    %137 = arith.mulf %130, %124 : vector<64x128xf32>
    %138 = arith.addf %137, %136 : vector<64x128xf32>
    %cst_66 = arith.constant 0.000000e+00 : f32
    %139 = vector.broadcast %cst_66 : f32 to vector<64x128xf32>
    %140 = arith.maximumf %138, %139 : vector<64x128xf32>
    %c128 = arith.constant 128 : index
    %c0_67 = arith.constant 0 : index
    %141 = vector.load %arg11[%c128, %c0_67] : memref<256x128xf32, #tpu.memory_space<vmem>>, vector<64x128xf32>
    %cst_68 = arith.constant dense<0.000000e+00> : vector<128xf32>
    %142 = vector.multi_reduction <add>, %141, %cst_68 [0] : vector<64x128xf32> to vector<128xf32>
    %143 = vector.shape_cast %142 : vector<128xf32> to vector<1x128xf32>
    %cst_69 = arith.constant 0.000000e+00 : f32
    %144 = vector.broadcast %cst_69 : f32 to vector<1x128xf32>
    %145 = arith.select %4, %143, %144 : vector<1x128xi1>, vector<1x128xf32>
    %cst_70 = arith.constant dense<0.000000e+00> : vector<1xf32>
    %146 = vector.multi_reduction <add>, %145, %cst_70 [1] : vector<1x128xf32> to vector<1xf32>
    %147 = vector.shape_cast %146 : vector<1xf32> to vector<1x1xf32>
    %cst_71 = arith.constant dense<0.000000e+00> : vector<1xf32>
    %148 = vector.multi_reduction <add>, %143, %cst_71 [1] : vector<1x128xf32> to vector<1xf32>
    %149 = vector.shape_cast %148 : vector<1xf32> to vector<1x1xf32>
    %150 = arith.subf %149, %147 : vector<1x1xf32>
    %151 = vector.shape_cast %147 : vector<1x1xf32> to vector<1x1xf32>
    %152 = vector.broadcast %151 : vector<1x1xf32> to vector<1x128xf32>
    %153 = vector.shape_cast %150 : vector<1x1xf32> to vector<1x1xf32>
    %154 = vector.broadcast %153 : vector<1x1xf32> to vector<1x128xf32>
    %155 = arith.select %4, %152, %154 : vector<1x128xi1>, vector<1x128xf32>
    %cst_72 = arith.constant 2.44140625E-4 : f32
    %156 = vector.broadcast %cst_72 : f32 to vector<1x128xf32>
    %157 = arith.mulf %155, %156 : vector<1x128xf32>
    %158 = vector.broadcast %157 : vector<1x128xf32> to vector<64x128xf32>
    %159 = arith.subf %141, %158 : vector<64x128xf32>
    %160 = arith.mulf %159, %159 : vector<64x128xf32>
    %cst_73 = arith.constant dense<0.000000e+00> : vector<128xf32>
    %161 = vector.multi_reduction <add>, %160, %cst_73 [0] : vector<64x128xf32> to vector<128xf32>
    %162 = vector.shape_cast %161 : vector<128xf32> to vector<1x128xf32>
    %cst_74 = arith.constant 0.000000e+00 : f32
    %163 = vector.broadcast %cst_74 : f32 to vector<1x128xf32>
    %164 = arith.select %4, %162, %163 : vector<1x128xi1>, vector<1x128xf32>
    %cst_75 = arith.constant dense<0.000000e+00> : vector<1xf32>
    %165 = vector.multi_reduction <add>, %164, %cst_75 [1] : vector<1x128xf32> to vector<1xf32>
    %166 = vector.shape_cast %165 : vector<1xf32> to vector<1x1xf32>
    %cst_76 = arith.constant dense<0.000000e+00> : vector<1xf32>
    %167 = vector.multi_reduction <add>, %162, %cst_76 [1] : vector<1x128xf32> to vector<1xf32>
    %168 = vector.shape_cast %167 : vector<1xf32> to vector<1x1xf32>
    %169 = arith.subf %168, %166 : vector<1x1xf32>
    %170 = vector.shape_cast %166 : vector<1x1xf32> to vector<1x1xf32>
    %171 = vector.broadcast %170 : vector<1x1xf32> to vector<1x128xf32>
    %172 = vector.shape_cast %169 : vector<1x1xf32> to vector<1x1xf32>
    %173 = vector.broadcast %172 : vector<1x1xf32> to vector<1x128xf32>
    %174 = arith.select %4, %171, %173 : vector<1x128xi1>, vector<1x128xf32>
    %cst_77 = arith.constant 2.44140625E-4 : f32
    %175 = vector.broadcast %cst_77 : f32 to vector<1x128xf32>
    %176 = arith.mulf %174, %175 : vector<1x128xf32>
    %cst_78 = arith.constant 9.99999974E-6 : f32
    %177 = vector.broadcast %cst_78 : f32 to vector<1x128xf32>
    %178 = arith.addf %176, %177 : vector<1x128xf32>
    %179 = math.rsqrt %178 : vector<1x128xf32>
    %180 = vector.broadcast %179 : vector<1x128xf32> to vector<64x128xf32>
    %181 = arith.mulf %159, %180 : vector<64x128xf32>
    %c0_79 = arith.constant 0 : index
    %c2_80 = arith.constant 2 : index
    %182 = memref.load %arg6[%c0_79, %c2_80] : memref<4x4xf32, #tpu.memory_space<smem>>
    %183 = vector.broadcast %182 : f32 to vector<64x128xf32>
    %184 = arith.mulf %183, %1 : vector<64x128xf32>
    %c1_81 = arith.constant 1 : index
    %c2_82 = arith.constant 2 : index
    %185 = memref.load %arg6[%c1_81, %c2_82] : memref<4x4xf32, #tpu.memory_space<smem>>
    %186 = vector.broadcast %185 : f32 to vector<64x128xf32>
    %187 = arith.addf %184, %186 : vector<64x128xf32>
    %c2_83 = arith.constant 2 : index
    %c2_84 = arith.constant 2 : index
    %188 = memref.load %arg6[%c2_83, %c2_84] : memref<4x4xf32, #tpu.memory_space<smem>>
    %189 = vector.broadcast %188 : f32 to vector<64x128xf32>
    %190 = arith.mulf %189, %1 : vector<64x128xf32>
    %c3_85 = arith.constant 3 : index
    %c2_86 = arith.constant 2 : index
    %191 = memref.load %arg6[%c3_85, %c2_86] : memref<4x4xf32, #tpu.memory_space<smem>>
    %192 = vector.broadcast %191 : f32 to vector<64x128xf32>
    %193 = arith.addf %190, %192 : vector<64x128xf32>
    %194 = arith.mulf %187, %181 : vector<64x128xf32>
    %195 = arith.addf %194, %193 : vector<64x128xf32>
    %cst_87 = arith.constant 0.000000e+00 : f32
    %196 = vector.broadcast %cst_87 : f32 to vector<64x128xf32>
    %197 = arith.maximumf %195, %196 : vector<64x128xf32>
    %c192 = arith.constant 192 : index
    %c0_88 = arith.constant 0 : index
    %198 = vector.load %arg11[%c192, %c0_88] : memref<256x128xf32, #tpu.memory_space<vmem>>, vector<64x128xf32>
    %cst_89 = arith.constant dense<0.000000e+00> : vector<128xf32>
    %199 = vector.multi_reduction <add>, %198, %cst_89 [0] : vector<64x128xf32> to vector<128xf32>
    %200 = vector.shape_cast %199 : vector<128xf32> to vector<1x128xf32>
    %cst_90 = arith.constant 0.000000e+00 : f32
    %201 = vector.broadcast %cst_90 : f32 to vector<1x128xf32>
    %202 = arith.select %4, %200, %201 : vector<1x128xi1>, vector<1x128xf32>
    %cst_91 = arith.constant dense<0.000000e+00> : vector<1xf32>
    %203 = vector.multi_reduction <add>, %202, %cst_91 [1] : vector<1x128xf32> to vector<1xf32>
    %204 = vector.shape_cast %203 : vector<1xf32> to vector<1x1xf32>
    %cst_92 = arith.constant dense<0.000000e+00> : vector<1xf32>
    %205 = vector.multi_reduction <add>, %200, %cst_92 [1] : vector<1x128xf32> to vector<1xf32>
    %206 = vector.shape_cast %205 : vector<1xf32> to vector<1x1xf32>
    %207 = arith.subf %206, %204 : vector<1x1xf32>
    %208 = vector.shape_cast %204 : vector<1x1xf32> to vector<1x1xf32>
    %209 = vector.broadcast %208 : vector<1x1xf32> to vector<1x128xf32>
    %210 = vector.shape_cast %207 : vector<1x1xf32> to vector<1x1xf32>
    %211 = vector.broadcast %210 : vector<1x1xf32> to vector<1x128xf32>
    %212 = arith.select %4, %209, %211 : vector<1x128xi1>, vector<1x128xf32>
    %cst_93 = arith.constant 2.44140625E-4 : f32
    %213 = vector.broadcast %cst_93 : f32 to vector<1x128xf32>
    %214 = arith.mulf %212, %213 : vector<1x128xf32>
    %215 = vector.broadcast %214 : vector<1x128xf32> to vector<64x128xf32>
    %216 = arith.subf %198, %215 : vector<64x128xf32>
    %217 = arith.mulf %216, %216 : vector<64x128xf32>
    %cst_94 = arith.constant dense<0.000000e+00> : vector<128xf32>
    %218 = vector.multi_reduction <add>, %217, %cst_94 [0] : vector<64x128xf32> to vector<128xf32>
    %219 = vector.shape_cast %218 : vector<128xf32> to vector<1x128xf32>
    %cst_95 = arith.constant 0.000000e+00 : f32
    %220 = vector.broadcast %cst_95 : f32 to vector<1x128xf32>
    %221 = arith.select %4, %219, %220 : vector<1x128xi1>, vector<1x128xf32>
    %cst_96 = arith.constant dense<0.000000e+00> : vector<1xf32>
    %222 = vector.multi_reduction <add>, %221, %cst_96 [1] : vector<1x128xf32> to vector<1xf32>
    %223 = vector.shape_cast %222 : vector<1xf32> to vector<1x1xf32>
    %cst_97 = arith.constant dense<0.000000e+00> : vector<1xf32>
    %224 = vector.multi_reduction <add>, %219, %cst_97 [1] : vector<1x128xf32> to vector<1xf32>
    %225 = vector.shape_cast %224 : vector<1xf32> to vector<1x1xf32>
    %226 = arith.subf %225, %223 : vector<1x1xf32>
    %227 = vector.shape_cast %223 : vector<1x1xf32> to vector<1x1xf32>
    %228 = vector.broadcast %227 : vector<1x1xf32> to vector<1x128xf32>
    %229 = vector.shape_cast %226 : vector<1x1xf32> to vector<1x1xf32>
    %230 = vector.broadcast %229 : vector<1x1xf32> to vector<1x128xf32>
    %231 = arith.select %4, %228, %230 : vector<1x128xi1>, vector<1x128xf32>
    %cst_98 = arith.constant 2.44140625E-4 : f32
    %232 = vector.broadcast %cst_98 : f32 to vector<1x128xf32>
    %233 = arith.mulf %231, %232 : vector<1x128xf32>
    %cst_99 = arith.constant 9.99999974E-6 : f32
    %234 = vector.broadcast %cst_99 : f32 to vector<1x128xf32>
    %235 = arith.addf %233, %234 : vector<1x128xf32>
    %236 = math.rsqrt %235 : vector<1x128xf32>
    %237 = vector.broadcast %236 : vector<1x128xf32> to vector<64x128xf32>
    %238 = arith.mulf %216, %237 : vector<64x128xf32>
    %c0_100 = arith.constant 0 : index
    %c3_101 = arith.constant 3 : index
    %239 = memref.load %arg6[%c0_100, %c3_101] : memref<4x4xf32, #tpu.memory_space<smem>>
    %240 = vector.broadcast %239 : f32 to vector<64x128xf32>
    %241 = arith.mulf %240, %1 : vector<64x128xf32>
    %c1_102 = arith.constant 1 : index
    %c3_103 = arith.constant 3 : index
    %242 = memref.load %arg6[%c1_102, %c3_103] : memref<4x4xf32, #tpu.memory_space<smem>>
    %243 = vector.broadcast %242 : f32 to vector<64x128xf32>
    %244 = arith.addf %241, %243 : vector<64x128xf32>
    %c2_104 = arith.constant 2 : index
    %c3_105 = arith.constant 3 : index
    %245 = memref.load %arg6[%c2_104, %c3_105] : memref<4x4xf32, #tpu.memory_space<smem>>
    %246 = vector.broadcast %245 : f32 to vector<64x128xf32>
    %247 = arith.mulf %246, %1 : vector<64x128xf32>
    %c3_106 = arith.constant 3 : index
    %c3_107 = arith.constant 3 : index
    %248 = memref.load %arg6[%c3_106, %c3_107] : memref<4x4xf32, #tpu.memory_space<smem>>
    %249 = vector.broadcast %248 : f32 to vector<64x128xf32>
    %250 = arith.addf %247, %249 : vector<64x128xf32>
    %251 = arith.mulf %244, %238 : vector<64x128xf32>
    %252 = arith.addf %251, %250 : vector<64x128xf32>
    %cst_108 = arith.constant 0.000000e+00 : f32
    %253 = vector.broadcast %cst_108 : f32 to vector<64x128xf32>
    %254 = arith.maximumf %252, %253 : vector<64x128xf32>
    %255 = tpu.concatenate %83, %140, %197, %254 in 0 : vector<64x128xf32>, vector<64x128xf32>, vector<64x128xf32>, vector<64x128xf32> -> vector<256x128xf32>
    %256 = arith.truncf %255 : vector<256x128xf32> to vector<256x128xbf16>
    %c0_109 = arith.constant 0 : index
    %c0_110 = arith.constant 0 : index
    %257 = vector.load %arg9[%c0_109, %c0_110] : memref<256x128xbf16, #tpu.memory_space<vmem>>, vector<256x128xbf16>
    tpu.vector_store %arg9[%c0_109, %c0_110], %256 {strides = array<i32>} : memref<256x128xbf16, #tpu.memory_space<vmem>>, vector<256x128xbf16>,
    %c0_111 = arith.constant 0 : index
    %c0_112 = arith.constant 0 : index
    %258 = vector.load %arg9[%c0_111, %c0_112] : memref<256x128xbf16, #tpu.memory_space<vmem>>, vector<256x128xbf16>
    %c0_113 = arith.constant 0 : index
    %c0_114 = arith.constant 0 : index
    %c0_115 = arith.constant 0 : index
    %259 = vector.load %arg4[%c0_113, %c0_114, %c0_115] : memref<3x128x128xbf16, #tpu.memory_space<vmem>>, vector<1x128x128xbf16>
    %260 = vector.shape_cast %259 : vector<1x128x128xbf16> to vector<128x128xbf16>
    %cst_116 = arith.constant dense<0.000000e+00> : vector<256x128xf32>
    %261 = tpu.matmul %258, %260, %cst_116 {dimension_numbers = #tpu.dot_dimension_numbers<[1], [0], [0], [1], [0, 0, 1, 1], [], []>} : vector<256x128xbf16>, vector<128x128xbf16>, vector<256x128xf32> -> vector<256x128xf32>
    %262 = arith.truncf %261 : vector<256x128xf32> to vector<256x128xbf16>
    %c0_117 = arith.constant 0 : index
    %c0_118 = arith.constant 0 : index
    %263 = vector.load %arg10[%c0_117, %c0_118] : memref<768x128xbf16, #tpu.memory_space<vmem>>, vector<256x128xbf16>
    tpu.vector_store %arg10[%c0_117, %c0_118], %262 {strides = array<i32>} : memref<768x128xbf16, #tpu.memory_space<vmem>>, vector<256x128xbf16>,
    %c1_119 = arith.constant 1 : index
    %c0_120 = arith.constant 0 : index
    %c0_121 = arith.constant 0 : index
    %264 = vector.load %arg4[%c1_119, %c0_120, %c0_121] : memref<3x128x128xbf16, #tpu.memory_space<vmem>>, vector<1x128x128xbf16>
    %265 = vector.shape_cast %264 : vector<1x128x128xbf16> to vector<128x128xbf16>
    %cst_122 = arith.constant dense<0.000000e+00> : vector<256x128xf32>
    %266 = tpu.matmul %258, %265, %cst_122 {dimension_numbers = #tpu.dot_dimension_numbers<[1], [0], [0], [1], [0, 0, 1, 1], [], []>} : vector<256x128xbf16>, vector<128x128xbf16>, vector<256x128xf32> -> vector<256x128xf32>
    %267 = arith.truncf %266 : vector<256x128xf32> to vector<256x128xbf16>
    %c256_123 = arith.constant 256 : index
    %c0_124 = arith.constant 0 : index
    %268 = vector.load %arg10[%c256_123, %c0_124] : memref<768x128xbf16, #tpu.memory_space<vmem>>, vector<256x128xbf16>
    tpu.vector_store %arg10[%c256_123, %c0_124], %267 {strides = array<i32>} : memref<768x128xbf16, #tpu.memory_space<vmem>>, vector<256x128xbf16>,
    %c2_125 = arith.constant 2 : index
    %c0_126 = arith.constant 0 : index
    %c0_127 = arith.constant 0 : index
    %269 = vector.load %arg4[%c2_125, %c0_126, %c0_127] : memref<3x128x128xbf16, #tpu.memory_space<vmem>>, vector<1x128x128xbf16>
    %270 = vector.shape_cast %269 : vector<1x128x128xbf16> to vector<128x128xbf16>
    %cst_128 = arith.constant dense<0.000000e+00> : vector<256x128xf32>
    %271 = tpu.matmul %258, %270, %cst_128 {dimension_numbers = #tpu.dot_dimension_numbers<[1], [0], [0], [1], [0, 0, 1, 1], [], []>} : vector<256x128xbf16>, vector<128x128xbf16>, vector<256x128xf32> -> vector<256x128xf32>
    %272 = arith.truncf %271 : vector<256x128xf32> to vector<256x128xbf16>
    %c512_129 = arith.constant 512 : index
    %c0_130 = arith.constant 0 : index
    %273 = vector.load %arg10[%c512_129, %c0_130] : memref<768x128xbf16, #tpu.memory_space<vmem>>, vector<256x128xbf16>
    tpu.vector_store %arg10[%c512_129, %c0_130], %272 {strides = array<i32>} : memref<768x128xbf16, #tpu.memory_space<vmem>>, vector<256x128xbf16>,
    %c0_131 = arith.constant 0 : index
    %c0_132 = arith.constant 0 : index
    %274 = vector.load %arg5[%c0_131, %c0_132] : memref<256x768xbf16, #tpu.memory_space<vmem>>, vector<256x768xbf16>
    %c0_133 = arith.constant 0 : index
    %c0_134 = arith.constant 0 : index
    %275 = vector.load %arg10[%c0_133, %c0_134] : memref<768x128xbf16, #tpu.memory_space<vmem>>, vector<768x128xbf16>
    %cst_135 = arith.constant dense<0.000000e+00> : vector<256x128xf32>
    %276 = tpu.matmul %274, %275, %cst_135 {dimension_numbers = #tpu.dot_dimension_numbers<[1], [0], [0], [1], [0, 0, 1, 1], [], []>} : vector<256x768xbf16>, vector<768x128xbf16>, vector<256x128xf32> -> vector<256x128xf32>
    %c0_136 = arith.constant 0 : index
    %c0_137 = arith.constant 0 : index
    %277 = vector.load %arg11[%c0_136, %c0_137] : memref<256x128xf32, #tpu.memory_space<vmem>>, vector<256x128xf32>
    tpu.vector_store %arg11[%c0_136, %c0_137], %276 {strides = array<i32>} : memref<256x128xf32, #tpu.memory_space<vmem>>, vector<256x128xf32>,
    %c0_138 = arith.constant 0 : index
    %c0_139 = arith.constant 0 : index
    %278 = vector.load %arg11[%c0_138, %c0_139] : memref<256x128xf32, #tpu.memory_space<vmem>>, vector<64x128xf32>
    %cst_140 = arith.constant dense<0.000000e+00> : vector<128xf32>
    %279 = vector.multi_reduction <add>, %278, %cst_140 [0] : vector<64x128xf32> to vector<128xf32>
    %280 = vector.shape_cast %279 : vector<128xf32> to vector<1x128xf32>
    %cst_141 = arith.constant 0.000000e+00 : f32
    %281 = vector.broadcast %cst_141 : f32 to vector<1x128xf32>
    %282 = arith.select %4, %280, %281 : vector<1x128xi1>, vector<1x128xf32>
    %cst_142 = arith.constant dense<0.000000e+00> : vector<1xf32>
    %283 = vector.multi_reduction <add>, %282, %cst_142 [1] : vector<1x128xf32> to vector<1xf32>
    %284 = vector.shape_cast %283 : vector<1xf32> to vector<1x1xf32>
    %cst_143 = arith.constant dense<0.000000e+00> : vector<1xf32>
    %285 = vector.multi_reduction <add>, %280, %cst_143 [1] : vector<1x128xf32> to vector<1xf32>
    %286 = vector.shape_cast %285 : vector<1xf32> to vector<1x1xf32>
    %287 = arith.subf %286, %284 : vector<1x1xf32>
    %288 = vector.shape_cast %284 : vector<1x1xf32> to vector<1x1xf32>
    %289 = vector.broadcast %288 : vector<1x1xf32> to vector<1x128xf32>
    %290 = vector.shape_cast %287 : vector<1x1xf32> to vector<1x1xf32>
    %291 = vector.broadcast %290 : vector<1x1xf32> to vector<1x128xf32>
    %292 = arith.select %4, %289, %291 : vector<1x128xi1>, vector<1x128xf32>
    %cst_144 = arith.constant 2.44140625E-4 : f32
    %293 = vector.broadcast %cst_144 : f32 to vector<1x128xf32>
    %294 = arith.mulf %292, %293 : vector<1x128xf32>
    %295 = vector.broadcast %294 : vector<1x128xf32> to vector<64x128xf32>
    %296 = arith.subf %278, %295 : vector<64x128xf32>
    %297 = arith.mulf %296, %296 : vector<64x128xf32>
    %cst_145 = arith.constant dense<0.000000e+00> : vector<128xf32>
    %298 = vector.multi_reduction <add>, %297, %cst_145 [0] : vector<64x128xf32> to vector<128xf32>
    %299 = vector.shape_cast %298 : vector<128xf32> to vector<1x128xf32>
    %cst_146 = arith.constant 0.000000e+00 : f32
    %300 = vector.broadcast %cst_146 : f32 to vector<1x128xf32>
    %301 = arith.select %4, %299, %300 : vector<1x128xi1>, vector<1x128xf32>
    %cst_147 = arith.constant dense<0.000000e+00> : vector<1xf32>
    %302 = vector.multi_reduction <add>, %301, %cst_147 [1] : vector<1x128xf32> to vector<1xf32>
    %303 = vector.shape_cast %302 : vector<1xf32> to vector<1x1xf32>
    %cst_148 = arith.constant dense<0.000000e+00> : vector<1xf32>
    %304 = vector.multi_reduction <add>, %299, %cst_148 [1] : vector<1x128xf32> to vector<1xf32>
    %305 = vector.shape_cast %304 : vector<1xf32> to vector<1x1xf32>
    %306 = arith.subf %305, %303 : vector<1x1xf32>
    %307 = vector.shape_cast %303 : vector<1x1xf32> to vector<1x1xf32>
    %308 = vector.broadcast %307 : vector<1x1xf32> to vector<1x128xf32>
    %309 = vector.shape_cast %306 : vector<1x1xf32> to vector<1x1xf32>
    %310 = vector.broadcast %309 : vector<1x1xf32> to vector<1x128xf32>
    %311 = arith.select %4, %308, %310 : vector<1x128xi1>, vector<1x128xf32>
    %cst_149 = arith.constant 2.44140625E-4 : f32
    %312 = vector.broadcast %cst_149 : f32 to vector<1x128xf32>
    %313 = arith.mulf %311, %312 : vector<1x128xf32>
    %cst_150 = arith.constant 9.99999974E-6 : f32
    %314 = vector.broadcast %cst_150 : f32 to vector<1x128xf32>
    %315 = arith.addf %313, %314 : vector<1x128xf32>
    %316 = math.rsqrt %315 : vector<1x128xf32>
    %317 = vector.broadcast %316 : vector<1x128xf32> to vector<64x128xf32>
    %318 = arith.mulf %296, %317 : vector<64x128xf32>
    %c0_151 = arith.constant 0 : index
    %c0_152 = arith.constant 0 : index
    %319 = memref.load %arg7[%c0_151, %c0_152] : memref<4x4xf32, #tpu.memory_space<smem>>
    %320 = vector.broadcast %319 : f32 to vector<64x128xf32>
    %321 = arith.mulf %320, %1 : vector<64x128xf32>
    %c1_153 = arith.constant 1 : index
    %c0_154 = arith.constant 0 : index
    %322 = memref.load %arg7[%c1_153, %c0_154] : memref<4x4xf32, #tpu.memory_space<smem>>
    %323 = vector.broadcast %322 : f32 to vector<64x128xf32>
    %324 = arith.addf %321, %323 : vector<64x128xf32>
    %c2_155 = arith.constant 2 : index
    %c0_156 = arith.constant 0 : index
    %325 = memref.load %arg7[%c2_155, %c0_156] : memref<4x4xf32, #tpu.memory_space<smem>>
    %326 = vector.broadcast %325 : f32 to vector<64x128xf32>
    %327 = arith.mulf %326, %1 : vector<64x128xf32>
    %c3_157 = arith.constant 3 : index
    %c0_158 = arith.constant 0 : index
    %328 = memref.load %arg7[%c3_157, %c0_158] : memref<4x4xf32, #tpu.memory_space<smem>>
    %329 = vector.broadcast %328 : f32 to vector<64x128xf32>
    %330 = arith.addf %327, %329 : vector<64x128xf32>
    %331 = arith.mulf %324, %318 : vector<64x128xf32>
    %332 = arith.addf %331, %330 : vector<64x128xf32>
    %c64_159 = arith.constant 64 : index
    %c0_160 = arith.constant 0 : index
    %333 = vector.load %arg11[%c64_159, %c0_160] : memref<256x128xf32, #tpu.memory_space<vmem>>, vector<64x128xf32>
    %cst_161 = arith.constant dense<0.000000e+00> : vector<128xf32>
    %334 = vector.multi_reduction <add>, %333, %cst_161 [0] : vector<64x128xf32> to vector<128xf32>
    %335 = vector.shape_cast %334 : vector<128xf32> to vector<1x128xf32>
    %cst_162 = arith.constant 0.000000e+00 : f32
    %336 = vector.broadcast %cst_162 : f32 to vector<1x128xf32>
    %337 = arith.select %4, %335, %336 : vector<1x128xi1>, vector<1x128xf32>
    %cst_163 = arith.constant dense<0.000000e+00> : vector<1xf32>
    %338 = vector.multi_reduction <add>, %337, %cst_163 [1] : vector<1x128xf32> to vector<1xf32>
    %339 = vector.shape_cast %338 : vector<1xf32> to vector<1x1xf32>
    %cst_164 = arith.constant dense<0.000000e+00> : vector<1xf32>
    %340 = vector.multi_reduction <add>, %335, %cst_164 [1] : vector<1x128xf32> to vector<1xf32>
    %341 = vector.shape_cast %340 : vector<1xf32> to vector<1x1xf32>
    %342 = arith.subf %341, %339 : vector<1x1xf32>
    %343 = vector.shape_cast %339 : vector<1x1xf32> to vector<1x1xf32>
    %344 = vector.broadcast %343 : vector<1x1xf32> to vector<1x128xf32>
    %345 = vector.shape_cast %342 : vector<1x1xf32> to vector<1x1xf32>
    %346 = vector.broadcast %345 : vector<1x1xf32> to vector<1x128xf32>
    %347 = arith.select %4, %344, %346 : vector<1x128xi1>, vector<1x128xf32>
    %cst_165 = arith.constant 2.44140625E-4 : f32
    %348 = vector.broadcast %cst_165 : f32 to vector<1x128xf32>
    %349 = arith.mulf %347, %348 : vector<1x128xf32>
    %350 = vector.broadcast %349 : vector<1x128xf32> to vector<64x128xf32>
    %351 = arith.subf %333, %350 : vector<64x128xf32>
    %352 = arith.mulf %351, %351 : vector<64x128xf32>
    %cst_166 = arith.constant dense<0.000000e+00> : vector<128xf32>
    %353 = vector.multi_reduction <add>, %352, %cst_166 [0] : vector<64x128xf32> to vector<128xf32>
    %354 = vector.shape_cast %353 : vector<128xf32> to vector<1x128xf32>
    %cst_167 = arith.constant 0.000000e+00 : f32
    %355 = vector.broadcast %cst_167 : f32 to vector<1x128xf32>
    %356 = arith.select %4, %354, %355 : vector<1x128xi1>, vector<1x128xf32>
    %cst_168 = arith.constant dense<0.000000e+00> : vector<1xf32>
    %357 = vector.multi_reduction <add>, %356, %cst_168 [1] : vector<1x128xf32> to vector<1xf32>
    %358 = vector.shape_cast %357 : vector<1xf32> to vector<1x1xf32>
    %cst_169 = arith.constant dense<0.000000e+00> : vector<1xf32>
    %359 = vector.multi_reduction <add>, %354, %cst_169 [1] : vector<1x128xf32> to vector<1xf32>
    %360 = vector.shape_cast %359 : vector<1xf32> to vector<1x1xf32>
    %361 = arith.subf %360, %358 : vector<1x1xf32>
    %362 = vector.shape_cast %358 : vector<1x1xf32> to vector<1x1xf32>
    %363 = vector.broadcast %362 : vector<1x1xf32> to vector<1x128xf32>
    %364 = vector.shape_cast %361 : vector<1x1xf32> to vector<1x1xf32>
    %365 = vector.broadcast %364 : vector<1x1xf32> to vector<1x128xf32>
    %366 = arith.select %4, %363, %365 : vector<1x128xi1>, vector<1x128xf32>
    %cst_170 = arith.constant 2.44140625E-4 : f32
    %367 = vector.broadcast %cst_170 : f32 to vector<1x128xf32>
    %368 = arith.mulf %366, %367 : vector<1x128xf32>
    %cst_171 = arith.constant 9.99999974E-6 : f32
    %369 = vector.broadcast %cst_171 : f32 to vector<1x128xf32>
    %370 = arith.addf %368, %369 : vector<1x128xf32>
    %371 = math.rsqrt %370 : vector<1x128xf32>
    %372 = vector.broadcast %371 : vector<1x128xf32> to vector<64x128xf32>
    %373 = arith.mulf %351, %372 : vector<64x128xf32>
    %c0_172 = arith.constant 0 : index
    %c1_173 = arith.constant 1 : index
    %374 = memref.load %arg7[%c0_172, %c1_173] : memref<4x4xf32, #tpu.memory_space<smem>>
    %375 = vector.broadcast %374 : f32 to vector<64x128xf32>
    %376 = arith.mulf %375, %1 : vector<64x128xf32>
    %c1_174 = arith.constant 1 : index
    %c1_175 = arith.constant 1 : index
    %377 = memref.load %arg7[%c1_174, %c1_175] : memref<4x4xf32, #tpu.memory_space<smem>>
    %378 = vector.broadcast %377 : f32 to vector<64x128xf32>
    %379 = arith.addf %376, %378 : vector<64x128xf32>
    %c2_176 = arith.constant 2 : index
    %c1_177 = arith.constant 1 : index
    %380 = memref.load %arg7[%c2_176, %c1_177] : memref<4x4xf32, #tpu.memory_space<smem>>
    %381 = vector.broadcast %380 : f32 to vector<64x128xf32>
    %382 = arith.mulf %381, %1 : vector<64x128xf32>
    %c3_178 = arith.constant 3 : index
    %c1_179 = arith.constant 1 : index
    %383 = memref.load %arg7[%c3_178, %c1_179] : memref<4x4xf32, #tpu.memory_space<smem>>
    %384 = vector.broadcast %383 : f32 to vector<64x128xf32>
    %385 = arith.addf %382, %384 : vector<64x128xf32>
    %386 = arith.mulf %379, %373 : vector<64x128xf32>
    %387 = arith.addf %386, %385 : vector<64x128xf32>
    %c128_180 = arith.constant 128 : index
    %c0_181 = arith.constant 0 : index
    %388 = vector.load %arg11[%c128_180, %c0_181] : memref<256x128xf32, #tpu.memory_space<vmem>>, vector<64x128xf32>
    %cst_182 = arith.constant dense<0.000000e+00> : vector<128xf32>
    %389 = vector.multi_reduction <add>, %388, %cst_182 [0] : vector<64x128xf32> to vector<128xf32>
    %390 = vector.shape_cast %389 : vector<128xf32> to vector<1x128xf32>
    %cst_183 = arith.constant 0.000000e+00 : f32
    %391 = vector.broadcast %cst_183 : f32 to vector<1x128xf32>
    %392 = arith.select %4, %390, %391 : vector<1x128xi1>, vector<1x128xf32>
    %cst_184 = arith.constant dense<0.000000e+00> : vector<1xf32>
    %393 = vector.multi_reduction <add>, %392, %cst_184 [1] : vector<1x128xf32> to vector<1xf32>
    %394 = vector.shape_cast %393 : vector<1xf32> to vector<1x1xf32>
    %cst_185 = arith.constant dense<0.000000e+00> : vector<1xf32>
    %395 = vector.multi_reduction <add>, %390, %cst_185 [1] : vector<1x128xf32> to vector<1xf32>
    %396 = vector.shape_cast %395 : vector<1xf32> to vector<1x1xf32>
    %397 = arith.subf %396, %394 : vector<1x1xf32>
    %398 = vector.shape_cast %394 : vector<1x1xf32> to vector<1x1xf32>
    %399 = vector.broadcast %398 : vector<1x1xf32> to vector<1x128xf32>
    %400 = vector.shape_cast %397 : vector<1x1xf32> to vector<1x1xf32>
    %401 = vector.broadcast %400 : vector<1x1xf32> to vector<1x128xf32>
    %402 = arith.select %4, %399, %401 : vector<1x128xi1>, vector<1x128xf32>
    %cst_186 = arith.constant 2.44140625E-4 : f32
    %403 = vector.broadcast %cst_186 : f32 to vector<1x128xf32>
    %404 = arith.mulf %402, %403 : vector<1x128xf32>
    %405 = vector.broadcast %404 : vector<1x128xf32> to vector<64x128xf32>
    %406 = arith.subf %388, %405 : vector<64x128xf32>
    %407 = arith.mulf %406, %406 : vector<64x128xf32>
    %cst_187 = arith.constant dense<0.000000e+00> : vector<128xf32>
    %408 = vector.multi_reduction <add>, %407, %cst_187 [0] : vector<64x128xf32> to vector<128xf32>
    %409 = vector.shape_cast %408 : vector<128xf32> to vector<1x128xf32>
    %cst_188 = arith.constant 0.000000e+00 : f32
    %410 = vector.broadcast %cst_188 : f32 to vector<1x128xf32>
    %411 = arith.select %4, %409, %410 : vector<1x128xi1>, vector<1x128xf32>
    %cst_189 = arith.constant dense<0.000000e+00> : vector<1xf32>
    %412 = vector.multi_reduction <add>, %411, %cst_189 [1] : vector<1x128xf32> to vector<1xf32>
    %413 = vector.shape_cast %412 : vector<1xf32> to vector<1x1xf32>
    %cst_190 = arith.constant dense<0.000000e+00> : vector<1xf32>
    %414 = vector.multi_reduction <add>, %409, %cst_190 [1] : vector<1x128xf32> to vector<1xf32>
    %415 = vector.shape_cast %414 : vector<1xf32> to vector<1x1xf32>
    %416 = arith.subf %415, %413 : vector<1x1xf32>
    %417 = vector.shape_cast %413 : vector<1x1xf32> to vector<1x1xf32>
    %418 = vector.broadcast %417 : vector<1x1xf32> to vector<1x128xf32>
    %419 = vector.shape_cast %416 : vector<1x1xf32> to vector<1x1xf32>
    %420 = vector.broadcast %419 : vector<1x1xf32> to vector<1x128xf32>
    %421 = arith.select %4, %418, %420 : vector<1x128xi1>, vector<1x128xf32>
    %cst_191 = arith.constant 2.44140625E-4 : f32
    %422 = vector.broadcast %cst_191 : f32 to vector<1x128xf32>
    %423 = arith.mulf %421, %422 : vector<1x128xf32>
    %cst_192 = arith.constant 9.99999974E-6 : f32
    %424 = vector.broadcast %cst_192 : f32 to vector<1x128xf32>
    %425 = arith.addf %423, %424 : vector<1x128xf32>
    %426 = math.rsqrt %425 : vector<1x128xf32>
    %427 = vector.broadcast %426 : vector<1x128xf32> to vector<64x128xf32>
    %428 = arith.mulf %406, %427 : vector<64x128xf32>
    %c0_193 = arith.constant 0 : index
    %c2_194 = arith.constant 2 : index
    %429 = memref.load %arg7[%c0_193, %c2_194] : memref<4x4xf32, #tpu.memory_space<smem>>
    %430 = vector.broadcast %429 : f32 to vector<64x128xf32>
    %431 = arith.mulf %430, %1 : vector<64x128xf32>
    %c1_195 = arith.constant 1 : index
    %c2_196 = arith.constant 2 : index
    %432 = memref.load %arg7[%c1_195, %c2_196] : memref<4x4xf32, #tpu.memory_space<smem>>
    %433 = vector.broadcast %432 : f32 to vector<64x128xf32>
    %434 = arith.addf %431, %433 : vector<64x128xf32>
    %c2_197 = arith.constant 2 : index
    %c2_198 = arith.constant 2 : index
    %435 = memref.load %arg7[%c2_197, %c2_198] : memref<4x4xf32, #tpu.memory_space<smem>>
    %436 = vector.broadcast %435 : f32 to vector<64x128xf32>
    %437 = arith.mulf %436, %1 : vector<64x128xf32>
    %c3_199 = arith.constant 3 : index
    %c2_200 = arith.constant 2 : index
    %438 = memref.load %arg7[%c3_199, %c2_200] : memref<4x4xf32, #tpu.memory_space<smem>>
    %439 = vector.broadcast %438 : f32 to vector<64x128xf32>
    %440 = arith.addf %437, %439 : vector<64x128xf32>
    %441 = arith.mulf %434, %428 : vector<64x128xf32>
    %442 = arith.addf %441, %440 : vector<64x128xf32>
    %c192_201 = arith.constant 192 : index
    %c0_202 = arith.constant 0 : index
    %443 = vector.load %arg11[%c192_201, %c0_202] : memref<256x128xf32, #tpu.memory_space<vmem>>, vector<64x128xf32>
    %cst_203 = arith.constant dense<0.000000e+00> : vector<128xf32>
    %444 = vector.multi_reduction <add>, %443, %cst_203 [0] : vector<64x128xf32> to vector<128xf32>
    %445 = vector.shape_cast %444 : vector<128xf32> to vector<1x128xf32>
    %cst_204 = arith.constant 0.000000e+00 : f32
    %446 = vector.broadcast %cst_204 : f32 to vector<1x128xf32>
    %447 = arith.select %4, %445, %446 : vector<1x128xi1>, vector<1x128xf32>
    %cst_205 = arith.constant dense<0.000000e+00> : vector<1xf32>
    %448 = vector.multi_reduction <add>, %447, %cst_205 [1] : vector<1x128xf32> to vector<1xf32>
    %449 = vector.shape_cast %448 : vector<1xf32> to vector<1x1xf32>
    %cst_206 = arith.constant dense<0.000000e+00> : vector<1xf32>
    %450 = vector.multi_reduction <add>, %445, %cst_206 [1] : vector<1x128xf32> to vector<1xf32>
    %451 = vector.shape_cast %450 : vector<1xf32> to vector<1x1xf32>
    %452 = arith.subf %451, %449 : vector<1x1xf32>
    %453 = vector.shape_cast %449 : vector<1x1xf32> to vector<1x1xf32>
    %454 = vector.broadcast %453 : vector<1x1xf32> to vector<1x128xf32>
    %455 = vector.shape_cast %452 : vector<1x1xf32> to vector<1x1xf32>
    %456 = vector.broadcast %455 : vector<1x1xf32> to vector<1x128xf32>
    %457 = arith.select %4, %454, %456 : vector<1x128xi1>, vector<1x128xf32>
    %cst_207 = arith.constant 2.44140625E-4 : f32
    %458 = vector.broadcast %cst_207 : f32 to vector<1x128xf32>
    %459 = arith.mulf %457, %458 : vector<1x128xf32>
    %460 = vector.broadcast %459 : vector<1x128xf32> to vector<64x128xf32>
    %461 = arith.subf %443, %460 : vector<64x128xf32>
    %462 = arith.mulf %461, %461 : vector<64x128xf32>
    %cst_208 = arith.constant dense<0.000000e+00> : vector<128xf32>
    %463 = vector.multi_reduction <add>, %462, %cst_208 [0] : vector<64x128xf32> to vector<128xf32>
    %464 = vector.shape_cast %463 : vector<128xf32> to vector<1x128xf32>
    %cst_209 = arith.constant 0.000000e+00 : f32
    %465 = vector.broadcast %cst_209 : f32 to vector<1x128xf32>
    %466 = arith.select %4, %464, %465 : vector<1x128xi1>, vector<1x128xf32>
    %cst_210 = arith.constant dense<0.000000e+00> : vector<1xf32>
    %467 = vector.multi_reduction <add>, %466, %cst_210 [1] : vector<1x128xf32> to vector<1xf32>
    %468 = vector.shape_cast %467 : vector<1xf32> to vector<1x1xf32>
    %cst_211 = arith.constant dense<0.000000e+00> : vector<1xf32>
    %469 = vector.multi_reduction <add>, %464, %cst_211 [1] : vector<1x128xf32> to vector<1xf32>
    %470 = vector.shape_cast %469 : vector<1xf32> to vector<1x1xf32>
    %471 = arith.subf %470, %468 : vector<1x1xf32>
    %472 = vector.shape_cast %468 : vector<1x1xf32> to vector<1x1xf32>
    %473 = vector.broadcast %472 : vector<1x1xf32> to vector<1x128xf32>
    %474 = vector.shape_cast %471 : vector<1x1xf32> to vector<1x1xf32>
    %475 = vector.broadcast %474 : vector<1x1xf32> to vector<1x128xf32>
    %476 = arith.select %4, %473, %475 : vector<1x128xi1>, vector<1x128xf32>
    %cst_212 = arith.constant 2.44140625E-4 : f32
    %477 = vector.broadcast %cst_212 : f32 to vector<1x128xf32>
    %478 = arith.mulf %476, %477 : vector<1x128xf32>
    %cst_213 = arith.constant 9.99999974E-6 : f32
    %479 = vector.broadcast %cst_213 : f32 to vector<1x128xf32>
    %480 = arith.addf %478, %479 : vector<1x128xf32>
    %481 = math.rsqrt %480 : vector<1x128xf32>
    %482 = vector.broadcast %481 : vector<1x128xf32> to vector<64x128xf32>
    %483 = arith.mulf %461, %482 : vector<64x128xf32>
    %c0_214 = arith.constant 0 : index
    %c3_215 = arith.constant 3 : index
    %484 = memref.load %arg7[%c0_214, %c3_215] : memref<4x4xf32, #tpu.memory_space<smem>>
    %485 = vector.broadcast %484 : f32 to vector<64x128xf32>
    %486 = arith.mulf %485, %1 : vector<64x128xf32>
    %c1_216 = arith.constant 1 : index
    %c3_217 = arith.constant 3 : index
    %487 = memref.load %arg7[%c1_216, %c3_217] : memref<4x4xf32, #tpu.memory_space<smem>>
    %488 = vector.broadcast %487 : f32 to vector<64x128xf32>
    %489 = arith.addf %486, %488 : vector<64x128xf32>
    %c2_218 = arith.constant 2 : index
    %c3_219 = arith.constant 3 : index
    %490 = memref.load %arg7[%c2_218, %c3_219] : memref<4x4xf32, #tpu.memory_space<smem>>
    %491 = vector.broadcast %490 : f32 to vector<64x128xf32>
    %492 = arith.mulf %491, %1 : vector<64x128xf32>
    %c3_220 = arith.constant 3 : index
    %c3_221 = arith.constant 3 : index
    %493 = memref.load %arg7[%c3_220, %c3_221] : memref<4x4xf32, #tpu.memory_space<smem>>
    %494 = vector.broadcast %493 : f32 to vector<64x128xf32>
    %495 = arith.addf %492, %494 : vector<64x128xf32>
    %496 = arith.mulf %489, %483 : vector<64x128xf32>
    %497 = arith.addf %496, %495 : vector<64x128xf32>
    %498 = tpu.concatenate %332, %387, %442, %497 in 0 : vector<64x128xf32>, vector<64x128xf32>, vector<64x128xf32>, vector<64x128xf32> -> vector<256x128xf32>
    %c0_222 = arith.constant 0 : index
    %c0_223 = arith.constant 0 : index
    %c0_224 = arith.constant 0 : index
    %499 = vector.load %arg1[%c0_222, %c0_223, %c0_224] : memref<1x256x128xf32, #tpu.memory_space<vmem>>, vector<1x256x128xf32>
    %500 = vector.shape_cast %499 : vector<1x256x128xf32> to vector<256x128xf32>
    %501 = arith.addf %500, %498 : vector<256x128xf32>
    %c0_225 = arith.constant 0 : index
    %c0_226 = arith.constant 0 : index
    %c0_227 = arith.constant 0 : index
    %502 = vector.load %arg8[%c0_225, %c0_226, %c0_227] : memref<1x256x128xf32, #tpu.memory_space<vmem>>, vector<1x256x128xf32>
    %503 = vector.shape_cast %502 : vector<1x256x128xf32> to vector<256x128xf32>
    %504 = vector.shape_cast %501 : vector<256x128xf32> to vector<1x256x128xf32>
    tpu.vector_store %arg8[%c0_225, %c0_226, %c0_227], %504 {strides = array<i32>} : memref<1x256x128xf32, #tpu.memory_space<vmem>>, vector<1x256x128xf32>,
    return
  }
  func.func @transform_0(%arg0: i32) -> (i32, i32, i32) {
    %c0_i32 = arith.constant 0 : i32
    %c0_i32_0 = arith.constant 0 : i32
    %c0_i32_1 = arith.constant 0 : i32
    return %arg0, %c0_i32, %c0_i32_0 : i32, i32, i32
  }
  func.func @transform_1(%arg0: i32) -> (i32, i32, i32) {
    %c0_i32 = arith.constant 0 : i32
    %c0_i32_0 = arith.constant 0 : i32
    %c0_i32_1 = arith.constant 0 : i32
    return %arg0, %c0_i32, %c0_i32_0 : i32, i32, i32
  }
  func.func @transform_2(%arg0: i32) -> (i32, i32) {
    %c0_i32 = arith.constant 0 : i32
    %c0_i32_0 = arith.constant 0 : i32
    %c0_i32_1 = arith.constant 0 : i32
    return %c0_i32, %c0_i32_0 : i32, i32
  }
  func.func @transform_3(%arg0: i32) -> (i32, i32, i32) {
    %c0_i32 = arith.constant 0 : i32
    %c0_i32_0 = arith.constant 0 : i32
    %c0_i32_1 = arith.constant 0 : i32
    %c0_i32_2 = arith.constant 0 : i32
    return %c0_i32, %c0_i32_0, %c0_i32_1 : i32, i32, i32
  }
  func.func @transform_4(%arg0: i32) -> (i32, i32) {
    %c0_i32 = arith.constant 0 : i32
    %c0_i32_0 = arith.constant 0 : i32
    %c0_i32_1 = arith.constant 0 : i32
    return %c0_i32, %c0_i32_0 : i32, i32
  }
  func.func @transform_5(%arg0: i32) -> (i32, i32) {
    %c0_i32 = arith.constant 0 : i32
    %c0_i32_0 = arith.constant 0 : i32
    %c0_i32_1 = arith.constant 0 : i32
    return %c0_i32, %c0_i32_0 : i32, i32
  }
  func.func @transform_6(%arg0: i32) -> (i32, i32) {
    %c0_i32 = arith.constant 0 : i32
    %c0_i32_0 = arith.constant 0 : i32
    %c0_i32_1 = arith.constant 0 : i32
    return %c0_i32, %c0_i32_0 : i32, i32
  }
  func.func @transform_7(%arg0: i32) -> (i32, i32, i32) {
    %c0_i32 = arith.constant 0 : i32
    %c0_i32_0 = arith.constant 0 : i32
    %c0_i32_1 = arith.constant 0 : i32
    return %arg0, %c0_i32, %c0_i32_0 : i32, i32, i32
  }
}

</mosaic_0001>

<bundles_post_ra>
// kernel: pin_resnet_block.1
= control target key start
LH: loop header
LB: loop body
LE: loop exit
PB: predicated region body
PF: predicated region fallthrough
CT: control target
= control target key end

     0   :  { %12 = vsyncpa [#allocation6], 0  ;;  %s12578_s0 = inlined_call_operand.vmem [shape: f32[1,256,128], index: 0, kind: input, shape index: {}]   ;;  %s12579_s1 = inlined_call_operand.vmem [shape: f32[1,64,128], index: 1, kind: input, shape index: {}]   ;;  %s12580_s2 = inlined_call_operand.vmem [shape: bf16[256,768], index: 2, kind: input, shape index: {}]   ;;  %s12581_s3 = inlined_call_operand.vmem [shape: bf16[3,128,128], index: 3, kind: input, shape index: {}]   ;;  %s12582_s4 = inlined_call_operand.vmem [shape: bf16[256,768], index: 4, kind: input, shape index: {}]   ;;  %s12583_s5 = inlined_call_operand.vmem [shape: f32[4,4], index: 5, kind: input, shape index: {}]   ;;  %s12584_s6 = inlined_call_operand.vmem [shape: f32[4,4], index: 6, kind: input, shape index: {}]   ;;  %s12585_s7 = inlined_call_operand.vmem [shape: f32[1,256,128], index: 7, kind: output, shape index: {}]  }
   0x1   :  { %s30_s26 = sshll.u32 %s12583_s5, 4  ;;  %s31_s26 = int_to_ptr.vmem [resolvable:$true] %s30_s26 }
   0x2   :  { %13 = vsyncpa [#allocation8], 0  ;;  %s40_s29 = sshll.u32 %s12584_s6, 4  ;;  %s9992_s30 = scalar_lea.vmem %s31_s26, 64  ;;  %s41_s29 = int_to_ptr.vmem [resolvable:$true] %s40_s29 }
   0x3   :  { %p9993_p0 = scmp.ne.s32.totalorder %s31_s26, %s9992_s30  ;;  %p9997_p1 = scmp.lt.s32.totalorder %s31_s26, %s31_s26 }
   0x4   :  { %p9998_p2 = scmp.lt.s32.totalorder %s9992_s30, %s9992_s30 }
   0x6   :  { %p9999_p3 = por %p9998_p2, %p9997_p1 }
   0x8   :  { %p10000_p4 = pnand %p9999_p3, %p9993_p0 }
   0xa   :  { %10003 = shalt.err (!%p10000_p4)
}
   0xb   :  { %s10020_s8 = smov [#allocation5]   ;;  %s10004_s9 = scalar_lea.vmem %s41_s29, 64 }
   0xc   :  { %33 = dma.vmem_to_smem %s31_s26, 64, %s10020_s8, [#allocation6]  }
   0xd   :  { %p10005_p5 = scmp.ne.s32.totalorder %s41_s29, %s10004_s9  ;;  %p10009_p6 = scmp.lt.s32.totalorder %s41_s29, %s41_s29 }
   0xe   :  { %p10010_p7 = scmp.lt.s32.totalorder %s10004_s9, %s10004_s9 }
  0x10   :  { %p10011_p8 = por %p10010_p7, %p10009_p6 }
  0x12   :  { %p10012_p9 = pnand %p10011_p8, %p10005_p5 }
  0x14   :  { %10015 = shalt.err (!%p10012_p9)
}
  0x15   :  { %s10021_s5 = smov [#allocation7]  }
  0x16   :  { %43 = dma.vmem_to_smem %s41_s29, 64, %s10021_s5, [#allocation8]  }
  0x17   :  { %10016 = dma.done.wait [#allocation6], 64  }
  0x18   :  { %10017 = vsyncadd [#allocation6], 4294967232 }
  0x19   :  { %10018 = dma.done.wait [#allocation8], 64  }
  0x1a   :  { %10019 = vsyncadd [#allocation8], 4294967232 }
  0x1b   :  { %50 = sfence }
  0x1c   :  { %v9520_v0 = vld [vmem:[%s12581_s3 + $0x38] sm:$0xff]   ;;  %v9521_v1 = vld [vmem:[%s12581_s3 + $0x30] sm:$0xff]   ;;  %v9522_v2 = vld [vmem:[%s12581_s3 + $0x28] sm:$0xff]   ;;  %s2819_s20 = sld [smem:[#allocation5]] }
  0x1d   :  { %9230 = vmatprep.subr.bf16.mxu1 %v9520_v0  ;;  %v9523_v3 = vld [vmem:[%s12581_s3 + $0x20] sm:$0xff]   ;;  %v64_v5 = vld [vmem:[%s12578_s0 + $0x8] sm:$0xff]  ;;  %v9528_v7 = vld [vmem:[%s12581_s3 + $0xb8] sm:$0xff]   ;;  %s7148_s21 = sld [smem:[#allocation5 + $0x100]] }
  0x1e   :  { %9231 = vmatpush3.bf16.msra.mxu1 %v9520_v0  ;;  %v63_v4 = vld [vmem:[%s12578_s0] sm:$0xff]  ;;  %v9529_v8 = vld [vmem:[%s12581_s3 + $0xb0] sm:$0xff]   ;;  %v9524_v9 = vld [vmem:[%s12581_s3 + $0x18] sm:$0xff]   ;;  %9326 = vmatprep.subr.bf16.mxu0 %v9528_v7  ;;  %s7147_s22 = sld [smem:[#allocation5 + $0x80]] }
  0x1f   :  { %9232 = vmatprep.subr.bf16.mxu1 %v9521_v1  ;;  %v10086_v6 = vpack.c.bf16 %v64_v5, %v63_v4  ;;  %9327 = vmatpush3.bf16.msra.mxu0 %v9528_v7  ;;  %v9530_v10 = vld [vmem:[%s12581_s3 + $0xa8] sm:$0xff]   ;;  %v9525_v11 = vld [vmem:[%s12581_s3 + $0x10] sm:$0xff]   ;;  %v9531_v12 = vld [vmem:[%s12581_s3 + $0xa0] sm:$0xff]   ;;  %s7149_s23 = sld [smem:[#allocation5 + $0x180]] }
  0x20   :  { %9328 = vmatprep.subr.bf16.mxu0 %v9529_v8  ;;  %v9526_v13 = vld [vmem:[%s12581_s3 + $0x8] sm:$0xff]   ;;  %v9532_v14 = vld [vmem:[%s12581_s3 + $0x98] sm:$0xff]   ;;  %v9527_v15 = vld [vmem:[%s12581_s3] sm:$0xff]   ;;  %s7150_s14 = sld [smem:[#allocation5 + $0x1]] }
  0x21   :  { %9246 = vmatprep.mubr.bf16.mxu1 %v10086_v6  ;;  %9342 = vmatprep.mubr.bf16.mxu0 %v10086_v6  ;;  %v65_v16 = vld [vmem:[%s12578_s0 + $0x10] sm:$0xff]  ;;  %v66_v18 = vld [vmem:[%s12578_s0 + $0x18] sm:$0xff]  ;;  %v67_v19 = vld [vmem:[%s12578_s0 + $0x20] sm:$0xff]  ;;  %s7151_s15 = sld [smem:[#allocation5 + $0x81]] }
  0x22   :  { %9233 = vmatpush3.bf16.msra.mxu1 %v9521_v1  ;;  %v9533_v17 = vld [vmem:[%s12581_s3 + $0x90] sm:$0xff]   ;;  %v68_v20 = vld [vmem:[%s12578_s0 + $0x28] sm:$0xff]  ;;  %v9536_v21 = vld [vmem:[%s12581_s3 + $0x78] sm:$0xff]   ;;  %v10135_v22 = vpack.c.bf16 %v66_v18, %v65_v16  ;;  %s7152_s16 = sld [smem:[#allocation5 + $0x101]] }
  0x23   :  { %9234 = vmatprep.subr.bf16.mxu1 %v9522_v2  ;;  %9329 = vmatpush3.bf16.msra.mxu0 %v9529_v8  ;;  %v9534_v23 = vld [vmem:[%s12581_s3 + $0x88] sm:$0xff]   ;;  %v10140_v24 = vpack.c.bf16 %v68_v20, %v67_v19  ;;  %v9537_v25 = vld [vmem:[%s12581_s3 + $0x70] sm:$0xff]   ;;  %v70_v27 = vld [vmem:[%s12578_s0 + $0x38] sm:$0xff]  ;;  %s7153_s17 = sld [smem:[#allocation5 + $0x181]] }
  0x24   :  { %9330 = vmatprep.subr.bf16.mxu0 %v9530_v10  ;;  %v69_v26 = vld [vmem:[%s12578_s0 + $0x30] sm:$0xff]  ;;  %v9535_v28 = vld [vmem:[%s12581_s3 + $0x80] sm:$0xff]   ;;  %v72_v30 = vld [vmem:[%s12578_s0 + $0x48] sm:$0xff]  ;;  %s7154_s30 = sld [smem:[#allocation5 + $0x2]] }
  0x25   :  { %v71_v29 = vld [vmem:[%s12578_s0 + $0x40] sm:$0xff]  ;;  %v9538_v31 = vld [vmem:[%s12581_s3 + $0x68] sm:$0xff]   ;;  %v10165_v32 = vpack.c.bf16 %v70_v27, %v69_v26  ;;  %v73_v35 = vld [vmem:[%s12578_s0 + $0x50] sm:$0xff]  ;;  %s7156_s8 = sld [smem:[#allocation5 + $0x102]] }
  0x26   :  { %9235 = vmatpush3.bf16.msra.mxu1 %v9522_v2  ;;  %v9539_v33 = vld [vmem:[%s12581_s3 + $0x60] sm:$0xff]   ;;  %v10170_v34 = vpack.c.bf16 %v72_v30, %v71_v29  ;;  %v74_v36 = vld [vmem:[%s12578_s0 + $0x58] sm:$0xff]  ;;  %v76_v38 = vld [vmem:[%s12578_s0 + $0x68] sm:$0xff]  ;;  %s7155_s6 = sld [smem:[#allocation5 + $0x82]] }
  0x27   :  { %9236 = vmatprep.subr.bf16.mxu1 %v9523_v3  ;;  %9331 = vmatpush3.bf16.msra.mxu0 %v9530_v10  ;;  %v75_v37 = vld [vmem:[%s12578_s0 + $0x60] sm:$0xff]  ;;  %v9540_v39 = vld [vmem:[%s12581_s3 + $0x58] sm:$0xff]   ;;  %v10191_v40 = vpack.c.bf16 %v74_v36, %v73_v35  ;;  %v9541_v41 = vld [vmem:[%s12581_s3 + $0x50] sm:$0xff]   ;;  %s7157_s10 = sld [smem:[#allocation5 + $0x182]] }
  0x28   :  { %9332 = vmatprep.subr.bf16.mxu0 %v9531_v12  ;;  %v10196_v42 = vpack.c.bf16 %v76_v38, %v75_v37  ;;  %v77_v43 = vld [vmem:[%s12578_s0 + $0x70] sm:$0xff]  ;;  %v78_v44 = vld [vmem:[%s12578_s0 + $0x78] sm:$0xff]  ;;  %v79_v45 = vld [vmem:[%s12578_s0 + $0x80] sm:$0xff]  ;;  %s7159_s11 = sld [smem:[#allocation5 + $0x83]] }
  0x29   :  { %v80_v46 = vld [vmem:[%s12578_s0 + $0x88] sm:$0xff]  ;;  %v102_v48 = vpack.c.bf16 %v78_v44, %v77_v43  ;;  %v9543_v49 = vld [vmem:[%s12581_s3 + $0x40] sm:$0xff]   ;;  %v81_v51 = vld [vmem:[%s12578_s0 + $0x90] sm:$0xff]  ;;  %s7160_s12 = sld [smem:[#allocation5 + $0x103]] }
  0x2a   :  { %9237 = vmatpush3.bf16.msra.mxu1 %v9523_v3  ;;  %v9542_v47 = vld [vmem:[%s12581_s3 + $0x48] sm:$0xff]   ;;  %v103_v50 = vpack.c.bf16 %v80_v46, %v79_v45  ;;  %v82_v52 = vld [vmem:[%s12578_s0 + $0x98] sm:$0xff]  ;;  %v83_v53 = vld [vmem:[%s12578_s0 + $0xa0] sm:$0xff]  ;;  %s7508_s18 = sld [smem:[#allocation7 + $0x180]] }
  0x2b   :  { %9238 = vmatprep.subr.bf16.mxu1 %v9524_v9  ;;  %9333 = vmatpush3.bf16.msra.mxu0 %v9531_v12  ;;  %v84_v54 = vld [vmem:[%s12578_s0 + $0xa8] sm:$0xff]  ;;  %v104_v55 = vpack.c.bf16 %v82_v52, %v81_v51  ;;  %v85_v57 = vld [vmem:[%s12578_s0 + $0xb0] sm:$0xff]  ;;  %v86_v58 = vld [vmem:[%s12578_s0 + $0xb8] sm:$0xff]  ;;  %s7512_s13 = sld [smem:[#allocation7 + $0x181]] }
  0x2c   :  { %9334 = vmatprep.subr.bf16.mxu0 %v9532_v14  ;;  %v105_v56 = vpack.c.bf16 %v84_v54, %v83_v53  ;;  %v87_v59 = vld [vmem:[%s12578_s0 + $0xc0] sm:$0xff]  ;;  %v88_v60 = vld [vmem:[%s12578_s0 + $0xc8] sm:$0xff]  ;;  %v106_v61 = vpack.c.bf16 %v86_v58, %v85_v57  ;;  %v89_v63 = vld [vmem:[%s12578_s0 + $0xd0] sm:$0xff]  ;;  %s7516_s19 = sld [smem:[#allocation7 + $0x182]] }
  0x2d   :  { %v107_v62 = vpack.c.bf16 %v88_v60, %v87_v59  ;;  %v90_v0 = vld [vmem:[%s12578_s0 + $0xd8] sm:$0xff]  ;;  %v91_v1 = vld [vmem:[%s12578_s0 + $0xe0] sm:$0xff]  ;;  %v92_v2 = vld [vmem:[%s12578_s0 + $0xe8] sm:$0xff]  ;;  %s7519_s24 = sld [smem:[#allocation7 + $0x103]] }
  0x2e   :  { %9239 = vmatpush3.bf16.msra.mxu1 %v9524_v9  ;;  %v108_v3 = vpack.c.bf16 %v90_v0, %v89_v63  ;;  %v109_v4 = vpack.c.bf16 %v92_v2, %v91_v1  ;;  %v93_v5 = vld [vmem:[%s12578_s0 + $0xf0] sm:$0xff]  ;;  %v94_v7 = vld [vmem:[%s12578_s0 + $0xf8] sm:$0xff]  ;;  %v9620_v57 = vld [vmem:[%s12580_s2 + $0xc] ss:$24 sps:$4 sm:$0xff]   ;;  %s7518_s25 = sld [smem:[#allocation7 + $0x83]] }
  0x2f   :  { %9240 = vmatprep.subr.bf16.mxu1 %v9525_v11  ;;  %9335 = vmatpush3.bf16.msra.mxu0 %v9532_v14  ;;  %v110_v8 = vpack.c.bf16 %v94_v7, %v93_v5  ;;  %s7520_s26 = sld [smem:[#allocation7 + $0x183]] }
  0x30   :  { %9336 = vmatprep.subr.bf16.mxu0 %v9533_v17 }
  0x32   :  { %9241 = vmatpush3.bf16.msra.mxu1 %v9525_v11 }
  0x33   :  { %9242 = vmatprep.subr.bf16.mxu1 %v9526_v13  ;;  %9337 = vmatpush3.bf16.msra.mxu0 %v9533_v17 }
  0x34   :  { %9338 = vmatprep.subr.bf16.mxu0 %v9534_v23 }
  0x36   :  { %9243 = vmatpush3.bf16.msra.mxu1 %v9526_v13 }
  0x37   :  { %9244 = vmatprep.subr.bf16.mxu1 %v9527_v15  ;;  %9339 = vmatpush3.bf16.msra.mxu0 %v9534_v23 }
  0x38   :  { %9340 = vmatprep.subr.bf16.mxu0 %v9535_v28 }
  0x3a   :  { %9245 = vmatpush3.bf16.msra.mxu1 %v9527_v15 }
  0x3b   :  { %9278 = vmatprep.subr.bf16.mxu1 %v9536_v21  ;;  %9341 = vmatpush3.bf16.msra.mxu0 %v9535_v28 }
  0x3d   :  { %9247 = vmatmul.mubr.bf16.vlgmr.msra.gmra.mxu1 %v10135_v22 }
  0x3e   :  { %9250 = vmatprep.mubr.bf16.mxu1 %v10140_v24  ;;  %9279 = vmatpush3.bf16.msra.mxu1 %v9536_v21 }
  0x3f   :  { %9280 = vmatprep.subr.bf16.mxu1 %v9537_v25  ;;  %9343 = vmatmul.mubr.bf16.vlgmr.msra.gmra.mxu0 %v10135_v22 }
  0x40   :  { %9346 = vmatprep.mubr.bf16.mxu0 %v10140_v24 }
  0x42   :  { %9281 = vmatpush3.bf16.msra.mxu1 %v9537_v25 }
  0x43   :  { %9282 = vmatprep.subr.bf16.mxu1 %v9538_v31 }
  0x45   :  { %9251 = vmatmul.mubr.bf16.gmra.mxu1 %v10165_v32 }
  0x46   :  { %9254 = vmatprep.mubr.bf16.mxu1 %v10170_v34  ;;  %9283 = vmatpush3.bf16.msra.mxu1 %v9538_v31 }
  0x47   :  { %9284 = vmatprep.subr.bf16.mxu1 %v9539_v33  ;;  %9347 = vmatmul.mubr.bf16.gmra.mxu0 %v10165_v32 }
  0x48   :  { %9350 = vmatprep.mubr.bf16.mxu0 %v10170_v34 }
  0x4a   :  { %9285 = vmatpush3.bf16.msra.mxu1 %v9539_v33 }
  0x4b   :  { %9286 = vmatprep.subr.bf16.mxu1 %v9540_v39 }
  0x4d   :  { %9255 = vmatmul.mubr.bf16.gmra.mxu1 %v10191_v40 }
  0x4e   :  { %9258 = vmatprep.mubr.bf16.mxu1 %v10196_v42  ;;  %9287 = vmatpush3.bf16.msra.mxu1 %v9540_v39 }
  0x4f   :  { %9288 = vmatprep.subr.bf16.mxu1 %v9541_v41  ;;  %9351 = vmatmul.mubr.bf16.gmra.mxu0 %v10191_v40 }
  0x50   :  { %9354 = vmatprep.mubr.bf16.mxu0 %v10196_v42 }
  0x52   :  { %9289 = vmatpush3.bf16.msra.mxu1 %v9541_v41 }
  0x53   :  { %9290 = vmatprep.subr.bf16.mxu1 %v9542_v47 }
  0x55   :  { %9259 = vmatmul.mubr.bf16.gmra.mxu1 %v102_v48 }
  0x56   :  { %9262 = vmatprep.mubr.bf16.mxu1 %v103_v50  ;;  %9291 = vmatpush3.bf16.msra.mxu1 %v9542_v47 }
  0x57   :  { %9292 = vmatprep.subr.bf16.mxu1 %v9543_v49  ;;  %9355 = vmatmul.mubr.bf16.gmra.mxu0 %v102_v48 }
  0x58   :  { %9358 = vmatprep.mubr.bf16.mxu0 %v103_v50 }
  0x5a   :  { %9293 = vmatpush3.bf16.msra.mxu1 %v9543_v49 }
  0x5d   :  { %9263 = vmatmul.mubr.bf16.gmra.mxu1 %v104_v55 }
  0x5e   :  { %9266 = vmatprep.mubr.bf16.mxu1 %v105_v56 }
  0x5f   :  { %9359 = vmatmul.mubr.bf16.gmra.mxu0 %v104_v55 }
  0x60   :  { %9362 = vmatprep.mubr.bf16.mxu0 %v105_v56 }
  0x65   :  { %9267 = vmatmul.mubr.bf16.gmra.mxu1 %v106_v61 }
  0x66   :  { %9270 = vmatprep.mubr.bf16.mxu1 %v107_v62 }
  0x67   :  { %9363 = vmatmul.mubr.bf16.gmra.mxu0 %v106_v61 }
  0x68   :  { %9366 = vmatprep.mubr.bf16.mxu0 %v107_v62 }
  0x6d   :  { %9271 = vmatmul.mubr.bf16.gmra.mxu1 %v108_v3 }
  0x6e   :  { %9274 = vmatprep.mubr.bf16.mxu1 %v109_v4 }
  0x6f   :  { %9367 = vmatmul.mubr.bf16.gmra.mxu0 %v108_v3 }
  0x70   :  { %9370 = vmatprep.mubr.bf16.mxu0 %v109_v4 }
  0x75   :  { %9275 = vmatmul.mubr.bf16.gmra.mxu1 %v110_v8 }
  0x76   :  { %9294 = vmatprep.mubr.bf16.mxu1 %v10086_v6  ;;  %v9562_v6 = vld [vmem:[%s12580_s2 + $0x4] ss:$24 sps:$4 sm:$0xff]  }
  0x77   :  { %9371 = vmatmul.mubr.bf16.gmra.mxu0 %v110_v8 }
  0x78   :  { %2421 = vmatprep.mubr.bf16.mxu0 %v9620_v57 }
  0x7d   :  { %9295 = vmatmul.mubr.bf16.vlgmr.msra.gmra.mxu1 %v10135_v22 }
  0x7e   :  { %9298 = vmatprep.mubr.bf16.mxu1 %v10140_v24 }
  0x85   :  { %9299 = vmatmul.mubr.bf16.gmra.mxu1 %v10165_v32 }
  0x86   :  { %9302 = vmatprep.mubr.bf16.mxu1 %v10170_v34 }
  0x8d   :  { %9303 = vmatmul.mubr.bf16.gmra.mxu1 %v10191_v40 }
  0x8e   :  { %9306 = vmatprep.mubr.bf16.mxu1 %v10196_v42 }
  0x95   :  { %9307 = vmatmul.mubr.bf16.gmra.mxu1 %v102_v48 }
  0x96   :  { %9310 = vmatprep.mubr.bf16.mxu1 %v103_v50 }
  0x9d   :  { %9311 = vmatmul.mubr.bf16.gmra.mxu1 %v104_v55 }
  0x9e   :  { %9314 = vmatprep.mubr.bf16.mxu1 %v105_v56 }
  0xa5   :  { %9315 = vmatmul.mubr.bf16.gmra.mxu1 %v106_v61 }
  0xa6   :  { %9318 = vmatprep.mubr.bf16.mxu1 %v107_v62 }
  0xad   :  { %9319 = vmatmul.mubr.bf16.gmra.mxu1 %v108_v3 }
  0xae   :  { %9322 = vmatprep.mubr.bf16.mxu1 %v109_v4 }
  0xb5   :  { %9323 = vmatmul.mubr.bf16.gmra.mxu1 %v110_v8 }
  0xb6   :  { %2260 = vmatprep.mubr.bf16.mxu1 %v9562_v6 }
  0xfd   :  { %v9248_v9 = vpop.f32.mrf.mxu1 }
  0xff   :  { %v209_v10 = vpop.f32.mrf.mxu1  ;;  %v9344_v17 = vpop.f32.mrf.mxu0 }
 0x101   :  { %v9249_v11 = vpop.f32.mrf.mxu1  ;;  %v981_v19 = vpop.f32.mrf.mxu0 }
 0x102   :  { %v7753_v12 = vpack.c.bf16 %v9249_v11, %v9248_v9 }
 0x103   :  { %v212_v13 = vpop.f32.mrf.mxu1  ;;  %v9345_v22 = vpop.f32.mrf.mxu0 }
 0x104   :  { %8305 = vst [vmem:[#allocation3 + $0x8] sm:$0xff] %v7753_v12   ;;  %v7748_v14 = vpack.c.bf16 %v212_v13, %v209_v10  ;;  %v7913_v24 = vpack.c.bf16 %v9345_v22, %v9344_v17 }
 0x105   :  { %v9252_v15 = vpop.f32.mrf.mxu1  ;;  %v984_v26 = vpop.f32.mrf.mxu0 }
 0x106   :  { %7749 = vst [vmem:[#allocation3] sm:$0xff] %v7748_v14   ;;  %8337 = vst [vmem:[#allocation3 + $0x108] sm:$0xff] %v7913_v24   ;;  %v7908_v27 = vpack.c.bf16 %v984_v26, %v981_v19 }
 0x107   :  { %v225_v16 = vpop.f32.mrf.mxu1  ;;  %v9348_v29 = vpop.f32.mrf.mxu0 }
 0x108   :  { %8336 = vst [vmem:[#allocation3 + $0x100] sm:$0xff] %v7908_v27  }
 0x109   :  { %v9253_v18 = vpop.f32.mrf.mxu1  ;;  %v997_v31 = vpop.f32.mrf.mxu0 }
 0x10a   :  { %v7763_v20 = vpack.c.bf16 %v9253_v18, %v9252_v15 }
 0x10b   :  { %v228_v21 = vpop.f32.mrf.mxu1  ;;  %v9349_v34 = vpop.f32.mrf.mxu0 }
 0x10c   :  { %8307 = vst [vmem:[#allocation3 + $0x18] sm:$0xff] %v7763_v20   ;;  %v7758_v23 = vpack.c.bf16 %v228_v21, %v225_v16  ;;  %v7923_v36 = vpack.c.bf16 %v9349_v34, %v9348_v29 }
 0x10d   :  { %v9256_v25 = vpop.f32.mrf.mxu1  ;;  %v1000_v38 = vpop.f32.mrf.mxu0 }
 0x10e   :  { %8306 = vst [vmem:[#allocation3 + $0x10] sm:$0xff] %v7758_v23   ;;  %8339 = vst [vmem:[#allocation3 + $0x118] sm:$0xff] %v7923_v36   ;;  %v7918_v39 = vpack.c.bf16 %v1000_v38, %v997_v31 }
 0x10f   :  { %v241_v28 = vpop.f32.mrf.mxu1  ;;  %v9352_v41 = vpop.f32.mrf.mxu0 }
 0x110   :  { %8338 = vst [vmem:[#allocation3 + $0x110] sm:$0xff] %v7918_v39  }
 0x111   :  { %v9257_v30 = vpop.f32.mrf.mxu1  ;;  %v1013_v43 = vpop.f32.mrf.mxu0 }
 0x112   :  { %v7773_v32 = vpack.c.bf16 %v9257_v30, %v9256_v25 }
 0x113   :  { %v244_v33 = vpop.f32.mrf.mxu1  ;;  %v9353_v46 = vpop.f32.mrf.mxu0 }
 0x114   :  { %8309 = vst [vmem:[#allocation3 + $0x28] sm:$0xff] %v7773_v32   ;;  %v7768_v35 = vpack.c.bf16 %v244_v33, %v241_v28  ;;  %v7933_v48 = vpack.c.bf16 %v9353_v46, %v9352_v41 }
 0x115   :  { %v9260_v37 = vpop.f32.mrf.mxu1  ;;  %v1016_v50 = vpop.f32.mrf.mxu0 }
 0x116   :  { %8308 = vst [vmem:[#allocation3 + $0x20] sm:$0xff] %v7768_v35   ;;  %8341 = vst [vmem:[#allocation3 + $0x128] sm:$0xff] %v7933_v48   ;;  %v7928_v51 = vpack.c.bf16 %v1016_v50, %v1013_v43 }
 0x117   :  { %v257_v40 = vpop.f32.mrf.mxu1  ;;  %v9356_v53 = vpop.f32.mrf.mxu0 }
 0x118   :  { %8340 = vst [vmem:[#allocation3 + $0x120] sm:$0xff] %v7928_v51  }
 0x119   :  { %v9261_v42 = vpop.f32.mrf.mxu1  ;;  %v1029_v55 = vpop.f32.mrf.mxu0 }
 0x11a   :  { %v7783_v44 = vpack.c.bf16 %v9261_v42, %v9260_v37 }
 0x11b   :  { %v260_v45 = vpop.f32.mrf.mxu1  ;;  %v9357_v59 = vpop.f32.mrf.mxu0 }
 0x11c   :  { %8311 = vst [vmem:[#allocation3 + $0x38] sm:$0xff] %v7783_v44   ;;  %v7778_v47 = vpack.c.bf16 %v260_v45, %v257_v40  ;;  %v7943_v61 = vpack.c.bf16 %v9357_v59, %v9356_v53  ;;  %v9549_v59 = vld [vmem:[#allocation3 + $0x28] sm:$0xff]  }
 0x11d   :  { %v9264_v49 = vpop.f32.mrf.mxu1  ;;  %v1032_v63 = vpop.f32.mrf.mxu0 }
 0x11e   :  { %8310 = vst [vmem:[#allocation3 + $0x30] sm:$0xff] %v7778_v47   ;;  %8343 = vst [vmem:[#allocation3 + $0x138] sm:$0xff] %v7943_v61   ;;  %v7938_v0 = vpack.c.bf16 %v1032_v63, %v1029_v55  ;;  %v9551_v63 = vld [vmem:[#allocation3 + $0x20] sm:$0xff]  }
 0x11f   :  { %v273_v52 = vpop.f32.mrf.mxu1  ;;  %v9360_v2 = vpop.f32.mrf.mxu0 }
 0x120   :  { %8342 = vst [vmem:[#allocation3 + $0x130] sm:$0xff] %v7938_v0  }
 0x121   :  { %v9265_v54 = vpop.f32.mrf.mxu1  ;;  %v1045_v4 = vpop.f32.mrf.mxu0 }
 0x122   :  { %v7793_v56 = vpack.c.bf16 %v9265_v54, %v9264_v49 }
 0x123   :  { %v276_v58 = vpop.f32.mrf.mxu1  ;;  %v9361_v8 = vpop.f32.mrf.mxu0  ;;  %v9545_v46 = vld [vmem:[#allocation3 + $0x38] sm:$0xff]  }
 0x124   :  { %8313 = vst [vmem:[#allocation3 + $0x48] sm:$0xff] %v7793_v56   ;;  %v7788_v60 = vpack.c.bf16 %v276_v58, %v273_v52  ;;  %v7953_v9 = vpack.c.bf16 %v9361_v8, %v9360_v2 }
 0x125   :  { %v9268_v62 = vpop.f32.mrf.mxu1  ;;  %v1048_v11 = vpop.f32.mrf.mxu0  ;;  %v9547_v53 = vld [vmem:[#allocation3 + $0x30] sm:$0xff]  }
 0x126   :  { %8312 = vst [vmem:[#allocation3 + $0x40] sm:$0xff] %v7788_v60   ;;  %8345 = vst [vmem:[#allocation3 + $0x148] sm:$0xff] %v7953_v9   ;;  %v7948_v12 = vpack.c.bf16 %v1048_v11, %v1045_v4  ;;  %v9555_v9 = vld [vmem:[#allocation3 + $0x10] sm:$0xff]  }
 0x127   :  { %v289_v1 = vpop.f32.mrf.mxu1  ;;  %v9364_v14 = vpop.f32.mrf.mxu0 }
 0x128   :  { %8344 = vst [vmem:[#allocation3 + $0x140] sm:$0xff] %v7948_v12  }
 0x129   :  { %v9269_v3 = vpop.f32.mrf.mxu1  ;;  %v1061_v16 = vpop.f32.mrf.mxu0 }
 0x12a   :  { %v7803_v5 = vpack.c.bf16 %v9269_v3, %v9268_v62 }
 0x12b   :  { %v292_v7 = vpop.f32.mrf.mxu1  ;;  %v9365_v19 = vpop.f32.mrf.mxu0  ;;  %v9556_v11 = vld [vmem:[#allocation3 + $0x48] sm:$0xff]  }
 0x12c   :  { %8315 = vst [vmem:[#allocation3 + $0x58] sm:$0xff] %v7803_v5   ;;  %v7798_v6 = vpack.c.bf16 %v292_v7, %v289_v1  ;;  %v7963_v21 = vpack.c.bf16 %v9365_v19, %v9364_v14  ;;  %v9553_v5 = vld [vmem:[#allocation3 + $0x18] sm:$0xff]  }
 0x12d   :  { %v9272_v10 = vpop.f32.mrf.mxu1  ;;  %v1064_v23 = vpop.f32.mrf.mxu0 }
 0x12e   :  { %8314 = vst [vmem:[#allocation3 + $0x50] sm:$0xff] %v7798_v6   ;;  %8347 = vst [vmem:[#allocation3 + $0x158] sm:$0xff] %v7963_v21   ;;  %v7958_v24 = vpack.c.bf16 %v1064_v23, %v1061_v16 }
 0x12f   :  { %v305_v13 = vpop.f32.mrf.mxu1  ;;  %v9368_v26 = vpop.f32.mrf.mxu0 }
 0x130   :  { %8346 = vst [vmem:[#allocation3 + $0x150] sm:$0xff] %v7958_v24   ;;  %v9564_v24 = vld [vmem:[#allocation3 + $0x138] sm:$0xff]  }
 0x131   :  { %v9273_v15 = vpop.f32.mrf.mxu1  ;;  %v1077_v28 = vpop.f32.mrf.mxu0 }
 0x132   :  { %v7813_v17 = vpack.c.bf16 %v9273_v15, %v9272_v10  ;;  %v9557_v15 = vld [vmem:[#allocation3 + $0x8] sm:$0xff]  }
 0x133   :  { %v308_v18 = vpop.f32.mrf.mxu1  ;;  %v9369_v31 = vpop.f32.mrf.mxu0  ;;  %v9552_v1 = vld [vmem:[#allocation3 + $0x58] sm:$0xff]  }
 0x134   :  { %8317 = vst [vmem:[#allocation3 + $0x68] sm:$0xff] %v7813_v17   ;;  %v7808_v20 = vpack.c.bf16 %v308_v18, %v305_v13  ;;  %v7973_v33 = vpack.c.bf16 %v9369_v31, %v9368_v26  ;;  %v9558_v17 = vld [vmem:[#allocation3 + $0x40] sm:$0xff]  }
 0x135   :  { %v9276_v22 = vpop.f32.mrf.mxu1  ;;  %v1080_v35 = vpop.f32.mrf.mxu0  ;;  %v9554_v8 = vld [vmem:[#allocation3 + $0x50] sm:$0xff]  }
 0x136   :  { %8316 = vst [vmem:[#allocation3 + $0x60] sm:$0xff] %v7808_v20   ;;  %8349 = vst [vmem:[#allocation3 + $0x168] sm:$0xff] %v7973_v33   ;;  %v7968_v36 = vpack.c.bf16 %v1080_v35, %v1077_v28  ;;  %v9559_v20 = vld [vmem:[#allocation3] sm:$0xff]  }
 0x137   :  { %v321_v25 = vpop.f32.mrf.mxu1  ;;  %v9372_v38 = vpop.f32.mrf.mxu0 }
 0x138   :  { %8348 = vst [vmem:[#allocation3 + $0x160] sm:$0xff] %v7968_v36   ;;  %v9571_v36 = vld [vmem:[#allocation3 + $0x128] sm:$0xff]  }
 0x139   :  { %v9277_v27 = vpop.f32.mrf.mxu1  ;;  %v1093_v40 = vpop.f32.mrf.mxu0 }
 0x13a   :  { %v7823_v29 = vpack.c.bf16 %v9277_v27, %v9276_v22  ;;  %v9560_v22 = vld [vmem:[%s12580_s2] ss:$24 sps:$4 sm:$0xff]  }
 0x13b   :  { %v324_v30 = vpop.f32.mrf.mxu1  ;;  %v9373_v44 = vpop.f32.mrf.mxu0  ;;  %v9548_v55 = vld [vmem:[#allocation3 + $0x68] sm:$0xff]  }
 0x13c   :  { %8319 = vst [vmem:[#allocation3 + $0x78] sm:$0xff] %v7823_v29   ;;  %v7818_v32 = vpack.c.bf16 %v324_v30, %v321_v25  ;;  %v7983_v47 = vpack.c.bf16 %v9373_v44, %v9372_v38  ;;  %v9567_v25 = vld [vmem:[%s12580_s2 + $0x34] ss:$24 sps:$4 sm:$0xff]   ;;  %v9574_v44 = vld [vmem:[#allocation3 + $0x158] sm:$0xff]  }
 0x13d   :  { %v9296_v34 = vpop.f32.mrf.mxu1  ;;  %v1096_v50 = vpop.f32.mrf.mxu0  ;;  %v9550_v61 = vld [vmem:[#allocation3 + $0x60] sm:$0xff]   ;;  %v9566_v30 = vld [vmem:[#allocation3 + $0x130] sm:$0xff]  }
 0x13e   :  { %8318 = vst [vmem:[#allocation3 + $0x70] sm:$0xff] %v7818_v32   ;;  %8351 = vst [vmem:[#allocation3 + $0x178] sm:$0xff] %v7983_v47   ;;  %v7978_v51 = vpack.c.bf16 %v1096_v50, %v1093_v40  ;;  %v9570_v32 = vld [vmem:[#allocation3 + $0x168] sm:$0xff]  }
 0x13f   :  { %v595_v37 = vpop.f32.mrf.mxu1 }
 0x140   :  { %8350 = vst [vmem:[#allocation3 + $0x170] sm:$0xff] %v7978_v51   ;;  %v9579_v51 = vld [vmem:[#allocation3 + $0x150] sm:$0xff]  }
 0x141   :  { %v9297_v39 = vpop.f32.mrf.mxu1 }
 0x142   :  { %v7833_v41 = vpack.c.bf16 %v9297_v39, %v9296_v34  ;;  %v9569_v34 = vld [vmem:[%s12580_s2 + $0x30] ss:$24 sps:$4 sm:$0xff]   ;;  %v9572_v39 = vld [vmem:[#allocation3 + $0x160] sm:$0xff]  }
 0x143   :  { %v598_v42 = vpop.f32.mrf.mxu1  ;;  %v9544_v43 = vld [vmem:[#allocation3 + $0x78] sm:$0xff]  }
 0x144   :  { %8321 = vst [vmem:[#allocation3 + $0x88] sm:$0xff] %v7833_v41   ;;  %v7828_v45 = vpack.c.bf16 %v598_v42, %v595_v37  ;;  %8486 = vmatprep.subr.bf16.mxu1 %v9544_v43  ;;  %v9575_v37 = vld [vmem:[%s12580_s2 + $0x64] ss:$24 sps:$4 sm:$0xff]  }
 0x145   :  { %v9300_v48 = vpop.f32.mrf.mxu1  ;;  %v9546_v49 = vld [vmem:[#allocation3 + $0x70] sm:$0xff]   ;;  %8487 = vmatpush3.bf16.msra.mxu1 %v9545_v46  ;;  %v9563_v19 = vld [vmem:[#allocation3 + $0x178] sm:$0xff]   ;;  %v9573_v42 = vld [vmem:[#allocation3 + $0x120] sm:$0xff]  }
 0x146   :  { %8320 = vst [vmem:[#allocation3 + $0x80] sm:$0xff] %v7828_v45   ;;  %8488 = vmatprep.subr.bf16.mxu1 %v9546_v49  ;;  %v9577_v46 = vld [vmem:[%s12580_s2 + $0x60] ss:$24 sps:$4 sm:$0xff]   ;;  %v9582_v49 = vld [vmem:[%s12580_s2 + $0x94] ss:$24 sps:$4 sm:$0xff]  }
 0x147   :  { %v611_v52 = vpop.f32.mrf.mxu1  ;;  %v9565_v27 = vld [vmem:[#allocation3 + $0x170] sm:$0xff]  }
 0x149   :  { %v9301_v54 = vpop.f32.mrf.mxu1  ;;  %8489 = vmatpush3.bf16.msra.mxu1 %v9547_v53 }
 0x14a   :  { %v7843_v56 = vpack.c.bf16 %v9301_v54, %v9300_v48  ;;  %8490 = vmatprep.subr.bf16.mxu1 %v9548_v55  ;;  %v9578_v48 = vld [vmem:[#allocation3 + $0x118] sm:$0xff]   ;;  %v9580_v54 = vld [vmem:[#allocation3 + $0x110] sm:$0xff]  }
 0x14b   :  { %v614_v57 = vpop.f32.mrf.mxu1 }
 0x14c   :  { %8323 = vst [vmem:[#allocation3 + $0x98] sm:$0xff] %v7843_v56   ;;  %v7838_v58 = vpack.c.bf16 %v614_v57, %v611_v52  ;;  %v9581_v56 = vld [vmem:[#allocation3 + $0x148] sm:$0xff]  }
 0x14d   :  { %v9304_v60 = vpop.f32.mrf.mxu1  ;;  %8491 = vmatpush3.bf16.msra.mxu1 %v9549_v59 }
 0x14e   :  { %8322 = vst [vmem:[#allocation3 + $0x90] sm:$0xff] %v7838_v58   ;;  %8492 = vmatprep.subr.bf16.mxu1 %v9550_v61  ;;  %v9584_v58 = vld [vmem:[%s12580_s2 + $0x90] ss:$24 sps:$4 sm:$0xff]   ;;  %v9588_v61 = vld [vmem:[%s12580_s2 + $0xc4] ss:$24 sps:$4 sm:$0xff]  }
 0x14f   :  { %v627_v62 = vpop.f32.mrf.mxu1 }
 0x151   :  { %v9305_v0 = vpop.f32.mrf.mxu1  ;;  %8493 = vmatpush3.bf16.msra.mxu1 %v9551_v63  ;;  %v9586_v63 = vld [vmem:[#allocation3 + $0x140] sm:$0xff]  }
 0x152   :  { %v7853_v2 = vpack.c.bf16 %v9305_v0, %v9304_v60  ;;  %8494 = vmatprep.subr.bf16.mxu1 %v9552_v1  ;;  %v9585_v60 = vld [vmem:[#allocation3 + $0x108] sm:$0xff]   ;;  %v9587_v1 = vld [vmem:[#allocation3 + $0x100] sm:$0xff]  }
 0x153   :  { %v630_v3 = vpop.f32.mrf.mxu1 }
 0x154   :  { %8325 = vst [vmem:[#allocation3 + $0xa8] sm:$0xff] %v7853_v2   ;;  %v7848_v4 = vpack.c.bf16 %v630_v3, %v627_v62  ;;  %v9590_v2 = vld [vmem:[%s12580_s2 + $0xc0] ss:$24 sps:$4 sm:$0xff]  }
 0x155   :  { %v9308_v7 = vpop.f32.mrf.mxu1  ;;  %8495 = vmatpush3.bf16.msra.mxu1 %v9553_v5 }
 0x156   :  { %8324 = vst [vmem:[#allocation3 + $0xa0] sm:$0xff] %v7848_v4   ;;  %8496 = vmatprep.subr.bf16.mxu1 %v9554_v8  ;;  %v9595_v4 = vld [vmem:[%s12580_s2 + $0xf4] ss:$24 sps:$4 sm:$0xff]  }
 0x157   :  { %v643_v6 = vpop.f32.mrf.mxu1 }
 0x159   :  { %v9309_v10 = vpop.f32.mrf.mxu1  ;;  %8497 = vmatpush3.bf16.msra.mxu1 %v9555_v9  ;;  %v9597_v9 = vld [vmem:[%s12580_s2 + $0xf0] ss:$24 sps:$4 sm:$0xff]  }
 0x15a   :  { %v7863_v12 = vpack.c.bf16 %v9309_v10, %v9308_v7  ;;  %8498 = vmatprep.subr.bf16.mxu1 %v9556_v11  ;;  %v9602_v11 = vld [vmem:[%s12580_s2 + $0x124] ss:$24 sps:$4 sm:$0xff]  }
 0x15b   :  { %v646_v13 = vpop.f32.mrf.mxu1  ;;  %v9599_v10 = vld [vmem:[#allocation3 + $0xa8] sm:$0xff]  }
 0x15c   :  { %8327 = vst [vmem:[#allocation3 + $0xb8] sm:$0xff] %v7863_v12   ;;  %v7858_v14 = vpack.c.bf16 %v646_v13, %v643_v6 }
 0x15d   :  { %v9312_v16 = vpop.f32.mrf.mxu1  ;;  %8499 = vmatpush3.bf16.msra.mxu1 %v9557_v15  ;;  %v9601_v13 = vld [vmem:[#allocation3 + $0xa0] sm:$0xff]  }
 0x15e   :  { %8326 = vst [vmem:[#allocation3 + $0xb0] sm:$0xff] %v7858_v14   ;;  %8500 = vmatprep.subr.bf16.mxu1 %v9558_v17  ;;  %v9604_v15 = vld [vmem:[%s12580_s2 + $0x120] ss:$24 sps:$4 sm:$0xff]  }
 0x15f   :  { %v659_v18 = vpop.f32.mrf.mxu1 }
 0x161   :  { %v9313_v21 = vpop.f32.mrf.mxu1  ;;  %8501 = vmatpush3.bf16.msra.mxu1 %v9559_v20  ;;  %v9608_v20 = vld [vmem:[#allocation3 + $0x90] sm:$0xff]  }
 0x162   :  { %v7873_v23 = vpack.c.bf16 %v9313_v21, %v9312_v16  ;;  %8710 = vmatprep.subr.bf16.mxu1 %v9563_v19  ;;  %v9609_v16 = vld [vmem:[%s12580_s2 + $0x154] ss:$24 sps:$4 sm:$0xff]   ;;  %v9611_v21 = vld [vmem:[%s12580_s2 + $0x150] ss:$24 sps:$4 sm:$0xff]  }
 0x163   :  { %v662_v26 = vpop.f32.mrf.mxu1  ;;  %v9592_v3 = vld [vmem:[#allocation3 + $0xb8] sm:$0xff]  }
 0x164   :  { %8329 = vst [vmem:[#allocation3 + $0xc8] sm:$0xff] %v7873_v23   ;;  %v7868_v28 = vpack.c.bf16 %v662_v26, %v659_v18  ;;  %2261 = vmatmul.mubr.bf16.vlgmr.msra.gmra.mxu1 %v9560_v22  ;;  %v9606_v18 = vld [vmem:[#allocation3 + $0x98] sm:$0xff]   ;;  %v9618_v26 = vld [vmem:[%s12580_s2 + $0x8] ss:$24 sps:$4 sm:$0xff]  }
 0x165   :  { %v9316_v29 = vpop.f32.mrf.mxu1  ;;  %8711 = vmatpush3.bf16.msra.mxu1 %v9564_v24  ;;  %2268 = vmatprep.mubr.bf16.mxu1 %v9567_v25  ;;  %v9594_v8 = vld [vmem:[#allocation3 + $0xb0] sm:$0xff]   ;;  %v9616_v22 = vld [vmem:[%s12580_s2 + $0x184] ss:$24 sps:$4 sm:$0xff]   ;;  %v9613_v24 = vld [vmem:[#allocation3 + $0x88] sm:$0xff]  }
 0x166   :  { %8328 = vst [vmem:[#allocation3 + $0xc0] sm:$0xff] %v7868_v28   ;;  %8712 = vmatprep.subr.bf16.mxu1 %v9565_v27  ;;  %v9615_v25 = vld [vmem:[#allocation3 + $0x80] sm:$0xff]   ;;  %v9622_v28 = vld [vmem:[%s12580_s2 + $0x1b4] ss:$24 sps:$4 sm:$0xff]  }
 0x167   :  { %v675_v31 = vpop.f32.mrf.mxu1  ;;  %v9621_v27 = vld [vmem:[%s12580_s2 + $0x180] ss:$24 sps:$4 sm:$0xff]  }
 0x169   :  { %v9317_v33 = vpop.f32.mrf.mxu1  ;;  %8713 = vmatpush3.bf16.msra.mxu1 %v9566_v30  ;;  %v9626_v30 = vld [vmem:[%s12580_s2 + $0x1b0] ss:$24 sps:$4 sm:$0xff]  }
 0x16a   :  { %v7883_v35 = vpack.c.bf16 %v9317_v33, %v9316_v29  ;;  %8714 = vmatprep.subr.bf16.mxu1 %v9570_v32  ;;  %v9624_v29 = vld [vmem:[%s12580_s2 + $0x3c] ss:$24 sps:$4 sm:$0xff]   ;;  %v9630_v33 = vld [vmem:[%s12580_s2 + $0x6c] ss:$24 sps:$4 sm:$0xff]  }
 0x16b   :  { %v678_v38 = vpop.f32.mrf.mxu1  ;;  %v9612_v19 = vld [vmem:[#allocation3 + $0xc8] sm:$0xff]   ;;  %v9628_v32 = vld [vmem:[%s12580_s2 + $0x1e4] ss:$24 sps:$4 sm:$0xff]  }
 0x16c   :  { %8331 = vst [vmem:[#allocation3 + $0xd8] sm:$0xff] %v7883_v35   ;;  %v7878_v40 = vpack.c.bf16 %v678_v38, %v675_v31  ;;  %2269 = vmatmul.mubr.bf16.gmra.mxu1 %v9569_v34  ;;  %v9627_v31 = vld [vmem:[%s12580_s2 + $0x38] ss:$24 sps:$4 sm:$0xff]   ;;  %v9633_v35 = vld [vmem:[%s12580_s2 + $0x68] ss:$24 sps:$4 sm:$0xff]  }
 0x16d   :  { %v9320_v41 = vpop.f32.mrf.mxu1  ;;  %8715 = vmatpush3.bf16.msra.mxu1 %v9571_v36  ;;  %2276 = vmatprep.mubr.bf16.mxu1 %v9575_v37  ;;  %v9614_v23 = vld [vmem:[#allocation3 + $0xc0] sm:$0xff]   ;;  %v9634_v36 = vld [vmem:[%s12580_s2 + $0x214] ss:$24 sps:$4 sm:$0xff]   ;;  %v9638_v38 = vld [vmem:[%s12580_s2 + $0x210] ss:$24 sps:$4 sm:$0xff]  }
 0x16e   :  { %8330 = vst [vmem:[#allocation3 + $0xd0] sm:$0xff] %v7878_v40   ;;  %8716 = vmatprep.subr.bf16.mxu1 %v9572_v39  ;;  %v9632_v34 = vld [vmem:[%s12580_s2 + $0x1e0] ss:$24 sps:$4 sm:$0xff]   ;;  %v9636_v37 = vld [vmem:[%s12580_s2 + $0x9c] ss:$24 sps:$4 sm:$0xff]  }
 0x16f   :  { %v691_v43 = vpop.f32.mrf.mxu1  ;;  %v9639_v39 = vld [vmem:[%s12580_s2 + $0x98] ss:$24 sps:$4 sm:$0xff]   ;;  %v9642_v40 = vld [vmem:[%s12580_s2 + $0x244] ss:$24 sps:$4 sm:$0xff]  }
 0x171   :  { %v9321_v45 = vpop.f32.mrf.mxu1  ;;  %8717 = vmatpush3.bf16.msra.mxu1 %v9573_v42  ;;  %v9640_v42 = vld [vmem:[%s12580_s2 + $0x240] ss:$24 sps:$4 sm:$0xff]  }
 0x172   :  { %v7893_v47 = vpack.c.bf16 %v9321_v45, %v9320_v41  ;;  %8718 = vmatprep.subr.bf16.mxu1 %v9574_v44  ;;  %v9643_v41 = vld [vmem:[%s12580_s2 + $0xcc] ss:$24 sps:$4 sm:$0xff]   ;;  %v9649_v45 = vld [vmem:[%s12580_s2 + $0xfc] ss:$24 sps:$4 sm:$0xff]  }
 0x173   :  { %v694_v50 = vpop.f32.mrf.mxu1  ;;  %v9605_v14 = vld [vmem:[#allocation3 + $0xd8] sm:$0xff]   ;;  %v9648_v44 = vld [vmem:[%s12580_s2 + $0x274] ss:$24 sps:$4 sm:$0xff]  }
 0x174   :  { %8333 = vst [vmem:[#allocation3 + $0xe8] sm:$0xff] %v7893_v47   ;;  %v7888_v52 = vpack.c.bf16 %v694_v50, %v691_v43  ;;  %2277 = vmatmul.mubr.bf16.gmra.mxu1 %v9577_v46  ;;  %v9645_v43 = vld [vmem:[%s12580_s2 + $0xc8] ss:$24 sps:$4 sm:$0xff]   ;;  %v9651_v47 = vld [vmem:[%s12580_s2 + $0xf8] ss:$24 sps:$4 sm:$0xff]  }
 0x175   :  { %v9324_v53 = vpop.f32.mrf.mxu1  ;;  %8719 = vmatpush3.bf16.msra.mxu1 %v9578_v48  ;;  %2284 = vmatprep.mubr.bf16.mxu1 %v9582_v49  ;;  %v9607_v17 = vld [vmem:[#allocation3 + $0xd0] sm:$0xff]   ;;  %v9654_v48 = vld [vmem:[%s12580_s2 + $0x2a4] ss:$24 sps:$4 sm:$0xff]   ;;  %v9652_v50 = vld [vmem:[%s12580_s2 + $0x2a0] ss:$24 sps:$4 sm:$0xff]  }
 0x176   :  { %8332 = vst [vmem:[#allocation3 + $0xe0] sm:$0xff] %v7888_v52   ;;  %8720 = vmatprep.subr.bf16.mxu1 %v9579_v51  ;;  %v9646_v46 = vld [vmem:[%s12580_s2 + $0x270] ss:$24 sps:$4 sm:$0xff]   ;;  %v9655_v49 = vld [vmem:[%s12580_s2 + $0x12c] ss:$24 sps:$4 sm:$0xff]  }
 0x177   :  { %v707_v55 = vpop.f32.mrf.mxu1  ;;  %v9657_v51 = vld [vmem:[%s12580_s2 + $0x128] ss:$24 sps:$4 sm:$0xff]   ;;  %v9660_v52 = vld [vmem:[%s12580_s2 + $0x2d4] ss:$24 sps:$4 sm:$0xff]  }
 0x179   :  { %v9325_v57 = vpop.f32.mrf.mxu1  ;;  %8721 = vmatpush3.bf16.msra.mxu1 %v9580_v54  ;;  %v9658_v54 = vld [vmem:[%s12580_s2 + $0x2d0] ss:$24 sps:$4 sm:$0xff]  }
 0x17a   :  { %v7903_v59 = vpack.c.bf16 %v9325_v57, %v9324_v53  ;;  %8722 = vmatprep.subr.bf16.mxu1 %v9581_v56  ;;  %v9661_v53 = vld [vmem:[%s12580_s2 + $0x15c] ss:$24 sps:$4 sm:$0xff]   ;;  %v9664_v56 = vld [vmem:[%s12580_s2 + $0x18c] ss:$24 sps:$4 sm:$0xff]  }
 0x17b   :  { %v710_v62 = vpop.f32.mrf.mxu1  ;;  %v9598_v6 = vld [vmem:[#allocation3 + $0xe8] sm:$0xff]  }
 0x17c   :  { %8335 = vst [vmem:[#allocation3 + $0xf8] sm:$0xff] %v7903_v59   ;;  %v7898_v0 = vpack.c.bf16 %v710_v62, %v707_v55  ;;  %2285 = vmatmul.mubr.bf16.gmra.mxu1 %v9584_v58  ;;  %v9663_v55 = vld [vmem:[%s12580_s2 + $0x158] ss:$24 sps:$4 sm:$0xff]   ;;  %v9668_v57 = vld [vmem:[%s12580_s2 + $0x14] ss:$24 sps:$4 sm:$0xff]  }
 0x17d   :  { %8723 = vmatpush3.bf16.msra.mxu1 %v9585_v60  ;;  %2292 = vmatprep.mubr.bf16.mxu1 %v9588_v61  ;;  %v9600_v12 = vld [vmem:[#allocation3 + $0xe0] sm:$0xff]   ;;  %v9666_v58 = vld [vmem:[%s12580_s2 + $0x10] ss:$24 sps:$4 sm:$0xff]   ;;  %v9670_v60 = vld [vmem:[%s12580_s2 + $0x1bc] ss:$24 sps:$4 sm:$0xff]  }
 0x17e   :  { %8334 = vst [vmem:[#allocation3 + $0xf0] sm:$0xff] %v7898_v0   ;;  %8724 = vmatprep.subr.bf16.mxu1 %v9586_v63  ;;  %v9669_v59 = vld [vmem:[%s12580_s2 + $0x188] ss:$24 sps:$4 sm:$0xff]   ;;  %v9674_v61 = vld [vmem:[%s12580_s2 + $0x44] ss:$24 sps:$4 sm:$0xff]  }
 0x17f   :  { %v9672_v62 = vld [vmem:[%s12580_s2 + $0x40] ss:$24 sps:$4 sm:$0xff]   ;;  %v9676_v0 = vld [vmem:[%s12580_s2 + $0x1ec] ss:$24 sps:$4 sm:$0xff]  }
 0x180   :  { %v9675_v63 = vld [vmem:[%s12580_s2 + $0x1b8] ss:$24 sps:$4 sm:$0xff]  }
 0x181   :  { %8725 = vmatpush3.bf16.msra.mxu1 %v9587_v1  ;;  %v9680_v1 = vld [vmem:[%s12580_s2 + $0x74] ss:$24 sps:$4 sm:$0xff]  }
 0x183   :  { %v9591_v5 = vld [vmem:[#allocation3 + $0xf8] sm:$0xff]  }
 0x184   :  { %2293 = vmatmul.mubr.bf16.gmra.mxu1 %v9590_v2  ;;  %8598 = vmatprep.subr.bf16.mxu0 %v9591_v5  ;;  %v9678_v2 = vld [vmem:[%s12580_s2 + $0x70] ss:$24 sps:$4 sm:$0xff]   ;;  %v9686_v5 = vld [vmem:[%s12580_s2 + $0xa4] ss:$24 sps:$4 sm:$0xff]  }
 0x185   :  { %v9593_v7 = vld [vmem:[#allocation3 + $0xf0] sm:$0xff]   ;;  %8599 = vmatpush3.bf16.msra.mxu0 %v9592_v3  ;;  %2300 = vmatprep.mubr.bf16.mxu1 %v9595_v4  ;;  %v9681_v3 = vld [vmem:[%s12580_s2 + $0x1e8] ss:$24 sps:$4 sm:$0xff]  }
 0x186   :  { %8600 = vmatprep.subr.bf16.mxu0 %v9593_v7  ;;  %v9682_v4 = vld [vmem:[%s12580_s2 + $0x21c] ss:$24 sps:$4 sm:$0xff]   ;;  %v9684_v7 = vld [vmem:[%s12580_s2 + $0xa0] ss:$24 sps:$4 sm:$0xff]  }
 0x189   :  { %8601 = vmatpush3.bf16.msra.mxu0 %v9594_v8  ;;  %v9687_v8 = vld [vmem:[%s12580_s2 + $0x218] ss:$24 sps:$4 sm:$0xff]  }
 0x18a   :  { %8602 = vmatprep.subr.bf16.mxu0 %v9598_v6  ;;  %v9688_v6 = vld [vmem:[%s12580_s2 + $0x24c] ss:$24 sps:$4 sm:$0xff]  }
 0x18c   :  { %2301 = vmatmul.mubr.bf16.gmra.mxu1 %v9597_v9  ;;  %v9692_v9 = vld [vmem:[%s12580_s2 + $0xd4] ss:$24 sps:$4 sm:$0xff]  }
 0x18d   :  { %8603 = vmatpush3.bf16.msra.mxu0 %v9599_v10  ;;  %2308 = vmatprep.mubr.bf16.mxu1 %v9602_v11  ;;  %v9690_v10 = vld [vmem:[%s12580_s2 + $0xd0] ss:$24 sps:$4 sm:$0xff]  }
 0x18e   :  { %8604 = vmatprep.subr.bf16.mxu0 %v9600_v12  ;;  %v9693_v11 = vld [vmem:[%s12580_s2 + $0x248] ss:$24 sps:$4 sm:$0xff]   ;;  %v9694_v12 = vld [vmem:[%s12580_s2 + $0x27c] ss:$24 sps:$4 sm:$0xff]  }
 0x191   :  { %8605 = vmatpush3.bf16.msra.mxu0 %v9601_v13  ;;  %v9698_v13 = vld [vmem:[%s12580_s2 + $0x104] ss:$24 sps:$4 sm:$0xff]  }
 0x192   :  { %8606 = vmatprep.subr.bf16.mxu0 %v9605_v14  ;;  %v9696_v14 = vld [vmem:[%s12580_s2 + $0x100] ss:$24 sps:$4 sm:$0xff]  }
 0x194   :  { %2309 = vmatmul.mubr.bf16.gmra.mxu1 %v9604_v15  ;;  %v9699_v15 = vld [vmem:[%s12580_s2 + $0x278] ss:$24 sps:$4 sm:$0xff]  }
 0x195   :  { %8607 = vmatpush3.bf16.msra.mxu0 %v9606_v18  ;;  %2316 = vmatprep.mubr.bf16.mxu1 %v9609_v16  ;;  %v9700_v16 = vld [vmem:[%s12580_s2 + $0x2ac] ss:$24 sps:$4 sm:$0xff]   ;;  %v9702_v18 = vld [vmem:[%s12580_s2 + $0x130] ss:$24 sps:$4 sm:$0xff]  }
 0x196   :  { %8608 = vmatprep.subr.bf16.mxu0 %v9607_v17  ;;  %v9704_v17 = vld [vmem:[%s12580_s2 + $0x134] ss:$24 sps:$4 sm:$0xff]  }
 0x199   :  { %8609 = vmatpush3.bf16.msra.mxu0 %v9608_v20  ;;  %v9706_v20 = vld [vmem:[%s12580_s2 + $0x2dc] ss:$24 sps:$4 sm:$0xff]  }
 0x19a   :  { %8610 = vmatprep.subr.bf16.mxu0 %v9612_v19  ;;  %v9705_v19 = vld [vmem:[%s12580_s2 + $0x2a8] ss:$24 sps:$4 sm:$0xff]  }
 0x19c   :  { %2317 = vmatmul.mubr.bf16.gmra.mxu1 %v9611_v21  ;;  %v9710_v21 = vld [vmem:[%s12580_s2 + $0x164] ss:$24 sps:$4 sm:$0xff]  }
 0x19d   :  { %8611 = vmatpush3.bf16.msra.mxu0 %v9613_v24  ;;  %2324 = vmatprep.mubr.bf16.mxu1 %v9616_v22  ;;  %v9708_v22 = vld [vmem:[%s12580_s2 + $0x160] ss:$24 sps:$4 sm:$0xff]   ;;  %v9714_v24 = vld [vmem:[%s12580_s2 + $0x194] ss:$24 sps:$4 sm:$0xff]  }
 0x19e   :  { %8612 = vmatprep.subr.bf16.mxu0 %v9614_v23  ;;  %v9711_v23 = vld [vmem:[%s12580_s2 + $0x2d8] ss:$24 sps:$4 sm:$0xff]  }
 0x1a1   :  { %8613 = vmatpush3.bf16.msra.mxu0 %v9615_v25  ;;  %v9712_v25 = vld [vmem:[%s12580_s2 + $0x190] ss:$24 sps:$4 sm:$0xff]  }
 0x1a4   :  { %2325 = vmatmul.mubr.bf16.gmra.mxu1 %v9621_v27  ;;  %2422 = vmatmul.mubr.bf16.vlgmr.msra.gmra.mxu0 %v9618_v26  ;;  %v9717_v26 = vld [vmem:[%s12580_s2 + $0x1c4] ss:$24 sps:$4 sm:$0xff]  }
 0x1a5   :  { %2332 = vmatprep.mubr.bf16.mxu1 %v9622_v28  ;;  %2429 = vmatprep.mubr.bf16.mxu0 %v9624_v29 }
 0x1ac   :  { %2333 = vmatmul.mubr.bf16.gmra.mxu1 %v9626_v30  ;;  %2430 = vmatmul.mubr.bf16.gmra.mxu0 %v9627_v31  ;;  %v9715_v31 = vld [vmem:[%s12580_s2 + $0x1c0] ss:$24 sps:$4 sm:$0xff]  }
 0x1ad   :  { %2340 = vmatprep.mubr.bf16.mxu1 %v9628_v32  ;;  %2437 = vmatprep.mubr.bf16.mxu0 %v9630_v33  ;;  %v9720_v32 = vld [vmem:[%s12580_s2 + $0x1f4] ss:$24 sps:$4 sm:$0xff]  }
 0x1b4   :  { %2341 = vmatmul.mubr.bf16.gmra.mxu1 %v9632_v34  ;;  %2438 = vmatmul.mubr.bf16.gmra.mxu0 %v9633_v35 }
 0x1b5   :  { %2348 = vmatprep.mubr.bf16.mxu1 %v9634_v36  ;;  %2445 = vmatprep.mubr.bf16.mxu0 %v9636_v37 }
 0x1bc   :  { %2349 = vmatmul.mubr.bf16.gmra.mxu1 %v9638_v38  ;;  %2446 = vmatmul.mubr.bf16.gmra.mxu0 %v9639_v39  ;;  %v9718_v39 = vld [vmem:[%s12580_s2 + $0x1f0] ss:$24 sps:$4 sm:$0xff]  }
 0x1bd   :  { %2356 = vmatprep.mubr.bf16.mxu1 %v9642_v40  ;;  %2453 = vmatprep.mubr.bf16.mxu0 %v9643_v41  ;;  %v9723_v40 = vld [vmem:[%s12580_s2 + $0x224] ss:$24 sps:$4 sm:$0xff]  }
 0x1c4   :  { %2357 = vmatmul.mubr.bf16.gmra.mxu1 %v9640_v42  ;;  %2454 = vmatmul.mubr.bf16.gmra.mxu0 %v9645_v43 }
 0x1c5   :  { %2364 = vmatprep.mubr.bf16.mxu1 %v9648_v44  ;;  %2461 = vmatprep.mubr.bf16.mxu0 %v9649_v45 }
 0x1cc   :  { %2365 = vmatmul.mubr.bf16.gmra.mxu1 %v9646_v46  ;;  %2462 = vmatmul.mubr.bf16.gmra.mxu0 %v9651_v47  ;;  %v9721_v47 = vld [vmem:[%s12580_s2 + $0x220] ss:$24 sps:$4 sm:$0xff]  }
 0x1cd   :  { %2372 = vmatprep.mubr.bf16.mxu1 %v9654_v48  ;;  %2469 = vmatprep.mubr.bf16.mxu0 %v9655_v49  ;;  %v9726_v48 = vld [vmem:[%s12580_s2 + $0x254] ss:$24 sps:$4 sm:$0xff]  }
 0x1d4   :  { %2373 = vmatmul.mubr.bf16.gmra.mxu1 %v9652_v50  ;;  %2470 = vmatmul.mubr.bf16.gmra.mxu0 %v9657_v51 }
 0x1d5   :  { %2380 = vmatprep.mubr.bf16.mxu1 %v9660_v52  ;;  %2477 = vmatprep.mubr.bf16.mxu0 %v9661_v53 }
 0x1dc   :  { %2381 = vmatmul.mubr.bf16.gmra.mxu1 %v9658_v54  ;;  %2478 = vmatmul.mubr.bf16.gmra.mxu0 %v9663_v55  ;;  %v9724_v55 = vld [vmem:[%s12580_s2 + $0x250] ss:$24 sps:$4 sm:$0xff]  }
 0x1dd   :  { %2485 = vmatprep.mubr.bf16.mxu0 %v9664_v56  ;;  %2582 = vmatprep.mubr.bf16.mxu1 %v9668_v57  ;;  %v9729_v56 = vld [vmem:[%s12580_s2 + $0x284] ss:$24 sps:$4 sm:$0xff]  }
 0x1e4   :  { %2486 = vmatmul.mubr.bf16.gmra.mxu0 %v9669_v59  ;;  %2583 = vmatmul.mubr.bf16.vlgmr.msra.gmra.mxu1 %v9666_v58 }
 0x1e5   :  { %2493 = vmatprep.mubr.bf16.mxu0 %v9670_v60  ;;  %2590 = vmatprep.mubr.bf16.mxu1 %v9674_v61 }
 0x1ec   :  { %2494 = vmatmul.mubr.bf16.gmra.mxu0 %v9675_v63  ;;  %2591 = vmatmul.mubr.bf16.gmra.mxu1 %v9672_v62  ;;  %v9727_v63 = vld [vmem:[%s12580_s2 + $0x280] ss:$24 sps:$4 sm:$0xff]  }
 0x1ed   :  { %2501 = vmatprep.mubr.bf16.mxu0 %v9676_v0  ;;  %2598 = vmatprep.mubr.bf16.mxu1 %v9680_v1  ;;  %v9732_v0 = vld [vmem:[%s12580_s2 + $0x2b4] ss:$24 sps:$4 sm:$0xff]  }
 0x1f4   :  { %2502 = vmatmul.mubr.bf16.gmra.mxu0 %v9681_v3  ;;  %2599 = vmatmul.mubr.bf16.gmra.mxu1 %v9678_v2 }
 0x1f5   :  { %2509 = vmatprep.mubr.bf16.mxu0 %v9682_v4  ;;  %2606 = vmatprep.mubr.bf16.mxu1 %v9686_v5 }
 0x1fc   :  { %2510 = vmatmul.mubr.bf16.gmra.mxu0 %v9687_v8  ;;  %2607 = vmatmul.mubr.bf16.gmra.mxu1 %v9684_v7  ;;  %v9730_v7 = vld [vmem:[%s12580_s2 + $0x2b0] ss:$24 sps:$4 sm:$0xff]   ;;  %v9735_v8 = vld [vmem:[%s12580_s2 + $0x2e4] ss:$24 sps:$4 sm:$0xff]  }
 0x1fd   :  { %2517 = vmatprep.mubr.bf16.mxu0 %v9688_v6  ;;  %2614 = vmatprep.mubr.bf16.mxu1 %v9692_v9 }
 0x204   :  { %2518 = vmatmul.mubr.bf16.gmra.mxu0 %v9693_v11  ;;  %2615 = vmatmul.mubr.bf16.gmra.mxu1 %v9690_v10 }
 0x205   :  { %2525 = vmatprep.mubr.bf16.mxu0 %v9694_v12  ;;  %2622 = vmatprep.mubr.bf16.mxu1 %v9698_v13  ;;  %v9733_v13 = vld [vmem:[%s12580_s2 + $0x2e0] ss:$24 sps:$4 sm:$0xff]   ;;  %s7161_s2 = sld [smem:[#allocation5 + $0x183]] }
 0x20c   :  { %2526 = vmatmul.mubr.bf16.gmra.mxu0 %v9699_v15  ;;  %2623 = vmatmul.mubr.bf16.gmra.mxu1 %v9696_v14 }
 0x20d   :  { %2533 = vmatprep.mubr.bf16.mxu0 %v9700_v16  ;;  %2630 = vmatprep.mubr.bf16.mxu1 %v9704_v17 }
 0x214   :  { %2534 = vmatmul.mubr.bf16.gmra.mxu0 %v9705_v19  ;;  %2631 = vmatmul.mubr.bf16.gmra.mxu1 %v9702_v18 }
 0x215   :  { %2541 = vmatprep.mubr.bf16.mxu0 %v9706_v20  ;;  %2638 = vmatprep.mubr.bf16.mxu1 %v9710_v21 }
 0x21c   :  { %2542 = vmatmul.mubr.bf16.gmra.mxu0 %v9711_v23  ;;  %2639 = vmatmul.mubr.bf16.gmra.mxu1 %v9708_v22 }
 0x21d   :  { %2646 = vmatprep.mubr.bf16.mxu1 %v9714_v24 }
 0x224   :  { %v8502_v27 = vpop.f32.mrf.mxu1  ;;  %2647 = vmatmul.mubr.bf16.gmra.mxu1 %v9712_v25 }
 0x225   :  { %2654 = vmatprep.mubr.bf16.mxu1 %v9717_v26 }
 0x226   :  { %v8503_v28 = vpop.f32.mrf.mxu1 }
 0x227   :  { %v10520_v29 = vadd.f32 %v8503_v28, %v8502_v27 }
 0x228   :  { %v8505_v30 = vpop.f32.mrf.mxu1 }
 0x22a   :  { %v8506_v33 = vpop.f32.mrf.mxu1 }
 0x22b   :  { %v10528_v34 = vadd.f32 %v8506_v33, %v8505_v30 }
 0x22c   :  { %v8508_v35 = vpop.f32.mrf.mxu1  ;;  %2655 = vmatmul.mubr.bf16.gmra.mxu1 %v9715_v31 }
 0x22d   :  { %2662 = vmatprep.mubr.bf16.mxu1 %v9720_v32 }
 0x22e   :  { %v8509_v36 = vpop.f32.mrf.mxu1 }
 0x22f   :  { %v10530_v37 = vadd.f32 %v8509_v36, %v8508_v35 }
 0x230   :  { %v8511_v38 = vpop.f32.mrf.mxu1 }
 0x232   :  { %v8512_v41 = vpop.f32.mrf.mxu1 }
 0x233   :  { %v10538_v42 = vadd.f32 %v8512_v41, %v8511_v38 }
 0x234   :  { %v8514_v43 = vpop.f32.mrf.mxu1  ;;  %2663 = vmatmul.mubr.bf16.gmra.mxu1 %v9718_v39 }
 0x235   :  { %2670 = vmatprep.mubr.bf16.mxu1 %v9723_v40 }
 0x236   :  { %v8515_v44 = vpop.f32.mrf.mxu1 }
 0x237   :  { %v10540_v45 = vadd.f32 %v8515_v44, %v8514_v43 }
 0x238   :  { %v8517_v46 = vpop.f32.mrf.mxu1 }
 0x23a   :  { %v8518_v49 = vpop.f32.mrf.mxu1 }
 0x23b   :  { %v10548_v50 = vadd.f32 %v8518_v49, %v8517_v46 }
 0x23c   :  { %v8520_v51 = vpop.f32.mrf.mxu1  ;;  %2671 = vmatmul.mubr.bf16.gmra.mxu1 %v9721_v47 }
 0x23d   :  { %2678 = vmatprep.mubr.bf16.mxu1 %v9726_v48 }
 0x23e   :  { %v8521_v52 = vpop.f32.mrf.mxu1 }
 0x23f   :  { %v10550_v53 = vadd.f32 %v8521_v52, %v8520_v51 }
 0x240   :  { %v8523_v54 = vpop.f32.mrf.mxu1 }
 0x242   :  { %v8524_v57 = vpop.f32.mrf.mxu1 }
 0x243   :  { %v10558_v58 = vadd.f32 %v8524_v57, %v8523_v54 }
 0x244   :  { %v8526_v59 = vpop.f32.mrf.mxu1  ;;  %2679 = vmatmul.mubr.bf16.gmra.mxu1 %v9724_v55 }
 0x245   :  { %2686 = vmatprep.mubr.bf16.mxu1 %v9729_v56 }
 0x246   :  { %v8527_v60 = vpop.f32.mrf.mxu1 }
 0x247   :  { %v10560_v61 = vadd.f32 %v8527_v60, %v8526_v59 }
 0x248   :  { %v10562_v62 = vpop.f32.mrf.mxu1 }
 0x24a   :  { %v10570_v1 = vpop.f32.mrf.mxu1 }
 0x24c   :  { %v8532_v2 = vpop.f32.mrf.mxu1  ;;  %2687 = vmatmul.mubr.bf16.gmra.mxu1 %v9727_v63 }
 0x24d   :  { %2694 = vmatprep.mubr.bf16.mxu1 %v9732_v0 }
 0x24e   :  { %v8533_v3 = vpop.f32.mrf.mxu1 }
 0x24f   :  { %v10572_v4 = vadd.f32 %v8533_v3, %v8532_v2 }
 0x250   :  { %v10574_v5 = vpop.f32.mrf.mxu1 }
 0x252   :  { %v10582_v6 = vpop.f32.mrf.mxu1 }
 0x254   :  { %v8538_v9 = vpop.f32.mrf.mxu1  ;;  %2695 = vmatmul.mubr.bf16.gmra.mxu1 %v9730_v7 }
 0x255   :  { %2702 = vmatprep.mubr.bf16.mxu1 %v9735_v8 }
 0x256   :  { %v8539_v10 = vpop.f32.mrf.mxu1 }
 0x257   :  { %v10584_v11 = vadd.f32 %v8539_v10, %v8538_v9 }
 0x258   :  { %v10586_v12 = vpop.f32.mrf.mxu1 }
 0x259   :  { %12615 = vst [vmem:[#allocation11_spill] sm:$0xff] %v10584_v11 }
 0x25a   :  { %v10591_v14 = vpop.f32.mrf.mxu1 }
 0x25c   :  { %v8544_v15 = vpop.f32.mrf.mxu1  ;;  %2703 = vmatmul.mubr.bf16.gmra.mxu1 %v9733_v13 }
 0x25e   :  { %v8545_v16 = vpop.f32.mrf.mxu1 }
 0x25f   :  { %v10593_v17 = vadd.f32 %v8545_v16, %v8544_v15 }
 0x260   :  { %v10595_v18 = vpop.f32.mrf.mxu1 }
 0x261   :  { %12616 = vst [vmem:[#allocation12_spill] sm:$0xff] %v10593_v17  ;;  %12617 = vst [vmem:[#allocation13_spill] sm:$0xff] %v10595_v18 }
 0x262   :  { %v10597_v19 = vpop.f32.mrf.mxu1 }
 0x263   :  { %12618 = vst [vmem:[#allocation14_spill] sm:$0xff] %v10597_v19 }
 0x264   :  { %v8550_v20 = vpop.f32.mrf.mxu1  ;;  %v10599_v21 = vpop.f32.mrf.mxu0 }
 0x266   :  { %v8551_v22 = vpop.f32.mrf.mxu1  ;;  %v10601_v23 = vpop.f32.mrf.mxu0 }
 0x267   :  { %v10603_v24 = vadd.f32 %v8551_v22, %v8550_v20 }
 0x268   :  { %v10605_v25 = vpop.f32.mrf.mxu1  ;;  %v10607_v26 = vpop.f32.mrf.mxu0 }
 0x269   :  { %12619 = vst [vmem:[#allocation15_spill] sm:$0xff] %v10603_v24  ;;  %12620 = vst [vmem:[#allocation16_spill] sm:$0xff] %v10605_v25 }
 0x26a   :  { %v10609_v27 = vpop.f32.mrf.mxu1  ;;  %v10611_v28 = vpop.f32.mrf.mxu0 }
 0x26b   :  { %12621 = vst [vmem:[#allocation17_spill] sm:$0xff] %v10609_v27 }
 0x26c   :  { %v8556_v30 = vpop.f32.mrf.mxu1  ;;  %v10613_v31 = vpop.f32.mrf.mxu0 }
 0x26e   :  { %v8557_v32 = vpop.f32.mrf.mxu1  ;;  %v10615_v33 = vpop.f32.mrf.mxu0 }
 0x26f   :  { %v10617_v35 = vadd.f32 %v8557_v32, %v8556_v30 }
 0x270   :  { %v10619_v36 = vpop.f32.mrf.mxu1  ;;  %v10621_v38 = vpop.f32.mrf.mxu0 }
 0x271   :  { %12622 = vst [vmem:[#allocation18_spill] sm:$0xff] %v10617_v35  ;;  %12623 = vst [vmem:[#allocation19_spill] sm:$0xff] %v10619_v36 }
 0x272   :  { %v10623_v39 = vpop.f32.mrf.mxu1  ;;  %v10625_v40 = vpop.f32.mrf.mxu0 }
 0x273   :  { %12624 = vst [vmem:[#allocation20_spill] sm:$0xff] %v10623_v39 }
 0x274   :  { %v8562_v41 = vpop.f32.mrf.mxu1  ;;  %v10627_v43 = vpop.f32.mrf.mxu0 }
 0x276   :  { %v8563_v44 = vpop.f32.mrf.mxu1  ;;  %v10629_v46 = vpop.f32.mrf.mxu0 }
 0x277   :  { %v10631_v47 = vadd.f32 %v8563_v44, %v8562_v41 }
 0x278   :  { %v10633_v48 = vpop.f32.mrf.mxu1  ;;  %v10635_v49 = vpop.f32.mrf.mxu0 }
 0x279   :  { %12625 = vst [vmem:[#allocation21_spill] sm:$0xff] %v10631_v47  ;;  %12626 = vst [vmem:[#allocation22_spill] sm:$0xff] %v10633_v48 }
 0x27a   :  { %v10637_v51 = vpop.f32.mrf.mxu1  ;;  %v10639_v52 = vpop.f32.mrf.mxu0 }
 0x27b   :  { %12627 = vst [vmem:[#allocation23_spill] sm:$0xff] %v10637_v51 }
 0x27c   :  { %v8568_v54 = vpop.f32.mrf.mxu1  ;;  %v10641_v55 = vpop.f32.mrf.mxu0 }
 0x27e   :  { %v8569_v56 = vpop.f32.mrf.mxu1  ;;  %v10643_v57 = vpop.f32.mrf.mxu0 }
 0x27f   :  { %v10645_v59 = vadd.f32 %v8569_v56, %v8568_v54 }
 0x280   :  { %v10647_v60 = vpop.f32.mrf.mxu1  ;;  %v10649_v63 = vpop.f32.mrf.mxu0 }
 0x281   :  { %12628 = vst [vmem:[#allocation24_spill] sm:$0xff] %v10645_v59  ;;  %12629 = vst [vmem:[#allocation25_spill] sm:$0xff] %v10647_v60 }
 0x282   :  { %v10651_v0 = vpop.f32.mrf.mxu1  ;;  %v10653_v2 = vpop.f32.mrf.mxu0 }
 0x283   :  { %12630 = vst [vmem:[#allocation26_spill] sm:$0xff] %v10651_v0 }
 0x284   :  { %v8574_v3 = vpop.f32.mrf.mxu1  ;;  %v10655_v7 = vpop.f32.mrf.mxu0 }
 0x286   :  { %v8575_v8 = vpop.f32.mrf.mxu1  ;;  %v10657_v9 = vpop.f32.mrf.mxu0 }
 0x287   :  { %v10659_v10 = vadd.f32 %v8575_v8, %v8574_v3 }
 0x288   :  { %v10661_v13 = vpop.f32.mrf.mxu1  ;;  %v10663_v15 = vpop.f32.mrf.mxu0 }
 0x289   :  { %12631 = vst [vmem:[#allocation27_spill] sm:$0xff] %v10659_v10  ;;  %12632 = vst [vmem:[#allocation28_spill] sm:$0xff] %v10661_v13 }
 0x28a   :  { %v10665_v16 = vpop.f32.mrf.mxu1  ;;  %v10667_v20 = vpop.f32.mrf.mxu0 }
 0x28b   :  { %12633 = vst [vmem:[#allocation29_spill] sm:$0xff] %v10665_v16 }
 0x28c   :  { %v8580_v22 = vpop.f32.mrf.mxu1  ;;  %v10669_v30 = vpop.f32.mrf.mxu0 }
 0x28e   :  { %v8581_v32 = vpop.f32.mrf.mxu1  ;;  %v10671_v41 = vpop.f32.mrf.mxu0 }
 0x28f   :  { %v10673_v44 = vadd.f32 %v8581_v32, %v8580_v22 }
 0x290   :  { %v10675_v54 = vpop.f32.mrf.mxu1  ;;  %v10677_v56 = vpop.f32.mrf.mxu0 }
 0x291   :  { %12634 = vst [vmem:[#allocation30_spill] sm:$0xff] %v10673_v44  ;;  %12635 = vst [vmem:[#allocation31_spill] sm:$0xff] %v10675_v54 }
 0x292   :  { %v10679_v3 = vpop.f32.mrf.mxu1  ;;  %v10681_v8 = vpop.f32.mrf.mxu0 }
 0x293   :  { %12636 = vst [vmem:[#allocation32_spill] sm:$0xff] %v10679_v3 }
 0x294   :  { %v8586_v10 = vpop.f32.mrf.mxu1  ;;  %v10683_v16 = vpop.f32.mrf.mxu0 }
 0x296   :  { %v8587_v13 = vpop.f32.mrf.mxu1  ;;  %v10685_v0 = vpop.f32.mrf.mxu0 }
 0x297   :  { %v10687_v60 = vadd.f32 %v8587_v13, %v8586_v10 }
 0x298   :  { %v10689_v59 = vpop.f32.mrf.mxu1  ;;  %v10691_v22 = vpop.f32.mrf.mxu0 }
 0x299   :  { %12637 = vst [vmem:[#allocation33_spill] sm:$0xff] %v10687_v60  ;;  %12638 = vst [vmem:[#allocation34_spill] sm:$0xff] %v10689_v59 }
 0x29a   :  { %v10693_v32 = vpop.f32.mrf.mxu1  ;;  %v10695_v44 = vpop.f32.mrf.mxu0 }
 0x29b   :  { %12639 = vst [vmem:[#allocation35_spill] sm:$0xff] %v10693_v32 }
 0x29c   :  { %v8592_v54 = vpop.f32.mrf.mxu1  ;;  %v10697_v3 = vpop.f32.mrf.mxu0 }
 0x29e   :  { %v8593_v47 = vpop.f32.mrf.mxu1  ;;  %v10699_v51 = vpop.f32.mrf.mxu0 }
 0x29f   :  { %v10701_v48 = vadd.f32 %v8593_v47, %v8592_v54 }
 0x2a0   :  { %v10703_v35 = vpop.f32.mrf.mxu1  ;;  %v10705_v10 = vpop.f32.mrf.mxu0 }
 0x2a1   :  { %12640 = vst [vmem:[#allocation36_spill] sm:$0xff] %v10701_v48  ;;  %12641 = vst [vmem:[#allocation37_spill] sm:$0xff] %v10703_v35 }
 0x2a2   :  { %12642 = vst [vmem:[#allocation38_spill] sm:$0xff] %v10705_v10  ;;  %v10707_v13 = vpop.f32.mrf.mxu1  ;;  %v10709_v60 = vpop.f32.mrf.mxu0 }
 0x2a3   :  { %12643 = vst [vmem:[#allocation39_spill] sm:$0xff] %v10707_v13  ;;  %12644 = vst [vmem:[#allocation40_spill] sm:$0xff] %v10709_v60  ;;  %v8619_v13 = vadd.f32 %v10611_v28, %v10607_v26  ;;  %v8625_v60 = vadd.f32 %v10625_v40, %v10621_v38 }
 0x2a4   :  { %v10711_v59 = vpop.f32.mrf.mxu0  ;;  %v8726_v32 = vpop.f32.mrf.mxu1 }
 0x2a5   :  { %12645 = vst [vmem:[#allocation41_spill] sm:$0xff] %v10711_v59  ;;  %v8616_v59 = vadd.f32 %v10601_v23, %v10599_v21  ;;  %v8628_v23 = vadd.f32 %v10629_v46, %v10627_v43 }
 0x2a6   :  { %v10713_v24 = vpop.f32.mrf.mxu0  ;;  %v8727_v39 = vpop.f32.mrf.mxu1 }
 0x2a7   :  { %12646 = vst [vmem:[#allocation42_spill] sm:$0xff] %v10713_v24  ;;  %v8622_v24 = vadd.f32 %v10615_v33, %v10613_v31  ;;  %v8728_v17 = vadd.f32 %v8727_v39, %v8726_v32  ;;  %v2424_v26 = vadd.f32 %v8616_v59, %v10520_v29 }
 0x2a8   :  { %v10715_v36 = vpop.f32.mrf.mxu0  ;;  %v8729_v27 = vpop.f32.mrf.mxu1 }
 0x2a9   :  { %12647 = vst [vmem:[#allocation43_spill] sm:$0xff] %v10715_v36  ;;  %v2432_v21 = vadd.f32 %v8622_v24, %v10530_v37  ;;  %v8634_v37 = vadd.f32 %v10643_v57, %v10641_v55 }
 0x2aa   :  { %v8730_v25 = vpop.f32.mrf.mxu1  ;;  %v10717_v47 = vpop.f32.mrf.mxu0 }
 0x2ab   :  { %12648 = vst [vmem:[#allocation44_spill] sm:$0xff] %v10717_v47  ;;  %v8731_v36 = vadd.f32 %v8730_v25, %v8729_v27  ;;  %v2435_v27 = vadd.f32 %v8625_v60, %v10538_v42 }
 0x2ac   :  { %v8732_v54 = vpop.f32.mrf.mxu1  ;;  %v10719_v48 = vpop.f32.mrf.mxu0 }
 0x2ad   :  { %12649 = vst [vmem:[#allocation45_spill] sm:$0xff] %v10719_v48  ;;  %v2427_v48 = vadd.f32 %v8619_v13, %v10528_v34  ;;  %v8631_v34 = vadd.f32 %v10639_v52, %v10635_v49 }
 0x2ae   :  { %v8733_v35 = vpop.f32.mrf.mxu1  ;;  %v10729_v47 = vpop.f32.mrf.mxu0 }
 0x2af   :  { %v8734_v11 = vadd.f32 %v8733_v35, %v8732_v54  ;;  %v10736_v31 = vadd.f32 %v8731_v36, %v2427_v48  ;;  %v10743_v35 = vadd.f32 %v8728_v17, %v2424_v26  ;;  %v2440_v36 = vadd.f32 %v8628_v23, %v10540_v45 }
 0x2b0   :  { %v8735_v19 = vpop.f32.mrf.mxu1  ;;  %v10739_v33 = vpop.f32.mrf.mxu0  ;;  %v2443_v17 = vadd.f32 %v8631_v34, %v10548_v50  ;;  %v2448_v48 = vadd.f32 %v8634_v37, %v10550_v53  ;;  %v8637_v45 = vadd.f32 %v10653_v2, %v10649_v63 }
 0x2b1   :  { %v10745_v29 = vadd.f32 %v8734_v11, %v2432_v21  ;;  %v2751_v42 = vadd.f32 %v10736_v31, %v10743_v35 }
 0x2b2   :  { %v8736_v18 = vpop.f32.mrf.mxu1  ;;  %v10754_v40 = vpop.f32.mrf.mxu0  ;;  %v2451_v13 = vadd.f32 %v8637_v45, %v10558_v58  ;;  %v8640_v45 = vadd.f32 %v10657_v9, %v10655_v7 }
 0x2b3   :  { %v8737_v25 = vadd.f32 %v8736_v18, %v8735_v19  ;;  %v2752_v11 = vadd.f32 %v2751_v42, %v10745_v29 }
 0x2b4   :  { %v8738_v10 = vpop.f32.mrf.mxu1  ;;  %v10766_v59 = vpop.f32.mrf.mxu0 }
 0x2b5   :  { %v10752_v18 = vadd.f32 %v8737_v25, %v2435_v27 }
 0x2b6   :  { %v8739_v28 = vpop.f32.mrf.mxu1  ;;  %v10773_v26 = vpop.f32.mrf.mxu0 }
 0x2b7   :  { %v8740_v39 = vadd.f32 %v8739_v28, %v8738_v10  ;;  %v2753_v52 = vadd.f32 %v2752_v11, %v10752_v18 }
 0x2b8   :  { %v8741_v38 = vpop.f32.mrf.mxu1  ;;  %v10779_v25 = vpop.f32.mrf.mxu0 }
 0x2b9   :  { %v10758_v46 = vadd.f32 %v8740_v39, %v2440_v36  ;;  %v60_v39 = vlaneseq }
 0x2ba   :  { %v8742_v24 = vpop.f32.mrf.mxu1  ;;  %v10781_v37 = vpop.f32.mrf.mxu0 }
 0x2bb   :  { %v8743_v19 = vadd.f32 %v8742_v24, %v8741_v38  ;;  %v2754_v50 = vadd.f32 %v2753_v52, %v10758_v46 }
 0x2bc   :  { %v8744_v43 = vpop.f32.mrf.mxu1 }
 0x2bd   :  { %v10764_v55 = vadd.f32 %v8743_v19, %v2443_v17  ;;  %v10783_v19 = vand.u32 127, %v60_v39  ;;  %v10785_v17 = vpop.f32.mrf.mxu0 }
 0x2be   :  { %v8745_v49 = vpop.f32.mrf.mxu1 }
 0x2bf   :  { %v8746_v57 = vadd.f32 %v8745_v49, %v8744_v43  ;;  %v2755_v53 = vadd.f32 %v2754_v50, %v10764_v55  ;;  %vm62_vm0 = vcmp.lt.s32.totalorder %v10783_v19, 64 }
 0x2c0   :  { %v8747_v60 = vpop.f32.mrf.mxu1 }
 0x2c1   :  { %v10769_v32 = vadd.f32 %v8746_v57, %v2448_v48  ;;  %v8643_v48 = vadd.f32 %v10667_v20, %v10663_v15  ;;  %v8531_v57 = vadd.f32 %v10570_v1, %v10562_v62  ;;  %v8537_v62 = vadd.f32 %v10582_v6, %v10574_v5 }
 0x2c2   :  { %v8748_v10 = vpop.f32.mrf.mxu1  ;;  %v2456_v1 = vadd.f32 %v8640_v45, %v10560_v61 }
 0x2c3   :  { %v8749_v54 = vadd.f32 %v8748_v10, %v8747_v60  ;;  %v2756_v2 = vadd.f32 %v2755_v53, %v10769_v32  ;;  %v8646_v60 = vadd.f32 %v10671_v41, %v10669_v30  ;;  %v10798_v53 = vpop.f32.mrf.mxu0  ;;  %v2459_v20 = vadd.f32 %v8643_v48, %v8531_v57 }
 0x2c4   :  { %v8750_v63 = vpop.f32.mrf.mxu1 }
 0x2c5   :  { %v10776_v28 = vadd.f32 %v8749_v54, %v2451_v13  ;;  %v8649_v13 = vadd.f32 %v10681_v8, %v10677_v56  ;;  %v2464_v41 = vadd.f32 %v8646_v60, %v10572_v4  ;;  %v8652_v56 = vadd.f32 %v10685_v0, %v10683_v16 }
 0x2c6   :  { %v8751_v21 = vpop.f32.mrf.mxu1  ;;  %v8543_v4 = vadd.f32 %v10591_v14, %v10586_v12  ;;  %v8658_v0 = vadd.f32 %v10699_v51, %v10697_v3  ;;  %v12651_v14 = vld [vmem:[#allocation12_spill] sm:$0xff] }
 0x2c7   :  { %v2757_v23 = vadd.f32 %v2756_v2, %v10776_v28  ;;  %v8752_v54 = vadd.f32 %v8751_v21, %v8750_v63  ;;  %v2467_v63 = vadd.f32 %v8649_v13, %v8537_v62  ;;  %v10810_v21 = vpop.f32.mrf.mxu0 }
 0x2c8   :  { %v8753_v27 = vpop.f32.mrf.mxu1  ;;  %v2480_v51 = vadd.f32 %v8658_v0, %v12651_v14  ;;  %v12657_v14 = vld [vmem:[#allocation44_spill] sm:$0xff] }
 0x2c9   :  { %v2758_v38 = vrot.slane %v2757_v23, 4  ;;  %v10814_v5 = vadd.f32 %v8752_v54, %v2456_v1 }
 0x2ca   :  { %v8754_v34 = vpop.f32.mrf.mxu1 }
 0x2cb   :  { %v2759_v58 = vadd.f32 %v2758_v38, %v2757_v23  ;;  %v8755_v50 = vadd.f32 %v8754_v34, %v8753_v27  ;;  %v8655_v27 = vadd.f32 %v10695_v44, %v10691_v22  ;;  %v12650_v38 = vld [vmem:[#allocation11_spill] sm:$0xff]  ;;  %v10827_v22 = vpop.f32.mrf.mxu0 }
 0x2cc   :  { %v8756_v24 = vpop.f32.mrf.mxu1  ;;  %v2472_v34 = vadd.f32 %v8652_v56, %v12650_v38 }
 0x2cd   :  { %v2760_v36 = vrot.slane %v2759_v58, 2  ;;  %v10808_v8 = vadd.f32 %v8755_v50, %v2459_v20  ;;  %v10838_v57 = vpop.f32.mrf.mxu0  ;;  %v12654_v50 = vld [vmem:[#allocation13_spill] sm:$0xff] }
 0x2ce   :  { %v8757_v42 = vpop.f32.mrf.mxu1 }
 0x2cf   :  { %v2761_v43 = vadd.f32 %v2760_v36, %v2759_v58  ;;  %v8758_v7 = vadd.f32 %v8757_v42, %v8756_v24  ;;  %v2891_v39 = vadd.f32 %v10808_v8, %v10814_v5  ;;  %v2475_v36 = vadd.f32 %v8655_v27, %v8543_v4  ;;  %v10846_v1 = vpop.f32.mrf.mxu0 }
 0x2d0   :  { %v8759_v11 = vpop.f32.mrf.mxu1 }
 0x2d1   :  { %v2762_v49 = vrot.slane %v2761_v43, 1  ;;  %v10816_v61 = vadd.f32 %v8758_v7, %v2464_v41 }
 0x2d2   :  { %v8760_v52 = vpop.f32.mrf.mxu1 }
 0x2d3   :  { %v2763_v10 = vadd.f32 %v2762_v49, %v2761_v43  ;;  %v8761_v2 = vadd.f32 %v8760_v52, %v8759_v11  ;;  %v2892_v42 = vadd.f32 %v2891_v39, %v10816_v61  ;;  %v12652_v43 = vld [vmem:[#allocation38_spill] sm:$0xff]  ;;  %v12653_v11 = vld [vmem:[#allocation40_spill] sm:$0xff] }
 0x2d4   :  { %v8762_v15 = vpop.f32.mrf.mxu1  ;;  %v8661_v48 = vadd.f32 %v12653_v11, %v12652_v43  ;;  %v12658_v43 = vld [vmem:[#allocation41_spill] sm:$0xff]  ;;  %v12659_v11 = vld [vmem:[#allocation42_spill] sm:$0xff] }
 0x2d5   :  { %v2764_v9 = vsel %vm62_vm0, %v2763_v10, 0.0  ;;  %v10825_v58 = vadd.f32 %v8761_v2, %v2467_v63 }
 0x2d6   :  { %v8763_v30 = vpop.f32.mrf.mxu1  ;;  %2765 = vadd.xlane.f32.xlu0 %v2764_v9 }
 0x2d7   :  { %v8764_v6 = vadd.f32 %v8763_v30, %v8762_v15  ;;  %v2893_v49 = vadd.f32 %v2892_v42, %v10825_v58  ;;  %v12656_v42 = vld [vmem:[#allocation43_spill] sm:$0xff] }
 0x2d8   :  { %v8765_v23 = vpop.f32.mrf.mxu1 }
 0x2d9   :  { %v10830_v12 = vadd.f32 %v8764_v6, %v2472_v34 }
 0x2da   :  { %v8766_v16 = vpop.f32.mrf.mxu1  ;;  %2767 = vadd.xlane.f32.xlu0 %v2763_v10  ;;  %v12655_v10 = vld [vmem:[#allocation14_spill] sm:$0xff] }
 0x2db   :  { %v8767_v44 = vadd.f32 %v8766_v16, %v8765_v23  ;;  %v8549_v13 = vadd.f32 %v12655_v10, %v12654_v50  ;;  %v2894_v15 = vadd.f32 %v2893_v49, %v10830_v12  ;;  %v10852_v23 = vpop.f32.mrf.mxu0  ;;  %v12662_v10 = vld [vmem:[#allocation45_spill] sm:$0xff] }
 0x2dc   :  { %v8768_v24 = vpop.f32.mrf.mxu1 }
 0x2dd   :  { %v10836_v45 = vadd.f32 %v8767_v44, %v2475_v36  ;;  %v2483_v7 = vadd.f32 %v8661_v48, %v8549_v13  ;;  %v10854_v16 = vpop.f32.mrf.mxu0  ;;  %v8664_v48 = vadd.f32 %v12659_v11, %v12658_v43  ;;  %v8670_v13 = vadd.f32 %v10729_v47, %v12662_v10  ;;  %v12665_v43 = vld [vmem:[#allocation15_spill] sm:$0xff] }
 0x2de   :  { %v8769_v3 = vpop.f32.mrf.mxu1 }
 0x2df   :  { %v8770_v52 = vadd.f32 %v8769_v3, %v8768_v24  ;;  %v2895_v9 = vadd.f32 %v2894_v15, %v10836_v45  ;;  %v10856_v24 = vpop.f32.mrf.mxu0  ;;  %v2488_v11 = vadd.f32 %v8664_v48, %v12665_v43  ;;  %v12671_v43 = vld [vmem:[#allocation25_spill] sm:$0xff] }
 0x2e0   :  { %v8771_v60 = vpop.f32.mrf.mxu1 }
 0x2e1   :  { %v10843_v20 = vadd.f32 %v8770_v52, %v2480_v51  ;;  %v8667_v51 = vadd.f32 %v12657_v14, %v12656_v42  ;;  %v12660_v52 = vld [vmem:[#allocation16_spill] sm:$0xff] }
 0x2e2   :  { %v8772_v54 = vpop.f32.mrf.mxu1  ;;  %v12664_v42 = vld [vmem:[#allocation20_spill] sm:$0xff] }
 0x2e3   :  { %v8773_v62 = vadd.f32 %v8772_v54, %v8771_v60  ;;  %v2896_v41 = vadd.f32 %v2895_v9, %v10843_v20  ;;  %v12661_v60 = vld [vmem:[#allocation17_spill] sm:$0xff]  ;;  %v10868_v9 = vpop.f32.mrf.mxu0 }
 0x2e4   :  { %v8774_v30 = vpop.f32.mrf.mxu1  ;;  %v8555_v50 = vadd.f32 %v12661_v60, %v12660_v52  ;;  %v12667_v52 = vld [vmem:[#allocation22_spill] sm:$0xff]  ;;  %v12668_v60 = vld [vmem:[#allocation23_spill] sm:$0xff] }
 0x2e5   :  { %v10849_v56 = vadd.f32 %v8773_v62, %v2483_v7  ;;  %v8673_v7 = vadd.f32 %v10754_v40, %v10739_v33  ;;  %v8676_v33 = vadd.f32 %v10773_v26, %v10766_v59  ;;  %v8682_v59 = vadd.f32 %v10798_v53, %v10785_v17 }
 0x2e6   :  { %v8775_v2 = vpop.f32.mrf.mxu1  ;;  %v8685_v53 = vadd.f32 %v10827_v22, %v10810_v21 }
 0x2e7   :  { %v2897_v63 = vadd.f32 %v2896_v41, %v10849_v56  ;;  %v2491_v41 = vadd.f32 %v8667_v51, %v8555_v50  ;;  %v8567_v50 = vadd.f32 %v12668_v60, %v12667_v52 }
 0x2e8   :  { %v8777_v27 = vpop.f32.mrf.mxu1 }
 0x2e9   :  { %v2898_v6 = vrot.slane %v2897_v63, 4 }
 0x2ea   :  { %v8778_v4 = vpop.f32.mrf.mxu1 }
 0x2eb   :  { %v2899_v0 = vadd.f32 %v2898_v6, %v2897_v63  ;;  %v8779_v15 = vadd.f32 %v8778_v4, %v8777_v27  ;;  %v8776_v63 = vadd.f32 %v8775_v2, %v8774_v30  ;;  %v12666_v27 = vld [vmem:[#allocation18_spill] sm:$0xff]  ;;  %v8695_v2 = vpop.f32.mrf.mxu0 }
 0x2ec   :  { %v8780_v38 = vpop.f32.mrf.mxu1  ;;  %v2496_v4 = vadd.f32 %v8670_v13, %v12666_v27 }
 0x2ed   :  { %v2900_v34 = vrot.slane %v2899_v0, 2  ;;  %v10878_v40 = vadd.f32 %v8779_v15, %v2491_v41  ;;  %v10882_v51 = vadd.f32 %v8776_v63, %v2488_v11  ;;  %v12670_v63 = vld [vmem:[#allocation24_spill] sm:$0xff]  ;;  %v12672_v11 = vld [vmem:[#allocation26_spill] sm:$0xff] }
 0x2ee   :  { %v8781_v39 = vpop.f32.mrf.mxu1 }
 0x2ef   :  { %v2901_v44 = vadd.f32 %v2900_v34, %v2899_v0  ;;  %v8782_v6 = vadd.f32 %v8781_v39, %v8780_v38  ;;  %v12663_v34 = vld [vmem:[#allocation19_spill] sm:$0xff]  ;;  %v8679_v39 = vadd.f32 %v10781_v37, %v10779_v25  ;;  %v3031_v10 = vadd.f32 %v10878_v40, %v10882_v51  ;;  %v8696_v37 = vpop.f32.mrf.mxu0 }
 0x2f0   :  { %v8783_v36 = vpop.f32.mrf.mxu1  ;;  %v8561_v14 = vadd.f32 %v12664_v42, %v12663_v34 }
 0x2f1   :  { %v2902_v3 = vrot.slane %v2901_v44, 1  ;;  %v8698_v42 = vpop.f32.mrf.mxu0 }
 0x2f2   :  { %v8784_v49 = vpop.f32.mrf.mxu1  ;;  %v2499_v30 = vadd.f32 %v8673_v7, %v8561_v14  ;;  %v2507_v7 = vadd.f32 %v8679_v39, %v8567_v50 }
 0x2f3   :  { %v2903_v54 = vadd.f32 %v2902_v3, %v2901_v44  ;;  %v8785_v44 = vadd.f32 %v8784_v49, %v8783_v36  ;;  %v10884_v3 = vadd.f32 %v8782_v6, %v2496_v4  ;;  %v12669_v36 = vld [vmem:[#allocation21_spill] sm:$0xff]  ;;  %v2512_v6 = vadd.f32 %v8682_v59, %v12670_v63  ;;  %v8699_v21 = vpop.f32.mrf.mxu0 }
 0x2f4   :  { %v8786_v62 = vpop.f32.mrf.mxu1  ;;  %v2504_v49 = vadd.f32 %v8676_v33, %v12669_v36 }
 0x2f5   :  { %v2904_v0 = vsel %vm62_vm0, %v2903_v54, 0.0  ;;  %v10893_v13 = vadd.f32 %v8785_v44, %v2499_v30  ;;  %v8701_v50 = vpop.f32.mrf.mxu0 }
 0x2f6   :  { %v8787_v47 = vpop.f32.mrf.mxu1  ;;  %2905 = vadd.xlane.f32.xlu1 %v2904_v0 }
 0x2f7   :  { %v8788_v48 = vadd.f32 %v8787_v47, %v8786_v62  ;;  %v3032_v62 = vadd.f32 %v3031_v10, %v10884_v3  ;;  %v8573_v47 = vadd.f32 %v12672_v11, %v12671_v43  ;;  %v8702_v10 = vpop.f32.mrf.mxu0  ;;  %v12674_v43 = vld [vmem:[#allocation29_spill] sm:$0xff] }
 0x2f8   :  { %v8789_v38 = vpop.f32.mrf.mxu1 }
 0x2f9   :  { %v10896_v41 = vadd.f32 %v8788_v48, %v2504_v49  ;;  %v2515_v44 = vadd.f32 %v8685_v53, %v8573_v47  ;;  %v8704_v63 = vpop.f32.mrf.mxu0  ;;  %v8694_v47 = vadd.f32 %v10868_v9, %v10856_v24  ;;  %v12678_v24 = vld [vmem:[#allocation30_spill] sm:$0xff] }
 0x2fa   :  { %v8790_v26 = vpop.f32.mrf.mxu1  ;;  %2907 = vadd.xlane.f32.xlu1 %v2903_v54  ;;  %v3033_v54 = vadd.f32 %v3032_v62, %v10893_v13 }
 0x2fb   :  { %v8791_v25 = vadd.f32 %v8790_v26, %v8789_v38  ;;  %v2528_v9 = vadd.f32 %v8694_v47, %v12678_v24 }
 0x2fc   :  { %v8792_v15 = vpop.f32.mrf.mxu1  ;;  %v3034_v27 = vadd.f32 %v3033_v54, %v10896_v41  ;;  %v8688_v54 = vadd.f32 %v10846_v1, %v10838_v57  ;;  %v12675_v57 = vld [vmem:[#allocation31_spill] sm:$0xff]  ;;  %v12676_v1 = vld [vmem:[#allocation32_spill] sm:$0xff] }
 0x2fd   :  { %v10902_v0 = vadd.f32 %v8791_v25, %v2507_v7 }
 0x2fe   :  { %v8793_v17 = vpop.f32.mrf.mxu1 }
 0x2ff   :  { %v8794_v34 = vadd.f32 %v8793_v17, %v8792_v15  ;;  %v3035_v30 = vadd.f32 %v3034_v27, %v10902_v0  ;;  %v8691_v17 = vadd.f32 %v10854_v16, %v10852_v23  ;;  %v8585_v16 = vadd.f32 %v12676_v1, %v12675_v57 }
 0x300   :  { %v8795_v14 = vpop.f32.mrf.mxu1 }
 0x301   :  { %v10907_v4 = vadd.f32 %v8794_v34, %v2512_v6 }
 0x302   :  { %v8796_v33 = vpop.f32.mrf.mxu1 }
 0x303   :  { %v8797_v38 = vadd.f32 %v8796_v33, %v8795_v14  ;;  %v3036_v39 = vadd.f32 %v3035_v30, %v10907_v4  ;;  %v12673_v14 = vld [vmem:[#allocation28_spill] sm:$0xff]  ;;  %v8705_v30 = vpop.f32.mrf.mxu0 }
 0x304   :  { %v8798_v22 = vpop.f32.mrf.mxu1  ;;  %v8579_v11 = vadd.f32 %v12674_v43, %v12673_v14  ;;  %v12680_v43 = vld [vmem:[#allocation35_spill] sm:$0xff] }
 0x305   :  { %v10911_v48 = vadd.f32 %v8797_v38, %v2515_v44  ;;  %v8697_v44 = vadd.f32 %v8696_v37, %v8695_v2 }
 0x306   :  { %v8799_v52 = vpop.f32.mrf.mxu1 }
 0x307   :  { %v3037_v60 = vadd.f32 %v3036_v39, %v10911_v48  ;;  %v2523_v39 = vadd.f32 %v8691_v17, %v8579_v11  ;;  %v8706_v11 = vadd.f32 %v8705_v30, %v8704_v63 }
 0x308   :  { %v8801_v59 = vpop.f32.mrf.mxu1 }
 0x309   :  { %v3038_v26 = vrot.slane %v3037_v60, 4 }
 0x30a   :  { %v8802_v36 = vpop.f32.mrf.mxu1 }
 0x30b   :  { %v3039_v49 = vadd.f32 %v3038_v26, %v3037_v60  ;;  %v8803_v27 = vadd.f32 %v8802_v36, %v8801_v59  ;;  %v8800_v60 = vadd.f32 %v8799_v52, %v8798_v22  ;;  %v8700_v59 = vadd.f32 %v8699_v21, %v8698_v42  ;;  %v8707_v22 = vpop.f32.mrf.mxu0 }
 0x30c   :  { %v8804_v25 = vpop.f32.mrf.mxu1  ;;  %v2531_v36 = vadd.f32 %v8697_v44, %v8585_v16  ;;  %v12683_v16 = vld [vmem:[#allocation37_spill] sm:$0xff] }
 0x30d   :  { %v3040_v15 = vrot.slane %v3039_v49, 2  ;;  %v10928_v2 = vadd.f32 %v8803_v27, %v2523_v39 }
 0x30e   :  { %v8805_v7 = vpop.f32.mrf.mxu1 }
 0x30f   :  { %v3041_v62 = vadd.f32 %v3040_v15, %v3039_v49  ;;  %v8806_v26 = vadd.f32 %v8805_v7, %v8804_v25  ;;  %v12677_v49 = vld [vmem:[#allocation27_spill] sm:$0xff]  ;;  %v8703_v25 = vadd.f32 %v8702_v10, %v8701_v50 }
 0x310   :  { %v8807_v6 = vpop.f32.mrf.mxu1  ;;  %v2520_v15 = vadd.f32 %v8688_v54, %v12677_v49  ;;  %v12684_v49 = vld [vmem:[#allocation39_spill] sm:$0xff] }
 0x311   :  { %v3042_v53 = vrot.slane %v3041_v62, 1 }
 0x312   :  { %v8808_v34 = vpop.f32.mrf.mxu1  ;;  %v10930_v7 = vadd.f32 %v8800_v60, %v2520_v15  ;;  %v8597_v15 = vadd.f32 %v12684_v49, %v12683_v16 }
 0x313   :  { %v3043_v33 = vadd.f32 %v3042_v53, %v3041_v62  ;;  %v8809_v37 = vadd.f32 %v8808_v34, %v8807_v6  ;;  %v10932_v62 = vadd.f32 %v8806_v26, %v2528_v9  ;;  %v12679_v53 = vld [vmem:[#allocation34_spill] sm:$0xff]  ;;  %v8708_v34 = vpop.f32.mrf.mxu0 }
 0x314   :  { %v8810_v38 = vpop.f32.mrf.mxu1  ;;  %v8591_v54 = vadd.f32 %v12680_v43, %v12679_v53  ;;  %v3171_v42 = vadd.f32 %v10928_v2, %v10930_v7  ;;  %v8709_v63 = vadd.f32 %v8708_v34, %v8707_v22  ;;  %v9736_v34 = vld [vmem:[%s12581_s3 + $0x38] sm:$0xff]  }
 0x315   :  { %3047 = vadd.xlane.f32.xlu1 %v3043_v33  ;;  %v3044_v23 = vsel %vm62_vm0, %v3043_v33, 0.0  ;;  %v10939_v21 = vadd.f32 %v8809_v37, %v2531_v36  ;;  %9374 = vmatprep.subr.bf16.mxu0 %v9736_v34 }
 0x316   :  { %v8811_v14 = vpop.f32.mrf.mxu1  ;;  %3045 = vadd.xlane.f32.xlu0 %v3044_v23  ;;  %v12681_v23 = vld [vmem:[#allocation33_spill] sm:$0xff]  ;;  %v2539_v10 = vadd.f32 %v8703_v25, %v8591_v54  ;;  %v3172_v27 = vadd.f32 %v3171_v42, %v10932_v62  ;;  %9375 = vmatpush3.bf16.msra.mxu0 %v9736_v34 }
 0x317   :  { %v8812_v17 = vadd.f32 %v8811_v14, %v8810_v38  ;;  %v2536_v47 = vadd.f32 %v8700_v59, %v12681_v23  ;;  %v12682_v38 = vld [vmem:[#allocation36_spill] sm:$0xff]  ;;  %v2547_v59 = vadd.f32 %v8709_v63, %v8597_v15 }
 0x318   :  { %v8813_v52 = vpop.f32.mrf.mxu1  ;;  %v2544_v39 = vadd.f32 %v8706_v11, %v12682_v38  ;;  %v3173_v30 = vadd.f32 %v3172_v27, %v10939_v21 }
 0x319   :  { %v10942_v44 = vadd.f32 %v8812_v17, %v2536_v47 }
 0x31a   :  { %v8814_v33 = vpop.f32.mrf.mxu1 }
 0x31b   :  { %v8815_v6 = vadd.f32 %v8814_v33, %v8813_v52  ;;  %v3174_v14 = vadd.f32 %v3173_v30, %v10942_v44 }
 0x31c   :  { %v8816_v50 = vpop.f32.mrf.mxu1 }
 0x31d   :  { %v10946_v26 = vadd.f32 %v8815_v6, %v2539_v10 }
 0x31e   :  { %v8817_v60 = vpop.f32.mrf.mxu1 }
 0x31f   :  { %v8818_v57 = vadd.f32 %v8817_v60, %v8816_v50  ;;  %v3175_v37 = vadd.f32 %v3174_v14, %v10946_v26 }
 0x320   :  { %v8819_v1 = vpop.f32.mrf.mxu1 }
 0x321   :  { %v10951_v24 = vadd.f32 %v8818_v57, %v2544_v39 }
 0x322   :  { %v8820_v9 = vpop.f32.mrf.mxu1 }
 0x323   :  { %v8821_v36 = vadd.f32 %v8820_v9, %v8819_v1  ;;  %v3176_v22 = vadd.f32 %v3175_v37, %v10951_v24 }
 0x325   :  { %v10955_v52 = vadd.f32 %v8821_v36, %v2547_v59 }
 0x327   :  { %v3177_v25 = vadd.f32 %v3176_v22, %v10955_v52 }
 0x329   :  { %v3178_v17 = vrot.slane %v3177_v25, 4 }
 0x32b   :  { %v3179_v53 = vadd.f32 %v3178_v17, %v3177_v25 }
 0x32d   :  { %v3180_v43 = vrot.slane %v3179_v53, 2 }
 0x32f   :  { %v3181_v54 = vadd.f32 %v3180_v43, %v3179_v53 }
 0x331   :  { %v3182_v11 = vrot.slane %v3181_v54, 1 }
 0x333   :  { %v3183_v33 = vadd.f32 %v3182_v11, %v3181_v54 }
 0x335   :  { %3187 = vadd.xlane.f32.xlu1 %v3183_v33  ;;  %v3184_v23 = vsel %vm62_vm0, %v3183_v33, 0.0 }
 0x336   :  { %3185 = vadd.xlane.f32.xlu0 %v3184_v23 }
 0x35f   :  { %v2766_v47 = vpop.xlane.xlu0 %2765 }
 0x363   :  { %v2768_v42 = vpop.xlane.xlu0 %2767 }
 0x364   :  { %v2769_v6 = vsub.f32 %v2768_v42, %v2766_v47 }
 0x366   :  { %v2770_v50 = vsel %vm62_vm0, %v2766_v47, %v2769_v6 }
 0x367   :  { %v2771_v10 = vmul.f32 0.00024414063, %v2770_v50 }
 0x369   :  { %v10966_v27 = vsub.f32 %v10743_v35, %v2771_v10  ;;  %v10969_v38 = vsub.f32 %v10736_v31, %v2771_v10  ;;  %v10972_v39 = vsub.f32 %v10745_v29, %v2771_v10  ;;  %v10975_v60 = vsub.f32 %v10752_v18, %v2771_v10 }
 0x36a   :  { %v10982_v57 = vsub.f32 %v10758_v46, %v2771_v10  ;;  %v10987_v1 = vsub.f32 %v10764_v55, %v2771_v10  ;;  %v10992_v16 = vsub.f32 %v10769_v32, %v2771_v10  ;;  %v10997_v46 = vsub.f32 %v10776_v28, %v2771_v10 }
 0x36b   :  { %v2780_v63 = vmul.f32 %v10966_v27, %v10966_v27  ;;  %v2781_v30 = vmul.f32 %v10969_v38, %v10969_v38  ;;  %v2782_v35 = vmul.f32 %v10972_v39, %v10972_v39  ;;  %v2783_v29 = vmul.f32 %v10975_v60, %v10975_v60 }
 0x36c   :  { %v2784_v49 = vmul.f32 %v10982_v57, %v10982_v57  ;;  %v2785_v14 = vmul.f32 %v10987_v1, %v10987_v1  ;;  %v2786_v55 = vmul.f32 %v10992_v16, %v10992_v16  ;;  %v2787_v37 = vmul.f32 %v10997_v46, %v10997_v46 }
 0x36d   :  { %v2788_v31 = vadd.f32 %v2781_v30, %v2780_v63 }
 0x36f   :  { %v2789_v18 = vadd.f32 %v2788_v31, %v2782_v35 }
 0x371   :  { %v2790_v15 = vadd.f32 %v2789_v18, %v2783_v29 }
 0x373   :  { %v2791_v9 = vadd.f32 %v2790_v15, %v2784_v49 }
 0x375   :  { %v2792_v59 = vadd.f32 %v2791_v9, %v2785_v14 }
 0x377   :  { %v2793_v32 = vadd.f32 %v2792_v59, %v2786_v55 }
 0x379   :  { %v2794_v36 = vadd.f32 %v2793_v32, %v2787_v37  ;;  %v9737_v37 = vld [vmem:[%s12581_s3 + $0x30] sm:$0xff]  }
 0x37a   :  { %v9739_v32 = vld [vmem:[%s12581_s3 + $0xb0] sm:$0xff]   ;;  %9376 = vmatprep.subr.bf16.mxu0 %v9737_v37 }
 0x37b   :  { %v2795_v22 = vrot.slane %v2794_v36, 4  ;;  %9377 = vmatpush3.bf16.msra.mxu0 %v9737_v37 }
 0x37d   :  { %v2796_v25 = vadd.f32 %v2795_v22, %v2794_v36  ;;  %v9740_v36 = vld [vmem:[%s12581_s3 + $0x28] sm:$0xff]  }
 0x37e   :  { %9378 = vmatprep.subr.bf16.mxu0 %v9740_v36 }
 0x37f   :  { %v2906_v17 = vpop.xlane.xlu1 %2905  ;;  %v2797_v53 = vrot.slane %v2796_v25, 2  ;;  %9379 = vmatpush3.bf16.msra.mxu0 %v9740_v36 }
 0x381   :  { %v2798_v43 = vadd.f32 %v2797_v53, %v2796_v25  ;;  %v9742_v53 = vld [vmem:[%s12581_s3 + $0x20] sm:$0xff]  }
 0x382   :  { %9380 = vmatprep.subr.bf16.mxu0 %v9742_v53 }
 0x383   :  { %v2908_v28 = vpop.xlane.xlu1 %2907  ;;  %v2799_v54 = vrot.slane %v2798_v43, 1  ;;  %9381 = vmatpush3.bf16.msra.mxu0 %v9742_v53  ;;  %v9748_v53 = vld [vmem:[%s12581_s3 + $0x8] sm:$0xff]  }
 0x384   :  { %v2909_v11 = vsub.f32 %v2908_v28, %v2906_v17 }
 0x385   :  { %v2800_v33 = vadd.f32 %v2799_v54, %v2798_v43 }
 0x386   :  { %v2910_v23 = vsel %vm62_vm0, %v2906_v17, %v2909_v11  ;;  %v9741_v17 = vld [vmem:[%s12581_s3 + $0xa8] sm:$0xff]  }
 0x387   :  { %v2911_v47 = vmul.f32 0.00024414063, %v2910_v23  ;;  %2804 = vadd.xlane.f32.xlu1 %v2800_v33  ;;  %v2801_v42 = vsel %vm62_vm0, %v2800_v33, 0.0  ;;  %v9743_v23 = vld [vmem:[%s12581_s3 + $0xa0] sm:$0xff]  }
 0x388   :  { %2802 = vadd.xlane.f32.xlu0 %v2801_v42  ;;  %v9744_v42 = vld [vmem:[%s12581_s3 + $0x18] sm:$0xff]  }
 0x389   :  { %v11010_v6 = vsub.f32 %v10814_v5, %v2911_v47  ;;  %v11013_v34 = vsub.f32 %v10808_v8, %v2911_v47  ;;  %v11016_v50 = vsub.f32 %v10816_v61, %v2911_v47  ;;  %v11019_v10 = vsub.f32 %v10825_v58, %v2911_v47  ;;  %9382 = vmatprep.subr.bf16.mxu0 %v9744_v42 }
 0x38a   :  { %v11026_v35 = vsub.f32 %v10830_v12, %v2911_v47  ;;  %v11031_v31 = vsub.f32 %v10836_v45, %v2911_v47  ;;  %v11036_v29 = vsub.f32 %v10843_v20, %v2911_v47  ;;  %v11041_v12 = vsub.f32 %v10849_v56, %v2911_v47  ;;  %v9738_v56 = vld [vmem:[%s12581_s3 + $0xb8] sm:$0xff]   ;;  %9383 = vmatpush3.bf16.msra.mxu0 %v9744_v42 }
 0x38b   :  { %v2920_v63 = vmul.f32 %v11010_v6, %v11010_v6  ;;  %v2921_v30 = vmul.f32 %v11013_v34, %v11013_v34  ;;  %v2922_v5 = vmul.f32 %v11016_v50, %v11016_v50  ;;  %v2923_v61 = vmul.f32 %v11019_v10, %v11019_v10  ;;  %9470 = vmatprep.subr.bf16.mxu1 %v9738_v56 }
 0x38c   :  { %v2924_v18 = vmul.f32 %v11026_v35, %v11026_v35  ;;  %v2925_v15 = vmul.f32 %v11031_v31, %v11031_v31  ;;  %v2926_v45 = vmul.f32 %v11036_v29, %v11036_v29  ;;  %v2927_v55 = vmul.f32 %v11041_v12, %v11041_v12  ;;  %9471 = vmatpush3.bf16.msra.mxu1 %v9738_v56 }
 0x38d   :  { %v2928_v8 = vadd.f32 %v2921_v30, %v2920_v63  ;;  %9472 = vmatprep.subr.bf16.mxu1 %v9739_v32 }
 0x38f   :  { %v2929_v58 = vadd.f32 %v2928_v8, %v2922_v5 }
 0x390   :  { %9473 = vmatpush3.bf16.msra.mxu1 %v9739_v32 }
 0x391   :  { %v2930_v49 = vadd.f32 %v2929_v58, %v2923_v61  ;;  %9474 = vmatprep.subr.bf16.mxu1 %v9741_v17 }
 0x393   :  { %v2931_v14 = vadd.f32 %v2930_v49, %v2924_v18  ;;  %v9745_v18 = vld [vmem:[%s12581_s3 + $0x98] sm:$0xff]   ;;  %v9746_v49 = vld [vmem:[%s12581_s3 + $0x10] sm:$0xff]  }
 0x394   :  { %9475 = vmatpush3.bf16.msra.mxu1 %v9741_v17  ;;  %9384 = vmatprep.subr.bf16.mxu0 %v9746_v49 }
 0x395   :  { %v2932_v9 = vadd.f32 %v2931_v14, %v2925_v15  ;;  %9476 = vmatprep.subr.bf16.mxu1 %v9743_v23  ;;  %9385 = vmatpush3.bf16.msra.mxu0 %v9746_v49 }
 0x396   :  { %9386 = vmatprep.subr.bf16.mxu0 %v9748_v53 }
 0x397   :  { %v2933_v20 = vadd.f32 %v2932_v9, %v2926_v45 }
 0x398   :  { %9477 = vmatpush3.bf16.msra.mxu1 %v9743_v23 }
 0x399   :  { %v2934_v59 = vadd.f32 %v2933_v20, %v2927_v55  ;;  %9478 = vmatprep.subr.bf16.mxu1 %v9745_v18  ;;  %9387 = vmatpush3.bf16.msra.mxu0 %v9748_v53 }
 0x39b   :  { %v2935_v22 = vrot.slane %v2934_v59, 4 }
 0x39c   :  { %9479 = vmatpush3.bf16.msra.mxu1 %v9745_v18 }
 0x39d   :  { %v2936_v25 = vadd.f32 %v2935_v22, %v2934_v59 }
 0x39e   :  { %v3048_v43 = vpop.xlane.xlu1 %3047 }
 0x39f   :  { %v3046_v28 = vpop.xlane.xlu0 %3045  ;;  %v2937_v54 = vrot.slane %v2936_v25, 2 }
 0x3a0   :  { %v3049_v11 = vsub.f32 %v3048_v43, %v3046_v28 }
 0x3a1   :  { %v2938_v33 = vadd.f32 %v2937_v54, %v2936_v25  ;;  %v9750_v54 = vld [vmem:[%s12581_s3] sm:$0xff]  }
 0x3a2   :  { %v3050_v47 = vsel %vm62_vm0, %v3046_v28, %v3049_v11  ;;  %v9751_v11 = vld [vmem:[%s12581_s3 + $0x80] sm:$0xff]   ;;  %9388 = vmatprep.subr.bf16.mxu0 %v9750_v54 }
 0x3a3   :  { %v3051_v63 = vmul.f32 0.00024414063, %v3050_v47  ;;  %v2939_v30 = vrot.slane %v2938_v33, 1  ;;  %9389 = vmatpush3.bf16.msra.mxu0 %v9750_v54 }
 0x3a5   :  { %v2940_v5 = vadd.f32 %v2939_v30, %v2938_v33  ;;  %v11076_v8 = vsub.f32 %v10882_v51, %v3051_v63  ;;  %v11079_v61 = vsub.f32 %v10878_v40, %v3051_v63  ;;  %v11082_v58 = vsub.f32 %v10884_v3, %v3051_v63 }
 0x3a6   :  { %v11093_v40 = vsub.f32 %v10893_v13, %v3051_v63  ;;  %v11100_v14 = vsub.f32 %v10896_v41, %v3051_v63  ;;  %v9747_v13 = vld [vmem:[%s12581_s3 + $0x90] sm:$0xff]   ;;  %v11108_v55 = vsub.f32 %v10902_v0, %v3051_v63  ;;  %v11113_v59 = vsub.f32 %v10907_v4, %v3051_v63 }
 0x3a7   :  { %12685 = vst [vmem:[#allocation11_spill] sm:$0xff] %v11079_v61  ;;  %12686 = vst [vmem:[#allocation12_spill] sm:$0xff] %v11082_v58  ;;  %2944 = vadd.xlane.f32.xlu1 %v2940_v5  ;;  %v2941_v51 = vsel %vm62_vm0, %v2940_v5, 0.0  ;;  %v3060_v3 = vmul.f32 %v11076_v8, %v11076_v8  ;;  %v3061_v15 = vmul.f32 %v11079_v61, %v11079_v61  ;;  %9480 = vmatprep.subr.bf16.mxu1 %v9747_v13 }
 0x3a8   :  { %12687 = vst [vmem:[#allocation38_spill] sm:$0xff] %v11093_v40  ;;  %2942 = vadd.xlane.f32.xlu0 %v2941_v51  ;;  %12688 = vst [vmem:[#allocation40_spill] sm:$0xff] %v11100_v14  ;;  %v3062_v45 = vmul.f32 %v11082_v58, %v11082_v58  ;;  %v3063_v20 = vmul.f32 %v11093_v40, %v11093_v40  ;;  %v3064_v37 = vmul.f32 %v11100_v14, %v11100_v14 }
 0x3a9   :  { %v3068_v9 = vadd.f32 %v3061_v15, %v3060_v3  ;;  %12689 = vst [vmem:[#allocation13_spill] sm:$0xff] %v11108_v55  ;;  %12690 = vst [vmem:[#allocation14_spill] sm:$0xff] %v11113_v59  ;;  %v11118_v32 = vsub.f32 %v10911_v48, %v3051_v63  ;;  %v3065_v0 = vmul.f32 %v11108_v55, %v11108_v55  ;;  %9481 = vmatpush3.bf16.msra.mxu1 %v9747_v13  ;;  %v9749_v48 = vld [vmem:[%s12581_s3 + $0x88] sm:$0xff]  }
 0x3aa   :  { %v3066_v22 = vmul.f32 %v11113_v59, %v11113_v59  ;;  %9482 = vmatprep.subr.bf16.mxu1 %v9749_v48 }
 0x3ab   :  { %v3069_v41 = vadd.f32 %v3068_v9, %v3062_v45  ;;  %12691 = vst [vmem:[#allocation43_spill] sm:$0xff] %v11118_v32  ;;  %v3067_v4 = vmul.f32 %v11118_v32, %v11118_v32 }
 0x3ad   :  { %v3070_v56 = vadd.f32 %v3069_v41, %v3063_v20  ;;  %9483 = vmatpush3.bf16.msra.mxu1 %v9749_v48 }
 0x3ae   :  { %9484 = vmatprep.subr.bf16.mxu1 %v9751_v11 }
 0x3af   :  { %v3071_v36 = vadd.f32 %v3070_v56, %v3064_v37 }
 0x3b1   :  { %v3072_v25 = vadd.f32 %v3071_v36, %v3065_v0  ;;  %9485 = vmatpush3.bf16.msra.mxu1 %v9751_v11 }
 0x3b3   :  { %v3073_v17 = vadd.f32 %v3072_v25, %v3066_v22 }
 0x3b5   :  { %v3074_v43 = vadd.f32 %v3073_v17, %v3067_v4 }
 0x3b7   :  { %v3075_v28 = vrot.slane %v3074_v43, 4 }
 0x3b9   :  { %v3076_v33 = vadd.f32 %v3075_v28, %v3074_v43 }
 0x3bb   :  { %v3077_v23 = vrot.slane %v3076_v33, 2 }
 0x3bd   :  { %v3078_v47 = vadd.f32 %v3077_v23, %v3076_v33 }
 0x3be   :  { %v3188_v42 = vpop.xlane.xlu1 %3187 }
 0x3bf   :  { %v3186_v63 = vpop.xlane.xlu0 %3185  ;;  %v3079_v30 = vrot.slane %v3078_v47, 1 }
 0x3c0   :  { %v3189_v5 = vsub.f32 %v3188_v42, %v3186_v63 }
 0x3c1   :  { %v3080_v18 = vadd.f32 %v3079_v30, %v3078_v47  ;;  %v11187_v47 = vld [vmem:[%s12581_s3 + $0x78] sm:$0xff]  }
 0x3c2   :  { %v3190_v49 = vsel %vm62_vm0, %v3186_v63, %v3189_v5  ;;  %9422 = vmatprep.subr.bf16.mxu0 %v11187_v47 }
 0x3c3   :  { %v3191_v51 = vmul.f32 0.00024414063, %v3190_v49  ;;  %3084 = vadd.xlane.f32.xlu1 %v3080_v18  ;;  %v3081_v3 = vsel %vm62_vm0, %v3080_v18, 0.0 }
 0x3c4   :  { %3082 = vadd.xlane.f32.xlu0 %v3081_v3  ;;  %v11200_v3 = vld [vmem:[%s12579_s1 + $0x8] sm:$0xff] }
 0x3c5   :  { %v11143_v15 = vsub.f32 %v10930_v7, %v3191_v51  ;;  %v11146_v45 = vsub.f32 %v10928_v2, %v3191_v51  ;;  %v11149_v9 = vsub.f32 %v10932_v62, %v3191_v51  ;;  %v11152_v13 = vsub.f32 %v10939_v21, %v3191_v51 }
 0x3c6   :  { %v11159_v37 = vsub.f32 %v10942_v44, %v3191_v51  ;;  %v11164_v56 = vsub.f32 %v10946_v26, %v3191_v51  ;;  %v11169_v0 = vsub.f32 %v10951_v24, %v3191_v51  ;;  %v11174_v44 = vsub.f32 %v10955_v52, %v3191_v51  ;;  %v11195_v51 = vld [vmem:[%s12579_s1] sm:$0xff] }
 0x3c7   :  { %12692 = vst [vmem:[#allocation44_spill] sm:$0xff] %v11143_v15  ;;  %12693 = vst [vmem:[#allocation41_spill] sm:$0xff] %v11146_v45  ;;  %v3200_v20 = vmul.f32 %v11143_v15, %v11143_v15  ;;  %v3201_v41 = vmul.f32 %v11146_v45, %v11146_v45  ;;  %v3202_v7 = vmul.f32 %v11149_v9, %v11149_v9 }
 0x3c8   :  { %12694 = vst [vmem:[#allocation42_spill] sm:$0xff] %v11149_v9  ;;  %12695 = vst [vmem:[#allocation16_spill] sm:$0xff] %v11152_v13  ;;  %v3203_v62 = vmul.f32 %v11152_v13, %v11152_v13  ;;  %v3204_v36 = vmul.f32 %v11159_v37, %v11159_v37  ;;  %v3205_v25 = vmul.f32 %v11164_v56, %v11164_v56 }
 0x3c9   :  { %12696 = vst [vmem:[#allocation17_spill] sm:$0xff] %v11159_v37  ;;  %v3208_v2 = vadd.f32 %v3201_v41, %v3200_v20  ;;  %12697 = vst [vmem:[#allocation45_spill] sm:$0xff] %v11164_v56  ;;  %v3206_v26 = vmul.f32 %v11169_v0, %v11169_v0  ;;  %v3207_v53 = vmul.f32 %v11174_v44, %v11174_v44  ;;  %v2820_v20 = vstv %s2819_s20 }
 0x3ca   :  { %12698 = vst [vmem:[#allocation19_spill] sm:$0xff] %v11169_v0  ;;  %12699 = vst [vmem:[#allocation20_spill] sm:$0xff] %v11174_v44  ;;  %v2840_v41 = vstv %s7148_s21 }
 0x3cb   :  { %v3209_v21 = vadd.f32 %v3208_v2, %v3202_v7  ;;  %v11205_v7 = vld [vmem:[%s12579_s1 + $0x10] sm:$0xff]  ;;  %v11210_v2 = vld [vmem:[%s12579_s1 + $0x18] sm:$0xff] }
 0x3cd   :  { %v3210_v22 = vadd.f32 %v3209_v21, %v3203_v62  ;;  %v2821_v62 = vmul.f32 %v2820_v20, %v11195_v51  ;;  %v2822_v21 = vmul.f32 %v2820_v20, %v11200_v3 }
 0x3cf   :  { %v3211_v4 = vadd.f32 %v3210_v22, %v3204_v36  ;;  %v11217_v36 = vld [vmem:[%s12579_s1 + $0x20] sm:$0xff]  ;;  %v11222_v22 = vld [vmem:[%s12579_s1 + $0x28] sm:$0xff] }
 0x3d1   :  { %v3212_v17 = vadd.f32 %v3211_v4, %v3205_v25  ;;  %v2830_v25 = vstv %s7147_s22  ;;  %v2841_v4 = vmul.f32 %v2840_v41, %v11195_v51 }
 0x3d3   :  { %v3213_v24 = vadd.f32 %v3212_v17, %v3206_v26  ;;  %v2842_v26 = vmul.f32 %v2840_v41, %v11200_v3  ;;  %v2850_v17 = vstv %s7149_s23  ;;  %s7517_s23 = sld [smem:[#allocation7 + $0x3]] }
 0x3d4   :  { %v2851_v44 = vadd.f32 %v2850_v17, %v2841_v4 }
 0x3d5   :  { %v3214_v48 = vadd.f32 %v3213_v24, %v3207_v53  ;;  %v11229_v53 = vld [vmem:[%s12579_s1 + $0x30] sm:$0xff]  ;;  %v11234_v24 = vld [vmem:[%s12579_s1 + $0x38] sm:$0xff]  ;;  %v2852_v0 = vadd.f32 %v2850_v17, %v2842_v26 }
 0x3d7   :  { %v3215_v43 = vrot.slane %v3214_v48, 4 }
 0x3d9   :  { %v3216_v28 = vadd.f32 %v3215_v43, %v3214_v48  ;;  %v2823_v48 = vmul.f32 %v2820_v20, %v11205_v7  ;;  %v2824_v43 = vmul.f32 %v2820_v20, %v11210_v2 }
 0x3db   :  { %v3217_v54 = vrot.slane %v3216_v28, 2  ;;  %v2833_v56 = vadd.f32 %v2830_v25, %v2823_v48  ;;  %v2834_v37 = vadd.f32 %v2830_v25, %v2824_v43 }
 0x3dd   :  { %v3218_v11 = vadd.f32 %v3217_v54, %v3216_v28  ;;  %v2843_v28 = vmul.f32 %v2840_v41, %v11205_v7  ;;  %v2844_v54 = vmul.f32 %v2840_v41, %v11210_v2 }
 0x3df   :  { %v3219_v33 = vrot.slane %v3218_v11, 1  ;;  %v2853_v13 = vadd.f32 %v2850_v17, %v2843_v28  ;;  %v2854_v9 = vadd.f32 %v2850_v17, %v2844_v54 }
 0x3e1   :  { %v3220_v52 = vadd.f32 %v3219_v33, %v3218_v11  ;;  %v2825_v11 = vmul.f32 %v2820_v20, %v11217_v36  ;;  %v2826_v33 = vmul.f32 %v2820_v20, %v11222_v22 }
 0x3e3   :  { %3224 = vadd.xlane.f32.xlu1 %v3220_v52  ;;  %v3221_v23 = vsel %vm62_vm0, %v3220_v52, 0.0  ;;  %v2845_v52 = vmul.f32 %v2840_v41, %v11217_v36  ;;  %v2835_v45 = vadd.f32 %v2830_v25, %v2825_v11  ;;  %v2836_v15 = vadd.f32 %v2830_v25, %v2826_v33 }
 0x3e4   :  { %3222 = vadd.xlane.f32.xlu0 %v3221_v23  ;;  %v2846_v23 = vmul.f32 %v2840_v41, %v11222_v22 }
 0x3e5   :  { %v2855_v32 = vadd.f32 %v2850_v17, %v2845_v52 }
 0x3e6   :  { %v2856_v59 = vadd.f32 %v2850_v17, %v2846_v23 }
 0x410   :  { %v2805_v42 = vpop.xlane.xlu1 %2804 }
 0x411   :  { %v2803_v63 = vpop.xlane.xlu0 %2802 }
 0x412   :  { %v2806_v30 = vsub.f32 %v2805_v42, %v2803_v63  ;;  %v2827_v42 = vmul.f32 %v2820_v20, %v11229_v53 }
 0x414   :  { %v2807_v5 = vsel %vm62_vm0, %v2803_v63, %v2806_v30  ;;  %v2828_v63 = vmul.f32 %v2820_v20, %v11234_v24  ;;  %v2847_v30 = vmul.f32 %v2840_v41, %v11229_v53  ;;  %v2837_v14 = vadd.f32 %v2830_v25, %v2827_v42 }
 0x415   :  { %v2808_v18 = vmul.f32 0.00024414063, %v2807_v5  ;;  %v2848_v5 = vmul.f32 %v2840_v41, %v11234_v24 }
 0x416   :  { %v2838_v40 = vadd.f32 %v2830_v25, %v2828_v63  ;;  %v2857_v20 = vadd.f32 %v2850_v17, %v2847_v30 }
 0x417   :  { %v2809_v49 = vadd.f32 1e-05, %v2808_v18  ;;  %v2831_v18 = vadd.f32 %v2830_v25, %v2821_v62  ;;  %v2858_v58 = vadd.f32 %v2850_v17, %v2848_v5 }
 0x419   :  { %9968 = vrsqrt.f32 %v2809_v49  ;;  %v2832_v49 = vadd.f32 %v2830_v25, %v2822_v21 }
 0x426   :  { %v9969_v55 = vpop.eup %9968 }
 0x427   :  { %v2811_v61 = vmul.f32 %v9969_v55, %v10966_v27  ;;  %v2812_v41 = vmul.f32 %v9969_v55, %v10969_v38  ;;  %v2813_v62 = vmul.f32 %v9969_v55, %v10972_v39  ;;  %v2814_v21 = vmul.f32 %v9969_v55, %v10975_v60 }
 0x428   :  { %v2815_v4 = vmul.f32 %v9969_v55, %v10982_v57  ;;  %v2816_v26 = vmul.f32 %v9969_v55, %v10987_v1  ;;  %v2817_v48 = vmul.f32 %v9969_v55, %v10992_v16  ;;  %v2818_v43 = vmul.f32 %v9969_v55, %v10997_v46 }
 0x429   :  { %v2859_v28 = vmul.f32 %v2831_v18, %v2811_v61  ;;  %v2860_v25 = vmul.f32 %v2832_v49, %v2812_v41  ;;  %v2861_v54 = vmul.f32 %v2833_v56, %v2813_v62  ;;  %v2862_v17 = vmul.f32 %v2834_v37, %v2814_v21  ;;  %v9765_v49 = vld [vmem:[%s12581_s3 + $0x70] sm:$0xff]  }
 0x42a   :  { %v2863_v11 = vmul.f32 %v2835_v45, %v2815_v4  ;;  %v2864_v27 = vmul.f32 %v2836_v15, %v2816_v26  ;;  %v2865_v33 = vmul.f32 %v2837_v14, %v2817_v48  ;;  %v2866_v38 = vmul.f32 %v2838_v40, %v2818_v43  ;;  %v9766_v48 = vld [vmem:[%s12581_s3 + $0x68] sm:$0xff]  }
 0x42b   :  { %v2867_v52 = vadd.f32 %v2859_v28, %v2851_v44  ;;  %v2868_v39 = vadd.f32 %v2860_v25, %v2852_v0  ;;  %v2869_v23 = vadd.f32 %v2861_v54, %v2853_v13  ;;  %v2870_v60 = vadd.f32 %v2862_v17, %v2854_v9 }
 0x42c   :  { %v2871_v42 = vadd.f32 %v2863_v11, %v2855_v32  ;;  %v2872_v57 = vadd.f32 %v2864_v27, %v2856_v59  ;;  %v2873_v63 = vadd.f32 %v2865_v33, %v2857_v20  ;;  %v2874_v1 = vadd.f32 %v2866_v38, %v2858_v58 }
 0x42d   :  { %v2875_v30 = vmax.f32 %v2867_v52, 0.0  ;;  %v2876_v16 = vmax.f32 %v2868_v39, 0.0  ;;  %v2877_v5 = vmax.f32 %v2869_v23, 0.0  ;;  %v2878_v46 = vmax.f32 %v2870_v60, 0.0 }
 0x42e   :  { %v2879_v61 = vmax.f32 %v2871_v42, 0.0  ;;  %v2880_v55 = vmax.f32 %v2872_v57, 0.0  ;;  %v2881_v56 = vmax.f32 %v2873_v63, 0.0  ;;  %v2882_v37 = vmax.f32 %v2874_v1, 0.0  ;;  %v9767_v1 = vld [vmem:[%s12581_s3 + $0x60] sm:$0xff]  }
 0x42f   :  { %v7988_v45 = vpack.c.bf16 %v2876_v16, %v2875_v30  ;;  %v7993_v15 = vpack.c.bf16 %v2878_v46, %v2877_v5  ;;  %v2960_v18 = vstv %s7150_s14  ;;  %v2970_v21 = vstv %s7151_s15 }
 0x430   :  { %v2945_v14 = vpop.xlane.xlu1 %2944  ;;  %v7998_v40 = vpack.c.bf16 %v2880_v55, %v2879_v61  ;;  %v8003_v44 = vpack.c.bf16 %v2882_v37, %v2881_v56  ;;  %v2961_v62 = vmul.f32 %v2960_v18, %v11195_v51  ;;  %v2980_v4 = vstv %s7152_s16  ;;  %s7507_s16 = sld [smem:[#allocation7 + $0x100]] }
 0x431   :  { %v2943_v13 = vpop.xlane.xlu0 %2942  ;;  %7989 = vst [vmem:[#allocation2] sm:$0xff] %v7988_v45   ;;  %8352 = vst [vmem:[#allocation2 + $0x8] sm:$0xff] %v7993_v15   ;;  %v2962_v26 = vmul.f32 %v2960_v18, %v11200_v3  ;;  %v2981_v28 = vmul.f32 %v2980_v4, %v11195_v51  ;;  %v2990_v25 = vstv %s7153_s17  ;;  %v2963_v54 = vmul.f32 %v2960_v18, %v11205_v7  ;;  %s7506_s17 = sld [smem:[#allocation7 + $0x80]] }
 0x432   :  { %v2946_v59 = vsub.f32 %v2945_v14, %v2943_v13  ;;  %8353 = vst [vmem:[#allocation2 + $0x10] sm:$0xff] %v7998_v40   ;;  %8354 = vst [vmem:[#allocation2 + $0x18] sm:$0xff] %v8003_v44   ;;  %v2971_v43 = vadd.f32 %v2970_v21, %v2961_v62  ;;  %v2982_v17 = vmul.f32 %v2980_v4, %v11200_v3 }
 0x433   :  { %v2964_v11 = vmul.f32 %v2960_v18, %v11210_v2  ;;  %v2983_v27 = vmul.f32 %v2980_v4, %v11205_v7  ;;  %v2965_v38 = vmul.f32 %v2960_v18, %v11217_v36  ;;  %v2966_v52 = vmul.f32 %v2960_v18, %v11222_v22 }
 0x434   :  { %v2947_v58 = vsel %vm62_vm0, %v2943_v13, %v2946_v59  ;;  %v2985_v39 = vmul.f32 %v2980_v4, %v11217_v36  ;;  %v2986_v23 = vmul.f32 %v2980_v4, %v11222_v22  ;;  %v2967_v60 = vmul.f32 %v2960_v18, %v11229_v53 }
 0x435   :  { %v2948_v32 = vmul.f32 0.00024414063, %v2947_v58  ;;  %v2968_v42 = vmul.f32 %v2960_v18, %v11234_v24  ;;  %v2987_v57 = vmul.f32 %v2980_v4, %v11229_v53  ;;  %v2988_v63 = vmul.f32 %v2980_v4, %v11234_v24 }
 0x436   :  { %v2972_v30 = vadd.f32 %v2970_v21, %v2962_v26  ;;  %v2991_v16 = vadd.f32 %v2990_v25, %v2981_v28  ;;  %v2973_v5 = vadd.f32 %v2970_v21, %v2963_v54  ;;  %v2992_v46 = vadd.f32 %v2990_v25, %v2982_v17 }
 0x437   :  { %v2949_v9 = vadd.f32 1e-05, %v2948_v32  ;;  %v2974_v61 = vadd.f32 %v2970_v21, %v2964_v11  ;;  %v2993_v55 = vadd.f32 %v2990_v25, %v2983_v27  ;;  %v2975_v37 = vadd.f32 %v2970_v21, %v2965_v38  ;;  %v9770_v32 = vld [vmem:[%s12581_s3 + $0x58] sm:$0xff]  }
 0x438   :  { %v11258_v0 = vld [vmem:[#allocation2] sm:$0xff]   ;;  %v11263_v20 = vld [vmem:[#allocation2 + $0x8] sm:$0xff]   ;;  %v2976_v45 = vadd.f32 %v2970_v21, %v2966_v52  ;;  %v2995_v15 = vadd.f32 %v2990_v25, %v2985_v39  ;;  %v2996_v14 = vadd.f32 %v2990_v25, %v2986_v23  ;;  %v2977_v44 = vadd.f32 %v2970_v21, %v2967_v60 }
 0x439   :  { %9970 = vrsqrt.f32 %v2949_v9  ;;  %9390 = vmatprep.mubr.bf16.mxu0 %v11258_v0  ;;  %9486 = vmatprep.mubr.bf16.mxu1 %v11258_v0  ;;  %v11267_v41 = vld [vmem:[#allocation2 + $0x10] sm:$0xff]   ;;  %v11285_v33 = vld [vmem:[#allocation2 + $0x18] sm:$0xff]   ;;  %v2978_v13 = vadd.f32 %v2970_v21, %v2968_v42  ;;  %v2997_v59 = vadd.f32 %v2990_v25, %v2987_v57  ;;  %v2998_v58 = vadd.f32 %v2990_v25, %v2988_v63 }
 0x43a   :  { %9391 = vmatmul.mubr.bf16.vlgmr.msra.gmra.mxu0 %v11263_v20  ;;  %9487 = vmatmul.mubr.bf16.vlgmr.msra.gmra.mxu1 %v11263_v20 }
 0x43b   :  { %9394 = vmatprep.mubr.bf16.mxu0 %v11267_v41  ;;  %9490 = vmatprep.mubr.bf16.mxu1 %v11267_v41 }
 0x43c   :  { %9423 = vmatpush3.bf16.msra.mxu0 %v11187_v47  ;;  %v2984_v47 = vmul.f32 %v2980_v4, %v11210_v2 }
 0x43d   :  { %9424 = vmatprep.subr.bf16.mxu0 %v9765_v49 }
 0x43e   :  { %v2994_v56 = vadd.f32 %v2990_v25, %v2984_v47 }
 0x440   :  { %9425 = vmatpush3.bf16.msra.mxu0 %v9765_v49 }
 0x441   :  { %9426 = vmatprep.subr.bf16.mxu0 %v9766_v48 }
 0x442   :  { %9395 = vmatmul.mubr.bf16.gmra.mxu0 %v11285_v33  ;;  %9491 = vmatmul.mubr.bf16.gmra.mxu1 %v11285_v33 }
 0x444   :  { %9427 = vmatpush3.bf16.msra.mxu0 %v9766_v48 }
 0x445   :  { %9428 = vmatprep.subr.bf16.mxu0 %v9767_v1 }
 0x446   :  { %v9971_v40 = vpop.eup %9970 }
 0x447   :  { %v2951_v9 = vmul.f32 %v9971_v40, %v11010_v6  ;;  %v2952_v18 = vmul.f32 %v9971_v40, %v11013_v34  ;;  %v2953_v49 = vmul.f32 %v9971_v40, %v11016_v50  ;;  %v2954_v62 = vmul.f32 %v9971_v40, %v11019_v10  ;;  %v9772_v50 = vld [vmem:[%s12581_s3 + $0x50] sm:$0xff]  }
 0x448   :  { %v2955_v4 = vmul.f32 %v9971_v40, %v11026_v35  ;;  %v2956_v26 = vmul.f32 %v9971_v40, %v11031_v31  ;;  %v2957_v21 = vmul.f32 %v9971_v40, %v11036_v29  ;;  %v2958_v48 = vmul.f32 %v9971_v40, %v11041_v12  ;;  %9429 = vmatpush3.bf16.msra.mxu0 %v9767_v1 }
 0x449   :  { %v2999_v28 = vmul.f32 %v2971_v43, %v2951_v9  ;;  %v3000_v25 = vmul.f32 %v2972_v30, %v2952_v18  ;;  %v3001_v54 = vmul.f32 %v2973_v5, %v2953_v49  ;;  %v3002_v17 = vmul.f32 %v2974_v61, %v2954_v62  ;;  %9430 = vmatprep.subr.bf16.mxu0 %v9770_v32 }
 0x44a   :  { %v3003_v6 = vmul.f32 %v2975_v37, %v2955_v4  ;;  %v3004_v11 = vmul.f32 %v2976_v45, %v2956_v26  ;;  %v3005_v34 = vmul.f32 %v2977_v44, %v2957_v21  ;;  %v3006_v27 = vmul.f32 %v2978_v13, %v2958_v48 }
 0x44b   :  { %v3007_v10 = vadd.f32 %v2999_v28, %v2991_v16  ;;  %v3008_v35 = vadd.f32 %v3000_v25, %v2992_v46  ;;  %v3009_v31 = vadd.f32 %v3001_v54, %v2993_v55  ;;  %v3010_v29 = vadd.f32 %v3002_v17, %v2994_v56  ;;  %v9774_v16 = vld [vmem:[%s12581_s3 + $0x48] sm:$0xff]  }
 0x44c   :  { %v3085_v47 = vpop.xlane.xlu1 %3084  ;;  %v3011_v12 = vadd.f32 %v3003_v6, %v2995_v15  ;;  %v3012_v43 = vadd.f32 %v3004_v11, %v2996_v14  ;;  %v3013_v38 = vadd.f32 %v3005_v34, %v2997_v59  ;;  %v3014_v52 = vadd.f32 %v3006_v27, %v2998_v58  ;;  %9431 = vmatpush3.bf16.msra.mxu0 %v9770_v32  ;;  %v9775_v14 = vld [vmem:[%s12581_s3 + $0x40] sm:$0xff]   ;;  %s7158_s3 = sld [smem:[#allocation5 + $0x3]] }
 0x44d   :  { %v3083_v39 = vpop.xlane.xlu0 %3082  ;;  %v3015_v23 = vmax.f32 %v3007_v10, 0.0  ;;  %v3016_v60 = vmax.f32 %v3008_v35, 0.0  ;;  %v3017_v42 = vmax.f32 %v3009_v31, 0.0  ;;  %v3018_v57 = vmax.f32 %v3010_v29, 0.0  ;;  %9432 = vmatprep.subr.bf16.mxu0 %v9772_v50 }
 0x44e   :  { %v3086_v63 = vsub.f32 %v3085_v47, %v3083_v39  ;;  %v3019_v1 = vmax.f32 %v3011_v12, 0.0  ;;  %v3020_v30 = vmax.f32 %v3012_v43, 0.0  ;;  %v3021_v5 = vmax.f32 %v3013_v38, 0.0 }
 0x44f   :  { %v8008_v46 = vpack.c.bf16 %v3016_v60, %v3015_v23  ;;  %v8013_v61 = vpack.c.bf16 %v3018_v57, %v3017_v42  ;;  %v3022_v55 = vmax.f32 %v3014_v52, 0.0  ;;  %v3100_v44 = vstv %s7154_s30 }
 0x450   :  { %v3087_v56 = vsel %vm62_vm0, %v3083_v39, %v3086_v63  ;;  %v8018_v37 = vpack.c.bf16 %v3020_v30, %v3019_v1  ;;  %9433 = vmatpush3.bf16.msra.mxu0 %v9772_v50  ;;  %v3120_v59 = vstv %s7156_s8  ;;  %v3101_v9 = vmul.f32 %v3100_v44, %v11195_v51 }
 0x451   :  { %v3088_v45 = vmul.f32 0.00024414063, %v3087_v56  ;;  %8355 = vst [vmem:[#allocation2 + $0x20] sm:$0xff] %v8008_v46   ;;  %8356 = vst [vmem:[#allocation2 + $0x28] sm:$0xff] %v8013_v61   ;;  %v8023_v15 = vpack.c.bf16 %v3022_v55, %v3021_v5  ;;  %9434 = vmatprep.subr.bf16.mxu0 %v9774_v16  ;;  %v3102_v18 = vmul.f32 %v3100_v44, %v11200_v3  ;;  %v3110_v49 = vstv %s7155_s6  ;;  %v12700_v61 = vld [vmem:[#allocation11_spill] sm:$0xff]  ;;  %v12701_v56 = vld [vmem:[#allocation12_spill] sm:$0xff] }
 0x452   :  { %8357 = vst [vmem:[#allocation2 + $0x30] sm:$0xff] %v8018_v37   ;;  %v3121_v62 = vmul.f32 %v3120_v59, %v11195_v51  ;;  %v3122_v4 = vmul.f32 %v3120_v59, %v11200_v3  ;;  %v3103_v26 = vmul.f32 %v3100_v44, %v11205_v7  ;;  %v3130_v21 = vstv %s7157_s10 }
 0x453   :  { %v3089_v40 = vadd.f32 1e-05, %v3088_v45  ;;  %8358 = vst [vmem:[#allocation2 + $0x38] sm:$0xff] %v8023_v15   ;;  %v3104_v48 = vmul.f32 %v3100_v44, %v11210_v2  ;;  %v3123_v28 = vmul.f32 %v3120_v59, %v11205_v7  ;;  %v3124_v25 = vmul.f32 %v3120_v59, %v11210_v2  ;;  %v12702_v45 = vld [vmem:[#allocation38_spill] sm:$0xff] }
 0x454   :  { %9435 = vmatpush3.bf16.msra.mxu0 %v9774_v16  ;;  %v3105_v54 = vmul.f32 %v3100_v44, %v11217_v36  ;;  %v3106_v17 = vmul.f32 %v3100_v44, %v11222_v22  ;;  %v3125_v6 = vmul.f32 %v3120_v59, %v11217_v36  ;;  %v3126_v11 = vmul.f32 %v3120_v59, %v11222_v22 }
 0x455   :  { %9972 = vrsqrt.f32 %v3089_v40  ;;  %9436 = vmatprep.subr.bf16.mxu0 %v9775_v14  ;;  %v3107_v34 = vmul.f32 %v3100_v44, %v11229_v53  ;;  %v3108_v27 = vmul.f32 %v3100_v44, %v11234_v24  ;;  %v3127_v50 = vmul.f32 %v3120_v59, %v11229_v53  ;;  %v12704_v44 = vld [vmem:[#allocation13_spill] sm:$0xff] }
 0x456   :  { %v3128_v10 = vmul.f32 %v3120_v59, %v11234_v24  ;;  %v3111_v35 = vadd.f32 %v3110_v49, %v3101_v9  ;;  %v3112_v31 = vadd.f32 %v3110_v49, %v3102_v18  ;;  %v3131_v29 = vadd.f32 %v3130_v21, %v3121_v62  ;;  %v12705_v9 = vld [vmem:[#allocation14_spill] sm:$0xff] }
 0x457   :  { %v3113_v47 = vadd.f32 %v3110_v49, %v3103_v26  ;;  %v3132_v12 = vadd.f32 %v3130_v21, %v3122_v4  ;;  %v3114_v43 = vadd.f32 %v3110_v49, %v3104_v48  ;;  %v3133_v38 = vadd.f32 %v3130_v21, %v3123_v28  ;;  %v12706_v26 = vld [vmem:[#allocation43_spill] sm:$0xff] }
 0x458   :  { %v11322_v13 = vld [vmem:[#allocation2 + $0x20] sm:$0xff]   ;;  %v11324_v58 = vld [vmem:[#allocation2 + $0x28] sm:$0xff]   ;;  %9437 = vmatpush3.bf16.msra.mxu0 %v9775_v14  ;;  %v3134_v52 = vadd.f32 %v3130_v21, %v3124_v25  ;;  %v3115_v23 = vadd.f32 %v3110_v49, %v3105_v54  ;;  %v3116_v60 = vadd.f32 %v3110_v49, %v3106_v17  ;;  %v3135_v42 = vadd.f32 %v3130_v21, %v3125_v6 }
 0x459   :  { %9398 = vmatprep.mubr.bf16.mxu0 %v11322_v13  ;;  %9494 = vmatprep.mubr.bf16.mxu1 %v11322_v13  ;;  %v11328_v32 = vld [vmem:[#allocation2 + $0x30] sm:$0xff]   ;;  %v3136_v57 = vadd.f32 %v3130_v21, %v3126_v11  ;;  %v3117_v1 = vadd.f32 %v3110_v49, %v3107_v34  ;;  %v3118_v30 = vadd.f32 %v3110_v49, %v3108_v27  ;;  %v12703_v14 = vld [vmem:[#allocation40_spill] sm:$0xff] }
 0x45a   :  { %9399 = vmatmul.mubr.bf16.gmra.mxu0 %v11324_v58  ;;  %9495 = vmatmul.mubr.bf16.gmra.mxu1 %v11324_v58  ;;  %v11350_v39 = vld [vmem:[#allocation2 + $0x38] sm:$0xff]   ;;  %v3137_v5 = vadd.f32 %v3130_v21, %v3127_v50  ;;  %v3138_v16 = vadd.f32 %v3130_v21, %v3128_v10 }
 0x45b   :  { %9402 = vmatprep.mubr.bf16.mxu0 %v11328_v32  ;;  %9498 = vmatprep.mubr.bf16.mxu1 %v11328_v32 }
 0x462   :  { %v9973_v63 = vpop.eup %9972  ;;  %9403 = vmatmul.mubr.bf16.gmra.mxu0 %v11350_v39  ;;  %9499 = vmatmul.mubr.bf16.gmra.mxu1 %v11350_v39 }
 0x463   :  { %v3091_v46 = vmul.f32 %v9973_v63, %v11076_v8  ;;  %v3092_v55 = vmul.f32 %v9973_v63, %v12700_v61  ;;  %v3093_v37 = vmul.f32 %v9973_v63, %v12701_v56  ;;  %v3094_v15 = vmul.f32 %v9973_v63, %v12702_v45 }
 0x464   :  { %v3095_v40 = vmul.f32 %v9973_v63, %v12703_v14  ;;  %v3096_v59 = vmul.f32 %v9973_v63, %v12704_v44  ;;  %v3097_v18 = vmul.f32 %v9973_v63, %v12705_v9  ;;  %v3098_v21 = vmul.f32 %v9973_v63, %v12706_v26 }
 0x465   :  { %v3139_v49 = vmul.f32 %v3111_v35, %v3091_v46  ;;  %v3140_v62 = vmul.f32 %v3112_v31, %v3092_v55  ;;  %v3141_v4 = vmul.f32 %v3113_v47, %v3093_v37  ;;  %v3142_v48 = vmul.f32 %v3114_v43, %v3094_v15 }
 0x466   :  { %v3143_v28 = vmul.f32 %v3115_v23, %v3095_v40  ;;  %v3144_v8 = vmul.f32 %v3116_v60, %v3096_v59  ;;  %v3145_v25 = vmul.f32 %v3117_v1, %v3097_v18  ;;  %v3146_v11 = vmul.f32 %v3118_v30, %v3098_v21 }
 0x467   :  { %v3147_v54 = vadd.f32 %v3139_v49, %v3131_v29  ;;  %v3148_v17 = vadd.f32 %v3140_v62, %v3132_v12  ;;  %v3149_v6 = vadd.f32 %v3141_v4, %v3133_v38  ;;  %v3150_v34 = vadd.f32 %v3142_v48, %v3134_v52 }
 0x468   :  { %v3151_v27 = vadd.f32 %v3143_v28, %v3135_v42  ;;  %v3152_v50 = vadd.f32 %v3144_v8, %v3136_v57  ;;  %v3153_v10 = vadd.f32 %v3145_v25, %v3137_v5  ;;  %v3154_v35 = vadd.f32 %v3146_v11, %v3138_v16 }
 0x469   :  { %v3155_v61 = vmax.f32 %v3147_v54, 0.0  ;;  %v3156_v56 = vmax.f32 %v3148_v17, 0.0  ;;  %v3157_v45 = vmax.f32 %v3149_v6, 0.0  ;;  %v3158_v31 = vmax.f32 %v3150_v34, 0.0 }
 0x46a   :  { %v3159_v47 = vmax.f32 %v3151_v27, 0.0  ;;  %v3160_v46 = vmax.f32 %v3152_v50, 0.0  ;;  %v3161_v63 = vmax.f32 %v3153_v10, 0.0  ;;  %v3162_v23 = vmax.f32 %v3154_v35, 0.0 }
 0x46b   :  { %v8028_v43 = vpack.c.bf16 %v3156_v56, %v3155_v61  ;;  %v8033_v1 = vpack.c.bf16 %v3158_v31, %v3157_v45  ;;  %v3240_v55 = vstv %s7158_s3  ;;  %v3250_v14 = vstv %s7159_s11  ;;  %s7509_s11 = sld [smem:[#allocation7 + $0x1]] }
 0x46c   :  { %v3225_v60 = vpop.xlane.xlu1 %3224  ;;  %v8038_v29 = vpack.c.bf16 %v3160_v46, %v3159_v47  ;;  %v8043_v38 = vpack.c.bf16 %v3162_v23, %v3161_v63  ;;  %v3241_v15 = vmul.f32 %v3240_v55, %v11195_v51  ;;  %v3260_v40 = vstv %s7160_s12  ;;  %v12707_v47 = vld [vmem:[#allocation44_spill] sm:$0xff]  ;;  %v12708_v63 = vld [vmem:[#allocation41_spill] sm:$0xff]  ;;  %v12709_v23 = vld [vmem:[#allocation42_spill] sm:$0xff]  ;;  %s7511_s12 = sld [smem:[#allocation7 + $0x101]] }
 0x46d   :  { %v3223_v12 = vpop.xlane.xlu0 %3222  ;;  %8359 = vst [vmem:[#allocation2 + $0x40] sm:$0xff] %v8028_v43   ;;  %8360 = vst [vmem:[#allocation2 + $0x48] sm:$0xff] %v8033_v1   ;;  %v3242_v44 = vmul.f32 %v3240_v55, %v11200_v3  ;;  %v3243_v59 = vmul.f32 %v3240_v55, %v11205_v7  ;;  %v3244_v9 = vmul.f32 %v3240_v55, %v11210_v2  ;;  %v3270_v28 = vstv %s7161_s2  ;;  %v12710_v1 = vld [vmem:[#allocation16_spill] sm:$0xff]  ;;  %s7510_s2 = sld [smem:[#allocation7 + $0x81]] }
 0x46e   :  { %v3226_v52 = vsub.f32 %v3225_v60, %v3223_v12  ;;  %8361 = vst [vmem:[#allocation2 + $0x50] sm:$0xff] %v8038_v29   ;;  %8362 = vst [vmem:[#allocation2 + $0x58] sm:$0xff] %v8043_v38   ;;  %v3245_v18 = vmul.f32 %v3240_v55, %v11217_v36  ;;  %v3246_v49 = vmul.f32 %v3240_v55, %v11222_v22 }
 0x46f   :  { %v3251_v62 = vadd.f32 %v3250_v14, %v3241_v15  ;;  %v3261_v4 = vmul.f32 %v3260_v40, %v11195_v51  ;;  %v3262_v26 = vmul.f32 %v3260_v40, %v11200_v3  ;;  %v3247_v21 = vmul.f32 %v3240_v55, %v11229_v53 }
 0x470   :  { %v3227_v42 = vsel %vm62_vm0, %v3223_v12, %v3226_v52  ;;  %v3263_v8 = vmul.f32 %v3260_v40, %v11205_v7  ;;  %v3264_v25 = vmul.f32 %v3260_v40, %v11210_v2  ;;  %v3265_v54 = vmul.f32 %v3260_v40, %v11217_v36  ;;  %v12711_v12 = vld [vmem:[#allocation17_spill] sm:$0xff] }
 0x471   :  { %v3228_v57 = vmul.f32 0.00024414063, %v3227_v42  ;;  %v3266_v17 = vmul.f32 %v3260_v40, %v11222_v22  ;;  %v3248_v6 = vmul.f32 %v3240_v55, %v11234_v24  ;;  %v3267_v11 = vmul.f32 %v3260_v40, %v11229_v53  ;;  %v12712_v52 = vld [vmem:[#allocation45_spill] sm:$0xff]  ;;  %v12714_v55 = vld [vmem:[#allocation20_spill] sm:$0xff] }
 0x472   :  { %v3268_v51 = vmul.f32 %v3260_v40, %v11234_v24  ;;  %v3252_v3 = vadd.f32 %v3250_v14, %v3242_v44  ;;  %v3253_v34 = vadd.f32 %v3250_v14, %v3243_v59  ;;  %v3254_v27 = vadd.f32 %v3250_v14, %v3244_v9 }
 0x473   :  { %v3229_v30 = vadd.f32 1e-05, %v3228_v57  ;;  %v3271_v7 = vadd.f32 %v3270_v28, %v3261_v4  ;;  %v3272_v50 = vadd.f32 %v3270_v28, %v3262_v26  ;;  %v3255_v2 = vadd.f32 %v3250_v14, %v3245_v18  ;;  %v12713_v57 = vld [vmem:[#allocation19_spill] sm:$0xff] }
 0x474   :  { %v11364_v5 = vld [vmem:[#allocation2 + $0x40] sm:$0xff]   ;;  %v11366_v16 = vld [vmem:[#allocation2 + $0x48] sm:$0xff]   ;;  %v3256_v10 = vadd.f32 %v3250_v14, %v3246_v49  ;;  %v3273_v36 = vadd.f32 %v3270_v28, %v3263_v8  ;;  %v3274_v61 = vadd.f32 %v3270_v28, %v3264_v25  ;;  %v3275_v22 = vadd.f32 %v3270_v28, %v3265_v54 }
 0x475   :  { %9974 = vrsqrt.f32 %v3229_v30  ;;  %9406 = vmatprep.mubr.bf16.mxu0 %v11364_v5  ;;  %9502 = vmatprep.mubr.bf16.mxu1 %v11364_v5  ;;  %v11370_v37 = vld [vmem:[#allocation2 + $0x50] sm:$0xff]   ;;  %v11385_v48 = vld [vmem:[#allocation2 + $0x58] sm:$0xff]   ;;  %v3257_v56 = vadd.f32 %v3250_v14, %v3247_v21  ;;  %v3276_v35 = vadd.f32 %v3270_v28, %v3266_v17  ;;  %v3258_v53 = vadd.f32 %v3250_v14, %v3248_v6 }
 0x476   :  { %9407 = vmatmul.mubr.bf16.gmra.mxu0 %v11366_v16  ;;  %9503 = vmatmul.mubr.bf16.gmra.mxu1 %v11366_v16  ;;  %v3277_v31 = vadd.f32 %v3270_v28, %v3267_v11  ;;  %v3278_v24 = vadd.f32 %v3270_v28, %v3268_v51 }
 0x477   :  { %9410 = vmatprep.mubr.bf16.mxu0 %v11370_v37  ;;  %9506 = vmatprep.mubr.bf16.mxu1 %v11370_v37 }
 0x47e   :  { %9411 = vmatmul.mubr.bf16.gmra.mxu0 %v11385_v48  ;;  %9507 = vmatmul.mubr.bf16.gmra.mxu1 %v11385_v48 }
 0x482   :  { %v9975_v45 = vpop.eup %9974 }
 0x483   :  { %v3231_v46 = vmul.f32 %v9975_v45, %v12707_v47  ;;  %v3232_v43 = vmul.f32 %v9975_v45, %v12708_v63  ;;  %v3233_v60 = vmul.f32 %v9975_v45, %v12709_v23  ;;  %v3234_v29 = vmul.f32 %v9975_v45, %v12710_v1 }
 0x484   :  { %v3235_v38 = vmul.f32 %v9975_v45, %v12711_v12  ;;  %v3236_v42 = vmul.f32 %v9975_v45, %v12712_v52  ;;  %v3237_v30 = vmul.f32 %v9975_v45, %v12713_v57  ;;  %v3238_v15 = vmul.f32 %v9975_v45, %v12714_v55 }
 0x485   :  { %v3279_v40 = vmul.f32 %v3251_v62, %v3231_v46  ;;  %v3280_v14 = vmul.f32 %v3252_v3, %v3232_v43  ;;  %v3281_v44 = vmul.f32 %v3253_v34, %v3233_v60  ;;  %v3282_v59 = vmul.f32 %v3254_v27, %v3234_v29 }
 0x486   :  { %v3283_v9 = vmul.f32 %v3255_v2, %v3235_v38  ;;  %v3284_v18 = vmul.f32 %v3256_v10, %v3236_v42  ;;  %v3285_v49 = vmul.f32 %v3257_v56, %v3237_v30  ;;  %v3286_v4 = vmul.f32 %v3258_v53, %v3238_v15  ;;  %v9795_v38 = vld [vmem:[%s12582_s4 + $0x4] ss:$24 sps:$4 sm:$0xff]  }
 0x487   :  { %v3287_v26 = vadd.f32 %v3279_v40, %v3271_v7  ;;  %v3288_v21 = vadd.f32 %v3280_v14, %v3272_v50  ;;  %v3289_v28 = vadd.f32 %v3281_v44, %v3273_v36  ;;  %v3290_v8 = vadd.f32 %v3282_v59, %v3274_v61 }
 0x488   :  { %v3291_v25 = vadd.f32 %v3283_v9, %v3275_v22  ;;  %v3292_v54 = vadd.f32 %v3284_v18, %v3276_v35  ;;  %v3293_v17 = vadd.f32 %v3285_v49, %v3277_v31  ;;  %v3294_v6 = vadd.f32 %v3286_v4, %v3278_v24 }
 0x489   :  { %v3295_v11 = vmax.f32 %v3287_v26, 0.0  ;;  %v3296_v51 = vmax.f32 %v3288_v21, 0.0  ;;  %v3297_v47 = vmax.f32 %v3289_v28, 0.0  ;;  %v3298_v45 = vmax.f32 %v3290_v8, 0.0 }
 0x48a   :  { %v3299_v62 = vmax.f32 %v3291_v25, 0.0  ;;  %v3300_v3 = vmax.f32 %v3292_v54, 0.0  ;;  %v3301_v34 = vmax.f32 %v3293_v17, 0.0  ;;  %v3302_v27 = vmax.f32 %v3294_v6, 0.0 }
 0x48b   :  { %v8048_v2 = vpack.c.bf16 %v3296_v51, %v3295_v11  ;;  %v8053_v10 = vpack.c.bf16 %v3298_v45, %v3297_v47 }
 0x48c   :  { %v8058_v56 = vpack.c.bf16 %v3300_v3, %v3299_v62  ;;  %v8063_v53 = vpack.c.bf16 %v3302_v27, %v3301_v34 }
 0x48d   :  { %8363 = vst [vmem:[#allocation2 + $0x60] sm:$0xff] %v8048_v2   ;;  %8364 = vst [vmem:[#allocation2 + $0x68] sm:$0xff] %v8053_v10  }
 0x48e   :  { %8365 = vst [vmem:[#allocation2 + $0x70] sm:$0xff] %v8058_v56   ;;  %8366 = vst [vmem:[#allocation2 + $0x78] sm:$0xff] %v8063_v53  }
 0x494   :  { %v9768_v7 = vld [vmem:[#allocation2 + $0x60] sm:$0xff]   ;;  %v9769_v50 = vld [vmem:[#allocation2 + $0x68] sm:$0xff]  }
 0x495   :  { %9414 = vmatprep.mubr.bf16.mxu0 %v9768_v7  ;;  %9510 = vmatprep.mubr.bf16.mxu1 %v9768_v7  ;;  %v9771_v36 = vld [vmem:[#allocation2 + $0x70] sm:$0xff]   ;;  %v9773_v61 = vld [vmem:[#allocation2 + $0x78] sm:$0xff]  }
 0x496   :  { %9415 = vmatmul.mubr.bf16.gmra.mxu0 %v9769_v50  ;;  %9511 = vmatmul.mubr.bf16.gmra.mxu1 %v9769_v50 }
 0x497   :  { %9418 = vmatprep.mubr.bf16.mxu0 %v9771_v36  ;;  %9514 = vmatprep.mubr.bf16.mxu1 %v9771_v36 }
 0x49e   :  { %9419 = vmatmul.mubr.bf16.gmra.mxu0 %v9773_v61  ;;  %9515 = vmatmul.mubr.bf16.gmra.mxu1 %v9773_v61 }
 0x49f   :  { %9438 = vmatprep.mubr.bf16.mxu0 %v11258_v0 }
 0x4a6   :  { %9439 = vmatmul.mubr.bf16.vlgmr.msra.gmra.mxu0 %v11263_v20 }
 0x4a7   :  { %9442 = vmatprep.mubr.bf16.mxu0 %v11267_v41 }
 0x4ae   :  { %9443 = vmatmul.mubr.bf16.gmra.mxu0 %v11285_v33 }
 0x4af   :  { %9446 = vmatprep.mubr.bf16.mxu0 %v11322_v13 }
 0x4b6   :  { %9447 = vmatmul.mubr.bf16.gmra.mxu0 %v11324_v58 }
 0x4b7   :  { %9450 = vmatprep.mubr.bf16.mxu0 %v11328_v32 }
 0x4be   :  { %9451 = vmatmul.mubr.bf16.gmra.mxu0 %v11350_v39 }
 0x4bf   :  { %9454 = vmatprep.mubr.bf16.mxu0 %v11364_v5 }
 0x4c6   :  { %9455 = vmatmul.mubr.bf16.gmra.mxu0 %v11366_v16 }
 0x4c7   :  { %9458 = vmatprep.mubr.bf16.mxu0 %v11370_v37 }
 0x4ce   :  { %9459 = vmatmul.mubr.bf16.gmra.mxu0 %v11385_v48 }
 0x4cf   :  { %9462 = vmatprep.mubr.bf16.mxu0 %v9768_v7 }
 0x4d6   :  { %9463 = vmatmul.mubr.bf16.gmra.mxu0 %v9769_v50 }
 0x4d7   :  { %9466 = vmatprep.mubr.bf16.mxu0 %v9771_v36 }
 0x4de   :  { %9467 = vmatmul.mubr.bf16.gmra.mxu0 %v9773_v61 }
 0x4df   :  { %5738 = vmatprep.mubr.bf16.mxu0 %v9795_v38 }
 0x4fa   :  { %v9392_v0 = vpop.f32.mrf.mxu0  ;;  %v9488_v20 = vpop.f32.mrf.mxu1 }
 0x4fc   :  { %v3689_v41 = vpop.f32.mrf.mxu0  ;;  %v4459_v33 = vpop.f32.mrf.mxu1 }
 0x4fe   :  { %v9393_v13 = vpop.f32.mrf.mxu0  ;;  %v9489_v58 = vpop.f32.mrf.mxu1 }
 0x4ff   :  { %v8073_v32 = vpack.c.bf16 %v9393_v13, %v9392_v0  ;;  %v8233_v39 = vpack.c.bf16 %v9489_v58, %v9488_v20 }
 0x500   :  { %v3692_v22 = vpop.f32.mrf.mxu0  ;;  %v4462_v5 = vpop.f32.mrf.mxu1 }
 0x501   :  { %8367 = vst [vmem:[#allocation3 + $0x8] sm:$0xff] %v8073_v32   ;;  %8399 = vst [vmem:[#allocation3 + $0x108] sm:$0xff] %v8233_v39   ;;  %v8068_v16 = vpack.c.bf16 %v3692_v22, %v3689_v41  ;;  %v8228_v37 = vpack.c.bf16 %v4462_v5, %v4459_v33 }
 0x502   :  { %v9396_v35 = vpop.f32.mrf.mxu0  ;;  %v9492_v48 = vpop.f32.mrf.mxu1 }
 0x503   :  { %8069 = vst [vmem:[#allocation3] sm:$0xff] %v8068_v16   ;;  %8398 = vst [vmem:[#allocation3 + $0x100] sm:$0xff] %v8228_v37   ;;  %v9853_v16 = vld [vmem:[%s12582_s4 + $0xc] ss:$24 sps:$4 sm:$0xff]  }
 0x504   :  { %v3705_v31 = vpop.f32.mrf.mxu0  ;;  %v4475_v24 = vpop.f32.mrf.mxu1  ;;  %5899 = vmatprep.mubr.bf16.mxu1 %v9853_v16 }
 0x506   :  { %v9397_v46 = vpop.f32.mrf.mxu0  ;;  %v9493_v63 = vpop.f32.mrf.mxu1 }
 0x507   :  { %v8083_v43 = vpack.c.bf16 %v9397_v46, %v9396_v35  ;;  %v8243_v23 = vpack.c.bf16 %v9493_v63, %v9492_v48 }
 0x508   :  { %v3708_v60 = vpop.f32.mrf.mxu0  ;;  %v4478_v1 = vpop.f32.mrf.mxu1 }
 0x509   :  { %8369 = vst [vmem:[#allocation3 + $0x18] sm:$0xff] %v8083_v43   ;;  %8401 = vst [vmem:[#allocation3 + $0x118] sm:$0xff] %v8243_v23   ;;  %v8078_v29 = vpack.c.bf16 %v3708_v60, %v3705_v31  ;;  %v8238_v12 = vpack.c.bf16 %v4478_v1, %v4475_v24 }
 0x50b   :  { %8368 = vst [vmem:[#allocation3 + $0x10] sm:$0xff] %v8078_v29   ;;  %8400 = vst [vmem:[#allocation3 + $0x110] sm:$0xff] %v8238_v12  }
 0x51a   :  { %v9400_v52 = vpop.f32.mrf.mxu0  ;;  %v9496_v42 = vpop.f32.mrf.mxu1 }
 0x51c   :  { %v3721_v57 = vpop.f32.mrf.mxu0  ;;  %v4491_v30 = vpop.f32.mrf.mxu1 }
 0x51e   :  { %v9401_v55 = vpop.f32.mrf.mxu0  ;;  %v9497_v15 = vpop.f32.mrf.mxu1 }
 0x51f   :  { %v8093_v40 = vpack.c.bf16 %v9401_v55, %v9400_v52  ;;  %v8253_v14 = vpack.c.bf16 %v9497_v15, %v9496_v42 }
 0x520   :  { %v3724_v44 = vpop.f32.mrf.mxu0  ;;  %v4494_v59 = vpop.f32.mrf.mxu1 }
 0x521   :  { %8371 = vst [vmem:[#allocation3 + $0x28] sm:$0xff] %v8093_v40   ;;  %8403 = vst [vmem:[#allocation3 + $0x128] sm:$0xff] %v8253_v14   ;;  %v8088_v9 = vpack.c.bf16 %v3724_v44, %v3721_v57  ;;  %v8248_v18 = vpack.c.bf16 %v4494_v59, %v4491_v30 }
 0x522   :  { %v9404_v49 = vpop.f32.mrf.mxu0  ;;  %v9500_v4 = vpop.f32.mrf.mxu1 }
 0x523   :  { %8370 = vst [vmem:[#allocation3 + $0x20] sm:$0xff] %v8088_v9   ;;  %8402 = vst [vmem:[#allocation3 + $0x120] sm:$0xff] %v8248_v18  }
 0x524   :  { %v3737_v26 = vpop.f32.mrf.mxu0  ;;  %v4507_v21 = vpop.f32.mrf.mxu1 }
 0x526   :  { %v9405_v28 = vpop.f32.mrf.mxu0  ;;  %v9501_v8 = vpop.f32.mrf.mxu1 }
 0x527   :  { %v8103_v25 = vpack.c.bf16 %v9405_v28, %v9404_v49  ;;  %v8263_v54 = vpack.c.bf16 %v9501_v8, %v9500_v4 }
 0x528   :  { %v3740_v17 = vpop.f32.mrf.mxu0  ;;  %v4510_v6 = vpop.f32.mrf.mxu1 }
 0x529   :  { %8373 = vst [vmem:[#allocation3 + $0x38] sm:$0xff] %v8103_v25   ;;  %8405 = vst [vmem:[#allocation3 + $0x138] sm:$0xff] %v8263_v54   ;;  %v8098_v11 = vpack.c.bf16 %v3740_v17, %v3737_v26  ;;  %v8258_v51 = vpack.c.bf16 %v4510_v6, %v4507_v21 }
 0x52b   :  { %8372 = vst [vmem:[#allocation3 + $0x30] sm:$0xff] %v8098_v11   ;;  %8404 = vst [vmem:[#allocation3 + $0x130] sm:$0xff] %v8258_v51  }
 0x530   :  { %v9777_v8 = vld [vmem:[#allocation3 + $0x38] sm:$0xff]  }
 0x532   :  { %v9779_v6 = vld [vmem:[#allocation3 + $0x30] sm:$0xff]  }
 0x536   :  { %v9408_v47 = vpop.f32.mrf.mxu0  ;;  %v9504_v45 = vpop.f32.mrf.mxu1 }
 0x538   :  { %v3753_v62 = vpop.f32.mrf.mxu0  ;;  %v4523_v3 = vpop.f32.mrf.mxu1 }
 0x53a   :  { %v9409_v34 = vpop.f32.mrf.mxu0  ;;  %v9505_v27 = vpop.f32.mrf.mxu1 }
 0x53b   :  { %v8113_v2 = vpack.c.bf16 %v9409_v34, %v9408_v47  ;;  %v8273_v10 = vpack.c.bf16 %v9505_v27, %v9504_v45 }
 0x53c   :  { %v3756_v56 = vpop.f32.mrf.mxu0  ;;  %v4526_v53 = vpop.f32.mrf.mxu1 }
 0x53d   :  { %8375 = vst [vmem:[#allocation3 + $0x48] sm:$0xff] %v8113_v2   ;;  %8407 = vst [vmem:[#allocation3 + $0x148] sm:$0xff] %v8273_v10   ;;  %v8108_v7 = vpack.c.bf16 %v3756_v56, %v3753_v62  ;;  %v8268_v50 = vpack.c.bf16 %v4526_v53, %v4523_v3  ;;  %v9781_v3 = vld [vmem:[#allocation3 + $0x28] sm:$0xff]   ;;  %v9783_v10 = vld [vmem:[#allocation3 + $0x20] sm:$0xff]  }
 0x53e   :  { %v9412_v36 = vpop.f32.mrf.mxu0  ;;  %v9508_v61 = vpop.f32.mrf.mxu1 }
 0x53f   :  { %8374 = vst [vmem:[#allocation3 + $0x40] sm:$0xff] %v8108_v7   ;;  %8406 = vst [vmem:[#allocation3 + $0x140] sm:$0xff] %v8268_v50  }
 0x540   :  { %v3769_v0 = vpop.f32.mrf.mxu0  ;;  %v4539_v20 = vpop.f32.mrf.mxu1 }
 0x542   :  { %v9413_v41 = vpop.f32.mrf.mxu0  ;;  %v9509_v33 = vpop.f32.mrf.mxu1 }
 0x543   :  { %v8123_v13 = vpack.c.bf16 %v9413_v41, %v9412_v36  ;;  %v8283_v58 = vpack.c.bf16 %v9509_v33, %v9508_v61  ;;  %v9785_v61 = vld [vmem:[#allocation3 + $0x18] sm:$0xff]   ;;  %v9787_v33 = vld [vmem:[#allocation3 + $0x10] sm:$0xff]  }
 0x544   :  { %v3772_v32 = vpop.f32.mrf.mxu0  ;;  %v4542_v39 = vpop.f32.mrf.mxu1 }
 0x545   :  { %8377 = vst [vmem:[#allocation3 + $0x58] sm:$0xff] %v8123_v13   ;;  %8409 = vst [vmem:[#allocation3 + $0x158] sm:$0xff] %v8283_v58   ;;  %v8118_v22 = vpack.c.bf16 %v3772_v32, %v3769_v0  ;;  %v8278_v5 = vpack.c.bf16 %v4542_v39, %v4539_v20  ;;  %v9788_v58 = vld [vmem:[#allocation3 + $0x48] sm:$0xff]  }
 0x547   :  { %8376 = vst [vmem:[#allocation3 + $0x50] sm:$0xff] %v8118_v22   ;;  %8408 = vst [vmem:[#allocation3 + $0x150] sm:$0xff] %v8278_v5   ;;  %v9789_v5 = vld [vmem:[#allocation3 + $0x8] sm:$0xff]  }
 0x54c   :  { %v9784_v53 = vld [vmem:[#allocation3 + $0x58] sm:$0xff]  }
 0x54e   :  { %v9786_v20 = vld [vmem:[#allocation3 + $0x50] sm:$0xff]  }
 0x556   :  { %v9416_v37 = vpop.f32.mrf.mxu0  ;;  %v9512_v35 = vpop.f32.mrf.mxu1 }
 0x558   :  { %v3785_v48 = vpop.f32.mrf.mxu0  ;;  %v4555_v31 = vpop.f32.mrf.mxu1 }
 0x55a   :  { %v9417_v24 = vpop.f32.mrf.mxu0  ;;  %v9513_v46 = vpop.f32.mrf.mxu1 }
 0x55b   :  { %v8133_v63 = vpack.c.bf16 %v9417_v24, %v9416_v37  ;;  %v8293_v43 = vpack.c.bf16 %v9513_v46, %v9512_v35  ;;  %v9790_v37 = vld [vmem:[#allocation3 + $0x40] sm:$0xff]  }
 0x55c   :  { %v3788_v23 = vpop.f32.mrf.mxu0  ;;  %v4558_v60 = vpop.f32.mrf.mxu1  ;;  %v9793_v46 = vld [vmem:[%s12582_s4] ss:$24 sps:$4 sm:$0xff]  }
 0x55d   :  { %8379 = vst [vmem:[#allocation3 + $0x68] sm:$0xff] %v8133_v63   ;;  %8411 = vst [vmem:[#allocation3 + $0x168] sm:$0xff] %v8293_v43   ;;  %v8128_v1 = vpack.c.bf16 %v3788_v23, %v3785_v48  ;;  %v8288_v29 = vpack.c.bf16 %v4558_v60, %v4555_v31  ;;  %v9791_v48 = vld [vmem:[#allocation3] sm:$0xff]   ;;  %v9802_v43 = vld [vmem:[%s12582_s4 + $0x34] ss:$24 sps:$4 sm:$0xff]  }
 0x55e   :  { %v9420_v12 = vpop.f32.mrf.mxu0  ;;  %v9516_v38 = vpop.f32.mrf.mxu1 }
 0x55f   :  { %8378 = vst [vmem:[#allocation3 + $0x60] sm:$0xff] %v8128_v1   ;;  %8410 = vst [vmem:[#allocation3 + $0x160] sm:$0xff] %v8288_v29   ;;  %v9796_v1 = vld [vmem:[#allocation3 + $0x138] sm:$0xff]  }
 0x560   :  { %v3801_v52 = vpop.f32.mrf.mxu0  ;;  %v4571_v42 = vpop.f32.mrf.mxu1 }
 0x562   :  { %v9421_v57 = vpop.f32.mrf.mxu0  ;;  %v9517_v30 = vpop.f32.mrf.mxu1 }
 0x563   :  { %v8143_v55 = vpack.c.bf16 %v9421_v57, %v9420_v12  ;;  %v8303_v15 = vpack.c.bf16 %v9517_v30, %v9516_v38  ;;  %v9800_v30 = vld [vmem:[%s12582_s4 + $0x30] ss:$24 sps:$4 sm:$0xff]  }
 0x564   :  { %v3804_v40 = vpop.f32.mrf.mxu0  ;;  %v4574_v14 = vpop.f32.mrf.mxu1  ;;  %v9780_v51 = vld [vmem:[#allocation3 + $0x68] sm:$0xff]  }
 0x565   :  { %8381 = vst [vmem:[#allocation3 + $0x78] sm:$0xff] %v8143_v55   ;;  %8413 = vst [vmem:[#allocation3 + $0x178] sm:$0xff] %v8303_v15   ;;  %v8138_v44 = vpack.c.bf16 %v3804_v40, %v3801_v52  ;;  %v8298_v59 = vpack.c.bf16 %v4574_v14, %v4571_v42  ;;  %v9798_v52 = vld [vmem:[#allocation3 + $0x130] sm:$0xff]   ;;  %v9799_v57 = vld [vmem:[#allocation3 + $0x168] sm:$0xff]  }
 0x566   :  { %v9440_v9 = vpop.f32.mrf.mxu0  ;;  %v9782_v27 = vld [vmem:[#allocation3 + $0x60] sm:$0xff]  }
 0x567   :  { %8380 = vst [vmem:[#allocation3 + $0x70] sm:$0xff] %v8138_v44   ;;  %8412 = vst [vmem:[#allocation3 + $0x170] sm:$0xff] %v8298_v59   ;;  %v9809_v15 = vld [vmem:[%s12582_s4 + $0x64] ss:$24 sps:$4 sm:$0xff]   ;;  %v9803_v44 = vld [vmem:[#allocation3 + $0x128] sm:$0xff]  }
 0x568   :  { %v4074_v18 = vpop.f32.mrf.mxu0 }
 0x56a   :  { %v9441_v49 = vpop.f32.mrf.mxu0 }
 0x56b   :  { %v8153_v4 = vpack.c.bf16 %v9441_v49, %v9440_v9  ;;  %v9804_v9 = vld [vmem:[#allocation3 + $0x160] sm:$0xff]  }
 0x56c   :  { %v4077_v26 = vpop.f32.mrf.mxu0  ;;  %v9776_v21 = vld [vmem:[#allocation3 + $0x78] sm:$0xff]   ;;  %v9805_v49 = vld [vmem:[#allocation3 + $0x120] sm:$0xff]  }
 0x56d   :  { %8383 = vst [vmem:[#allocation3 + $0x88] sm:$0xff] %v8153_v4   ;;  %v8148_v28 = vpack.c.bf16 %v4077_v26, %v4074_v18  ;;  %8894 = vmatprep.subr.bf16.mxu0 %v9776_v21  ;;  %v9792_v24 = vld [vmem:[#allocation3 + $0x178] sm:$0xff]  }
 0x56e   :  { %v9444_v25 = vpop.f32.mrf.mxu0  ;;  %v9778_v54 = vld [vmem:[#allocation3 + $0x70] sm:$0xff]   ;;  %8895 = vmatpush3.bf16.msra.mxu0 %v9777_v8  ;;  %v9806_v26 = vld [vmem:[#allocation3 + $0x158] sm:$0xff]  }
 0x56f   :  { %8382 = vst [vmem:[#allocation3 + $0x80] sm:$0xff] %v8148_v28   ;;  %8896 = vmatprep.subr.bf16.mxu0 %v9778_v54  ;;  %v9797_v12 = vld [vmem:[#allocation3 + $0x170] sm:$0xff]   ;;  %v9807_v21 = vld [vmem:[%s12582_s4 + $0x60] ss:$24 sps:$4 sm:$0xff]  }
 0x570   :  { %v4090_v17 = vpop.f32.mrf.mxu0  ;;  %v9816_v8 = vld [vmem:[%s12582_s4 + $0x94] ss:$24 sps:$4 sm:$0xff]  }
 0x572   :  { %v9445_v11 = vpop.f32.mrf.mxu0  ;;  %8897 = vmatpush3.bf16.msra.mxu0 %v9779_v6 }
 0x573   :  { %v8163_v47 = vpack.c.bf16 %v9445_v11, %v9444_v25  ;;  %8898 = vmatprep.subr.bf16.mxu0 %v9780_v51  ;;  %v9811_v11 = vld [vmem:[#allocation3 + $0x150] sm:$0xff]  }
 0x574   :  { %v4093_v45 = vpop.f32.mrf.mxu0 }
 0x575   :  { %8385 = vst [vmem:[#allocation3 + $0x98] sm:$0xff] %v8163_v47   ;;  %v8158_v62 = vpack.c.bf16 %v4093_v45, %v4090_v17  ;;  %v9810_v17 = vld [vmem:[#allocation3 + $0x118] sm:$0xff]   ;;  %v9812_v47 = vld [vmem:[#allocation3 + $0x110] sm:$0xff]  }
 0x576   :  { %v9448_v34 = vpop.f32.mrf.mxu0  ;;  %8899 = vmatpush3.bf16.msra.mxu0 %v9781_v3  ;;  %v9814_v3 = vld [vmem:[%s12582_s4 + $0x90] ss:$24 sps:$4 sm:$0xff]  }
 0x577   :  { %8384 = vst [vmem:[#allocation3 + $0x90] sm:$0xff] %v8158_v62   ;;  %8900 = vmatprep.subr.bf16.mxu0 %v9782_v27  ;;  %v9813_v62 = vld [vmem:[#allocation3 + $0x148] sm:$0xff]   ;;  %v9822_v27 = vld [vmem:[%s12582_s4 + $0xc4] ss:$24 sps:$4 sm:$0xff]  }
 0x578   :  { %v4106_v2 = vpop.f32.mrf.mxu0 }
 0x57a   :  { %v9449_v56 = vpop.f32.mrf.mxu0  ;;  %8901 = vmatpush3.bf16.msra.mxu0 %v9783_v10 }
 0x57b   :  { %v8173_v7 = vpack.c.bf16 %v9449_v56, %v9448_v34  ;;  %8902 = vmatprep.subr.bf16.mxu0 %v9784_v53  ;;  %v9817_v56 = vld [vmem:[#allocation3 + $0x108] sm:$0xff]   ;;  %v9818_v53 = vld [vmem:[#allocation3 + $0x140] sm:$0xff]  }
 0x57c   :  { %v4109_v50 = vpop.f32.mrf.mxu0 }
 0x57d   :  { %8387 = vst [vmem:[#allocation3 + $0xa8] sm:$0xff] %v8173_v7   ;;  %v8168_v36 = vpack.c.bf16 %v4109_v50, %v4106_v2  ;;  %v9819_v7 = vld [vmem:[#allocation3 + $0x100] sm:$0xff]  }
 0x57e   :  { %v9452_v0 = vpop.f32.mrf.mxu0  ;;  %8903 = vmatpush3.bf16.msra.mxu0 %v9785_v61  ;;  %v9820_v50 = vld [vmem:[%s12582_s4 + $0xc0] ss:$24 sps:$4 sm:$0xff]  }
 0x57f   :  { %8386 = vst [vmem:[#allocation3 + $0xa0] sm:$0xff] %v8168_v36   ;;  %8904 = vmatprep.subr.bf16.mxu0 %v9786_v20  ;;  %v9830_v36 = vld [vmem:[%s12582_s4 + $0xf4] ss:$24 sps:$4 sm:$0xff]  }
 0x580   :  { %v4122_v41 = vpop.f32.mrf.mxu0 }
 0x582   :  { %v9453_v13 = vpop.f32.mrf.mxu0  ;;  %8905 = vmatpush3.bf16.msra.mxu0 %v9787_v33 }
 0x583   :  { %v8183_v32 = vpack.c.bf16 %v9453_v13, %v9452_v0  ;;  %8906 = vmatprep.subr.bf16.mxu0 %v9788_v58  ;;  %v9828_v13 = vld [vmem:[%s12582_s4 + $0xf0] ss:$24 sps:$4 sm:$0xff]   ;;  %v9837_v58 = vld [vmem:[%s12582_s4 + $0x124] ss:$24 sps:$4 sm:$0xff]  }
 0x584   :  { %v4125_v39 = vpop.f32.mrf.mxu0 }
 0x585   :  { %8389 = vst [vmem:[#allocation3 + $0xb8] sm:$0xff] %v8183_v32   ;;  %v8178_v22 = vpack.c.bf16 %v4125_v39, %v4122_v41  ;;  %v9831_v32 = vld [vmem:[#allocation3 + $0xa8] sm:$0xff]  }
 0x586   :  { %v9456_v16 = vpop.f32.mrf.mxu0  ;;  %8907 = vmatpush3.bf16.msra.mxu0 %v9789_v5 }
 0x587   :  { %8388 = vst [vmem:[#allocation3 + $0xb0] sm:$0xff] %v8178_v22   ;;  %8908 = vmatprep.subr.bf16.mxu0 %v9790_v37  ;;  %v9833_v22 = vld [vmem:[#allocation3 + $0xa0] sm:$0xff]   ;;  %v9844_v37 = vld [vmem:[%s12582_s4 + $0x154] ss:$24 sps:$4 sm:$0xff]  }
 0x588   :  { %v4138_v35 = vpop.f32.mrf.mxu0 }
 0x58a   :  { %v9457_v31 = vpop.f32.mrf.mxu0  ;;  %8909 = vmatpush3.bf16.msra.mxu0 %v9791_v48 }
 0x58b   :  { %v8193_v63 = vpack.c.bf16 %v9457_v31, %v9456_v16  ;;  %9118 = vmatprep.subr.bf16.mxu0 %v9792_v24  ;;  %v9835_v16 = vld [vmem:[%s12582_s4 + $0x120] ss:$24 sps:$4 sm:$0xff]   ;;  %v9840_v31 = vld [vmem:[#allocation3 + $0x90] sm:$0xff]  }
 0x58c   :  { %v4141_v23 = vpop.f32.mrf.mxu0  ;;  %v9824_v0 = vld [vmem:[#allocation3 + $0xb8] sm:$0xff]  }
 0x58d   :  { %8391 = vst [vmem:[#allocation3 + $0xc8] sm:$0xff] %v8193_v63   ;;  %v8188_v60 = vpack.c.bf16 %v4141_v23, %v4138_v35  ;;  %5739 = vmatmul.mubr.bf16.vlgmr.msra.gmra.mxu0 %v9793_v46  ;;  %v9838_v35 = vld [vmem:[#allocation3 + $0x98] sm:$0xff]   ;;  %v9842_v46 = vld [vmem:[%s12582_s4 + $0x150] ss:$24 sps:$4 sm:$0xff]  }
 0x58e   :  { %v9460_v29 = vpop.f32.mrf.mxu0  ;;  %9119 = vmatpush3.bf16.msra.mxu0 %v9796_v1  ;;  %5746 = vmatprep.mubr.bf16.mxu0 %v9802_v43  ;;  %v9826_v41 = vld [vmem:[#allocation3 + $0xb0] sm:$0xff]   ;;  %v9850_v63 = vld [vmem:[%s12582_s4 + $0x184] ss:$24 sps:$4 sm:$0xff]   ;;  %v9845_v43 = vld [vmem:[#allocation3 + $0x88] sm:$0xff]  }
 0x58f   :  { %8390 = vst [vmem:[#allocation3 + $0xc0] sm:$0xff] %v8188_v60   ;;  %9120 = vmatprep.subr.bf16.mxu0 %v9797_v12  ;;  %v9847_v60 = vld [vmem:[#allocation3 + $0x80] sm:$0xff]   ;;  %v9856_v12 = vld [vmem:[%s12582_s4 + $0x1b4] ss:$24 sps:$4 sm:$0xff]  }
 0x590   :  { %v4154_v38 = vpop.f32.mrf.mxu0  ;;  %v9848_v1 = vld [vmem:[%s12582_s4 + $0x180] ss:$24 sps:$4 sm:$0xff]  }
 0x592   :  { %v9461_v42 = vpop.f32.mrf.mxu0  ;;  %9121 = vmatpush3.bf16.msra.mxu0 %v9798_v52  ;;  %v9854_v52 = vld [vmem:[%s12582_s4 + $0x1b0] ss:$24 sps:$4 sm:$0xff]  }
 0x593   :  { %v8203_v55 = vpack.c.bf16 %v9461_v42, %v9460_v29  ;;  %9122 = vmatprep.subr.bf16.mxu0 %v9799_v57  ;;  %v9851_v29 = vld [vmem:[%s12582_s4 + $0x8] ss:$24 sps:$4 sm:$0xff]   ;;  %v9857_v42 = vld [vmem:[%s12582_s4 + $0x38] ss:$24 sps:$4 sm:$0xff]   ;;  %v9862_v57 = vld [vmem:[%s12582_s4 + $0x1e4] ss:$24 sps:$4 sm:$0xff]  }
 0x594   :  { %v4157_v40 = vpop.f32.mrf.mxu0  ;;  %v9841_v24 = vld [vmem:[#allocation3 + $0xc8] sm:$0xff]  }
 0x595   :  { %8393 = vst [vmem:[#allocation3 + $0xd8] sm:$0xff] %v8203_v55   ;;  %v8198_v14 = vpack.c.bf16 %v4157_v40, %v4154_v38  ;;  %5747 = vmatmul.mubr.bf16.gmra.mxu0 %v9800_v30  ;;  %v9859_v38 = vld [vmem:[%s12582_s4 + $0x3c] ss:$24 sps:$4 sm:$0xff]   ;;  %v9865_v30 = vld [vmem:[%s12582_s4 + $0x6c] ss:$24 sps:$4 sm:$0xff]  }
 0x596   :  { %v9464_v59 = vpop.f32.mrf.mxu0  ;;  %9123 = vmatpush3.bf16.msra.mxu0 %v9803_v44  ;;  %5754 = vmatprep.mubr.bf16.mxu0 %v9809_v15  ;;  %v9846_v23 = vld [vmem:[#allocation3 + $0xc0] sm:$0xff]   ;;  %v9868_v40 = vld [vmem:[%s12582_s4 + $0x214] ss:$24 sps:$4 sm:$0xff]   ;;  %v9866_v44 = vld [vmem:[%s12582_s4 + $0x210] ss:$24 sps:$4 sm:$0xff]  }
 0x597   :  { %8392 = vst [vmem:[#allocation3 + $0xd0] sm:$0xff] %v8198_v14   ;;  %9124 = vmatprep.subr.bf16.mxu0 %v9804_v9  ;;  %v9860_v55 = vld [vmem:[%s12582_s4 + $0x1e0] ss:$24 sps:$4 sm:$0xff]   ;;  %v9871_v14 = vld [vmem:[%s12582_s4 + $0x9c] ss:$24 sps:$4 sm:$0xff]  }
 0x598   :  { %v4170_v18 = vpop.f32.mrf.mxu0  ;;  %v9863_v15 = vld [vmem:[%s12582_s4 + $0x68] ss:$24 sps:$4 sm:$0xff]   ;;  %v9874_v9 = vld [vmem:[%s12582_s4 + $0x244] ss:$24 sps:$4 sm:$0xff]  }
 0x59a   :  { %v9465_v4 = vpop.f32.mrf.mxu0  ;;  %9125 = vmatpush3.bf16.msra.mxu0 %v9805_v49  ;;  %v9872_v49 = vld [vmem:[%s12582_s4 + $0x240] ss:$24 sps:$4 sm:$0xff]  }
 0x59b   :  { %v8213_v28 = vpack.c.bf16 %v9465_v4, %v9464_v59  ;;  %9126 = vmatprep.subr.bf16.mxu0 %v9806_v26  ;;  %v9869_v59 = vld [vmem:[%s12582_s4 + $0x98] ss:$24 sps:$4 sm:$0xff]   ;;  %v9875_v4 = vld [vmem:[%s12582_s4 + $0xc8] ss:$24 sps:$4 sm:$0xff]   ;;  %v9880_v26 = vld [vmem:[%s12582_s4 + $0x274] ss:$24 sps:$4 sm:$0xff]  }
 0x59c   :  { %v4173_v25 = vpop.f32.mrf.mxu0  ;;  %v9834_v5 = vld [vmem:[#allocation3 + $0xd8] sm:$0xff]  }
 0x59d   :  { %8395 = vst [vmem:[#allocation3 + $0xe8] sm:$0xff] %v8213_v28   ;;  %v8208_v54 = vpack.c.bf16 %v4173_v25, %v4170_v18  ;;  %5755 = vmatmul.mubr.bf16.gmra.mxu0 %v9807_v21  ;;  %v9877_v18 = vld [vmem:[%s12582_s4 + $0xcc] ss:$24 sps:$4 sm:$0xff]   ;;  %v9883_v21 = vld [vmem:[%s12582_s4 + $0xfc] ss:$24 sps:$4 sm:$0xff]  }
 0x59e   :  { %v9468_v6 = vpop.f32.mrf.mxu0  ;;  %9127 = vmatpush3.bf16.msra.mxu0 %v9810_v17  ;;  %5762 = vmatprep.mubr.bf16.mxu0 %v9816_v8  ;;  %v9839_v48 = vld [vmem:[#allocation3 + $0xd0] sm:$0xff]   ;;  %v9886_v25 = vld [vmem:[%s12582_s4 + $0x2a4] ss:$24 sps:$4 sm:$0xff]   ;;  %v9884_v17 = vld [vmem:[%s12582_s4 + $0x2a0] ss:$24 sps:$4 sm:$0xff]  }
 0x59f   :  { %8394 = vst [vmem:[#allocation3 + $0xe0] sm:$0xff] %v8208_v54   ;;  %9128 = vmatprep.subr.bf16.mxu0 %v9811_v11  ;;  %v9878_v28 = vld [vmem:[%s12582_s4 + $0x270] ss:$24 sps:$4 sm:$0xff]   ;;  %v9889_v54 = vld [vmem:[%s12582_s4 + $0x12c] ss:$24 sps:$4 sm:$0xff]  }
 0x5a0   :  { %v4186_v51 = vpop.f32.mrf.mxu0  ;;  %v9881_v8 = vld [vmem:[%s12582_s4 + $0xf8] ss:$24 sps:$4 sm:$0xff]   ;;  %v9892_v11 = vld [vmem:[%s12582_s4 + $0x2d4] ss:$24 sps:$4 sm:$0xff]  }
 0x5a2   :  { %v9469_v45 = vpop.f32.mrf.mxu0  ;;  %9129 = vmatpush3.bf16.msra.mxu0 %v9812_v47  ;;  %v9890_v47 = vld [vmem:[%s12582_s4 + $0x2d0] ss:$24 sps:$4 sm:$0xff]  }
 0x5a3   :  { %v8223_v34 = vpack.c.bf16 %v9469_v45, %v9468_v6  ;;  %9130 = vmatprep.subr.bf16.mxu0 %v9813_v62  ;;  %v9887_v6 = vld [vmem:[%s12582_s4 + $0x128] ss:$24 sps:$4 sm:$0xff]   ;;  %v9893_v45 = vld [vmem:[%s12582_s4 + $0x158] ss:$24 sps:$4 sm:$0xff]   ;;  %v9898_v62 = vld [vmem:[%s12582_s4 + $0x18c] ss:$24 sps:$4 sm:$0xff]  }
 0x5a4   :  { %v4189_v2 = vpop.f32.mrf.mxu0  ;;  %v9827_v33 = vld [vmem:[#allocation3 + $0xe8] sm:$0xff]  }
 0x5a5   :  { %8397 = vst [vmem:[#allocation3 + $0xf8] sm:$0xff] %v8223_v34   ;;  %v8218_v10 = vpack.c.bf16 %v4189_v2, %v4186_v51  ;;  %5763 = vmatmul.mubr.bf16.gmra.mxu0 %v9814_v3  ;;  %v9895_v51 = vld [vmem:[%s12582_s4 + $0x15c] ss:$24 sps:$4 sm:$0xff]   ;;  %v9896_v34 = vld [vmem:[%s12582_s4 + $0x188] ss:$24 sps:$4 sm:$0xff]  }
 0x5a6   :  { %9131 = vmatpush3.bf16.msra.mxu0 %v9817_v56  ;;  %5770 = vmatprep.mubr.bf16.mxu0 %v9822_v27  ;;  %v9832_v39 = vld [vmem:[#allocation3 + $0xe0] sm:$0xff]   ;;  %v9901_v3 = vld [vmem:[%s12582_s4 + $0x14] ss:$24 sps:$4 sm:$0xff]   ;;  %v9899_v27 = vld [vmem:[%s12582_s4 + $0x10] ss:$24 sps:$4 sm:$0xff]  }
 0x5a7   :  { %8396 = vst [vmem:[#allocation3 + $0xf0] sm:$0xff] %v8218_v10   ;;  %9132 = vmatprep.subr.bf16.mxu0 %v9818_v53  ;;  %v9904_v2 = vld [vmem:[%s12582_s4 + $0x1bc] ss:$24 sps:$4 sm:$0xff]   ;;  %v9902_v56 = vld [vmem:[%s12582_s4 + $0x1b8] ss:$24 sps:$4 sm:$0xff]  }
 0x5a8   :  { %v9907_v10 = vld [vmem:[%s12582_s4 + $0x44] ss:$24 sps:$4 sm:$0xff]   ;;  %v9905_v53 = vld [vmem:[%s12582_s4 + $0x40] ss:$24 sps:$4 sm:$0xff]  }
 0x5aa   :  { %9133 = vmatpush3.bf16.msra.mxu0 %v9819_v7  ;;  %v9910_v7 = vld [vmem:[%s12582_s4 + $0x1ec] ss:$24 sps:$4 sm:$0xff]  }
 0x5ac   :  { %v9823_v61 = vld [vmem:[#allocation3 + $0xf8] sm:$0xff]  }
 0x5ad   :  { %5771 = vmatmul.mubr.bf16.gmra.mxu0 %v9820_v50  ;;  %9006 = vmatprep.subr.bf16.mxu1 %v9823_v61  ;;  %v9913_v50 = vld [vmem:[%s12582_s4 + $0x74] ss:$24 sps:$4 sm:$0xff]   ;;  %v9911_v61 = vld [vmem:[%s12582_s4 + $0x70] ss:$24 sps:$4 sm:$0xff]  }
 0x5ae   :  { %v9825_v20 = vld [vmem:[#allocation3 + $0xf0] sm:$0xff]   ;;  %9007 = vmatpush3.bf16.msra.mxu1 %v9824_v0  ;;  %5778 = vmatprep.mubr.bf16.mxu0 %v9830_v36  ;;  %v9908_v36 = vld [vmem:[%s12582_s4 + $0x1e8] ss:$24 sps:$4 sm:$0xff]  }
 0x5af   :  { %9008 = vmatprep.subr.bf16.mxu1 %v9825_v20  ;;  %v9916_v0 = vld [vmem:[%s12582_s4 + $0x21c] ss:$24 sps:$4 sm:$0xff]  }
 0x5b0   :  { %v9919_v20 = vld [vmem:[%s12582_s4 + $0xa4] ss:$24 sps:$4 sm:$0xff]  }
 0x5b2   :  { %9009 = vmatpush3.bf16.msra.mxu1 %v9826_v41  ;;  %v9914_v41 = vld [vmem:[%s12582_s4 + $0x218] ss:$24 sps:$4 sm:$0xff]  }
 0x5b3   :  { %9010 = vmatprep.subr.bf16.mxu1 %v9827_v33  ;;  %v9917_v33 = vld [vmem:[%s12582_s4 + $0xa0] ss:$24 sps:$4 sm:$0xff]  }
 0x5b5   :  { %5779 = vmatmul.mubr.bf16.gmra.mxu0 %v9828_v13  ;;  %v9922_v13 = vld [vmem:[%s12582_s4 + $0x24c] ss:$24 sps:$4 sm:$0xff]  }
 0x5b6   :  { %9011 = vmatpush3.bf16.msra.mxu1 %v9831_v32  ;;  %5786 = vmatprep.mubr.bf16.mxu0 %v9837_v58  ;;  %v9925_v58 = vld [vmem:[%s12582_s4 + $0xd4] ss:$24 sps:$4 sm:$0xff]   ;;  %v9920_v32 = vld [vmem:[%s12582_s4 + $0x248] ss:$24 sps:$4 sm:$0xff]  }
 0x5b7   :  { %9012 = vmatprep.subr.bf16.mxu1 %v9832_v39  ;;  %v9923_v39 = vld [vmem:[%s12582_s4 + $0xd0] ss:$24 sps:$4 sm:$0xff]  }
 0x5ba   :  { %9013 = vmatpush3.bf16.msra.mxu1 %v9833_v22  ;;  %v9928_v22 = vld [vmem:[%s12582_s4 + $0x27c] ss:$24 sps:$4 sm:$0xff]  }
 0x5bb   :  { %9014 = vmatprep.subr.bf16.mxu1 %v9834_v5  ;;  %v9931_v5 = vld [vmem:[%s12582_s4 + $0x104] ss:$24 sps:$4 sm:$0xff]  }
 0x5bd   :  { %5787 = vmatmul.mubr.bf16.gmra.mxu0 %v9835_v16  ;;  %v9926_v16 = vld [vmem:[%s12582_s4 + $0x278] ss:$24 sps:$4 sm:$0xff]  }
 0x5be   :  { %9015 = vmatpush3.bf16.msra.mxu1 %v9838_v35  ;;  %5794 = vmatprep.mubr.bf16.mxu0 %v9844_v37  ;;  %v9929_v37 = vld [vmem:[%s12582_s4 + $0x100] ss:$24 sps:$4 sm:$0xff]   ;;  %v9934_v35 = vld [vmem:[%s12582_s4 + $0x2ac] ss:$24 sps:$4 sm:$0xff]  }
 0x5bf   :  { %9016 = vmatprep.subr.bf16.mxu1 %v9839_v48  ;;  %v9937_v48 = vld [vmem:[%s12582_s4 + $0x134] ss:$24 sps:$4 sm:$0xff]  }
 0x5c2   :  { %9017 = vmatpush3.bf16.msra.mxu1 %v9840_v31  ;;  %v9932_v31 = vld [vmem:[%s12582_s4 + $0x2a8] ss:$24 sps:$4 sm:$0xff]  }
 0x5c3   :  { %9018 = vmatprep.subr.bf16.mxu1 %v9841_v24  ;;  %v9935_v24 = vld [vmem:[%s12582_s4 + $0x130] ss:$24 sps:$4 sm:$0xff]  }
 0x5c5   :  { %5795 = vmatmul.mubr.bf16.gmra.mxu0 %v9842_v46  ;;  %v9940_v46 = vld [vmem:[%s12582_s4 + $0x2dc] ss:$24 sps:$4 sm:$0xff]  }
 0x5c6   :  { %9019 = vmatpush3.bf16.msra.mxu1 %v9845_v43  ;;  %5802 = vmatprep.mubr.bf16.mxu0 %v9850_v63  ;;  %v9943_v63 = vld [vmem:[%s12582_s4 + $0x164] ss:$24 sps:$4 sm:$0xff]   ;;  %v9938_v43 = vld [vmem:[%s12582_s4 + $0x2d8] ss:$24 sps:$4 sm:$0xff]  }
 0x5c7   :  { %9020 = vmatprep.subr.bf16.mxu1 %v9846_v23  ;;  %v9941_v23 = vld [vmem:[%s12582_s4 + $0x160] ss:$24 sps:$4 sm:$0xff]  }
 0x5ca   :  { %9021 = vmatpush3.bf16.msra.mxu1 %v9847_v60  ;;  %v9946_v60 = vld [vmem:[%s12582_s4 + $0x194] ss:$24 sps:$4 sm:$0xff]  }
 0x5cd   :  { %5803 = vmatmul.mubr.bf16.gmra.mxu0 %v9848_v1  ;;  %5900 = vmatmul.mubr.bf16.vlgmr.msra.gmra.mxu1 %v9851_v29  ;;  %v9944_v1 = vld [vmem:[%s12582_s4 + $0x190] ss:$24 sps:$4 sm:$0xff]   ;;  %v9949_v29 = vld [vmem:[%s12582_s4 + $0x1c4] ss:$24 sps:$4 sm:$0xff]  }
 0x5ce   :  { %5810 = vmatprep.mubr.bf16.mxu0 %v9856_v12  ;;  %5907 = vmatprep.mubr.bf16.mxu1 %v9859_v38 }
 0x5d5   :  { %5811 = vmatmul.mubr.bf16.gmra.mxu0 %v9854_v52  ;;  %5908 = vmatmul.mubr.bf16.gmra.mxu1 %v9857_v42 }
 0x5d6   :  { %5818 = vmatprep.mubr.bf16.mxu0 %v9862_v57  ;;  %5915 = vmatprep.mubr.bf16.mxu1 %v9865_v30  ;;  %v9947_v57 = vld [vmem:[%s12582_s4 + $0x1c0] ss:$24 sps:$4 sm:$0xff]   ;;  %v9952_v30 = vld [vmem:[%s12582_s4 + $0x1f4] ss:$24 sps:$4 sm:$0xff]  }
 0x5dd   :  { %5819 = vmatmul.mubr.bf16.gmra.mxu0 %v9860_v55  ;;  %5916 = vmatmul.mubr.bf16.gmra.mxu1 %v9863_v15 }
 0x5de   :  { %5826 = vmatprep.mubr.bf16.mxu0 %v9868_v40  ;;  %5923 = vmatprep.mubr.bf16.mxu1 %v9871_v14 }
 0x5e5   :  { %5827 = vmatmul.mubr.bf16.gmra.mxu0 %v9866_v44  ;;  %5924 = vmatmul.mubr.bf16.gmra.mxu1 %v9869_v59 }
 0x5e6   :  { %5834 = vmatprep.mubr.bf16.mxu0 %v9874_v9  ;;  %5931 = vmatprep.mubr.bf16.mxu1 %v9877_v18  ;;  %v9950_v9 = vld [vmem:[%s12582_s4 + $0x1f0] ss:$24 sps:$4 sm:$0xff]   ;;  %v9955_v18 = vld [vmem:[%s12582_s4 + $0x224] ss:$24 sps:$4 sm:$0xff]  }
 0x5ed   :  { %5835 = vmatmul.mubr.bf16.gmra.mxu0 %v9872_v49  ;;  %5932 = vmatmul.mubr.bf16.gmra.mxu1 %v9875_v4 }
 0x5ee   :  { %5842 = vmatprep.mubr.bf16.mxu0 %v9880_v26  ;;  %5939 = vmatprep.mubr.bf16.mxu1 %v9883_v21 }
 0x5f5   :  { %5843 = vmatmul.mubr.bf16.gmra.mxu0 %v9878_v28  ;;  %5940 = vmatmul.mubr.bf16.gmra.mxu1 %v9881_v8 }
 0x5f6   :  { %5850 = vmatprep.mubr.bf16.mxu0 %v9886_v25  ;;  %5947 = vmatprep.mubr.bf16.mxu1 %v9889_v54  ;;  %v9953_v25 = vld [vmem:[%s12582_s4 + $0x220] ss:$24 sps:$4 sm:$0xff]   ;;  %v9958_v54 = vld [vmem:[%s12582_s4 + $0x254] ss:$24 sps:$4 sm:$0xff]  }
 0x5fd   :  { %5851 = vmatmul.mubr.bf16.gmra.mxu0 %v9884_v17  ;;  %5948 = vmatmul.mubr.bf16.gmra.mxu1 %v9887_v6 }
 0x5fe   :  { %5858 = vmatprep.mubr.bf16.mxu0 %v9892_v11  ;;  %5955 = vmatprep.mubr.bf16.mxu1 %v9895_v51 }
 0x605   :  { %5859 = vmatmul.mubr.bf16.gmra.mxu0 %v9890_v47  ;;  %5956 = vmatmul.mubr.bf16.gmra.mxu1 %v9893_v45 }
 0x606   :  { %5963 = vmatprep.mubr.bf16.mxu1 %v9898_v62  ;;  %6060 = vmatprep.mubr.bf16.mxu0 %v9901_v3  ;;  %v9956_v62 = vld [vmem:[%s12582_s4 + $0x250] ss:$24 sps:$4 sm:$0xff]   ;;  %v9961_v3 = vld [vmem:[%s12582_s4 + $0x284] ss:$24 sps:$4 sm:$0xff]  }
 0x60d   :  { %5964 = vmatmul.mubr.bf16.gmra.mxu1 %v9896_v34  ;;  %6061 = vmatmul.mubr.bf16.vlgmr.msra.gmra.mxu0 %v9899_v27 }
 0x60e   :  { %5971 = vmatprep.mubr.bf16.mxu1 %v9904_v2  ;;  %6068 = vmatprep.mubr.bf16.mxu0 %v9907_v10 }
 0x615   :  { %5972 = vmatmul.mubr.bf16.gmra.mxu1 %v9902_v56  ;;  %6069 = vmatmul.mubr.bf16.gmra.mxu0 %v9905_v53 }
 0x616   :  { %5979 = vmatprep.mubr.bf16.mxu1 %v9910_v7  ;;  %6076 = vmatprep.mubr.bf16.mxu0 %v9913_v50  ;;  %v9959_v7 = vld [vmem:[%s12582_s4 + $0x280] ss:$24 sps:$4 sm:$0xff]   ;;  %v9964_v50 = vld [vmem:[%s12582_s4 + $0x2b4] ss:$24 sps:$4 sm:$0xff]  }
 0x61d   :  { %5980 = vmatmul.mubr.bf16.gmra.mxu1 %v9908_v36  ;;  %6077 = vmatmul.mubr.bf16.gmra.mxu0 %v9911_v61 }
 0x61e   :  { %5987 = vmatprep.mubr.bf16.mxu1 %v9916_v0  ;;  %6084 = vmatprep.mubr.bf16.mxu0 %v9919_v20 }
 0x625   :  { %5988 = vmatmul.mubr.bf16.gmra.mxu1 %v9914_v41  ;;  %6085 = vmatmul.mubr.bf16.gmra.mxu0 %v9917_v33 }
 0x626   :  { %5995 = vmatprep.mubr.bf16.mxu1 %v9922_v13  ;;  %6092 = vmatprep.mubr.bf16.mxu0 %v9925_v58  ;;  %v9962_v13 = vld [vmem:[%s12582_s4 + $0x2b0] ss:$24 sps:$4 sm:$0xff]   ;;  %v9967_v58 = vld [vmem:[%s12582_s4 + $0x2e4] ss:$24 sps:$4 sm:$0xff]  }
 0x62d   :  { %5996 = vmatmul.mubr.bf16.gmra.mxu1 %v9920_v32  ;;  %6093 = vmatmul.mubr.bf16.gmra.mxu0 %v9923_v39 }
 0x62e   :  { %6003 = vmatprep.mubr.bf16.mxu1 %v9928_v22  ;;  %6100 = vmatprep.mubr.bf16.mxu0 %v9931_v5 }
 0x635   :  { %6004 = vmatmul.mubr.bf16.gmra.mxu1 %v9926_v16  ;;  %6101 = vmatmul.mubr.bf16.gmra.mxu0 %v9929_v37 }
 0x636   :  { %6011 = vmatprep.mubr.bf16.mxu1 %v9934_v35  ;;  %6108 = vmatprep.mubr.bf16.mxu0 %v9937_v48  ;;  %v9965_v35 = vld [vmem:[%s12582_s4 + $0x2e0] ss:$24 sps:$4 sm:$0xff]   ;;  %s6297_s4 = sld [smem:[#allocation7]] }
 0x63d   :  { %6012 = vmatmul.mubr.bf16.gmra.mxu1 %v9932_v31  ;;  %6109 = vmatmul.mubr.bf16.gmra.mxu0 %v9935_v24 }
 0x63e   :  { %6019 = vmatprep.mubr.bf16.mxu1 %v9940_v46  ;;  %6116 = vmatprep.mubr.bf16.mxu0 %v9943_v63 }
 0x645   :  { %6020 = vmatmul.mubr.bf16.gmra.mxu1 %v9938_v43  ;;  %6117 = vmatmul.mubr.bf16.gmra.mxu0 %v9941_v23 }
 0x646   :  { %6124 = vmatprep.mubr.bf16.mxu0 %v9946_v60 }
 0x64d   :  { %v8910_v12 = vpop.f32.mrf.mxu0  ;;  %6125 = vmatmul.mubr.bf16.gmra.mxu0 %v9944_v1 }
 0x64e   :  { %6132 = vmatprep.mubr.bf16.mxu0 %v9949_v29 }
 0x64f   :  { %v8911_v38 = vpop.f32.mrf.mxu0 }
 0x650   :  { %v11665_v52 = vadd.f32 %v8911_v38, %v8910_v12 }
 0x651   :  { %v8913_v42 = vpop.f32.mrf.mxu0 }
 0x653   :  { %v8914_v55 = vpop.f32.mrf.mxu0 }
 0x654   :  { %v11673_v15 = vadd.f32 %v8914_v55, %v8913_v42 }
 0x655   :  { %v8916_v40 = vpop.f32.mrf.mxu0  ;;  %6133 = vmatmul.mubr.bf16.gmra.mxu0 %v9947_v57 }
 0x656   :  { %6140 = vmatprep.mubr.bf16.mxu0 %v9952_v30 }
 0x657   :  { %v8917_v14 = vpop.f32.mrf.mxu0 }
 0x658   :  { %v11675_v44 = vadd.f32 %v8917_v14, %v8916_v40 }
 0x659   :  { %v8919_v59 = vpop.f32.mrf.mxu0 }
 0x65b   :  { %v8920_v49 = vpop.f32.mrf.mxu0 }
 0x65c   :  { %v11683_v4 = vadd.f32 %v8920_v49, %v8919_v59 }
 0x65d   :  { %v8922_v26 = vpop.f32.mrf.mxu0  ;;  %6141 = vmatmul.mubr.bf16.gmra.mxu0 %v9950_v9 }
 0x65e   :  { %6148 = vmatprep.mubr.bf16.mxu0 %v9955_v18 }
 0x65f   :  { %v8923_v21 = vpop.f32.mrf.mxu0 }
 0x660   :  { %v11685_v28 = vadd.f32 %v8923_v21, %v8922_v26 }
 0x661   :  { %v8925_v8 = vpop.f32.mrf.mxu0 }
 0x663   :  { %v8926_v17 = vpop.f32.mrf.mxu0 }
 0x664   :  { %v11693_v6 = vadd.f32 %v8926_v17, %v8925_v8 }
 0x665   :  { %v8928_v11 = vpop.f32.mrf.mxu0  ;;  %6149 = vmatmul.mubr.bf16.gmra.mxu0 %v9953_v25 }
 0x666   :  { %6156 = vmatprep.mubr.bf16.mxu0 %v9958_v54 }
 0x667   :  { %v8929_v51 = vpop.f32.mrf.mxu0 }
 0x668   :  { %v11695_v47 = vadd.f32 %v8929_v51, %v8928_v11 }
 0x669   :  { %v8931_v45 = vpop.f32.mrf.mxu0 }
 0x66b   :  { %v8932_v34 = vpop.f32.mrf.mxu0 }
 0x66c   :  { %v11703_v27 = vadd.f32 %v8932_v34, %v8931_v45 }
 0x66d   :  { %v8934_v2 = vpop.f32.mrf.mxu0  ;;  %6157 = vmatmul.mubr.bf16.gmra.mxu0 %v9956_v62 }
 0x66e   :  { %6164 = vmatprep.mubr.bf16.mxu0 %v9961_v3 }
 0x66f   :  { %v8935_v10 = vpop.f32.mrf.mxu0 }
 0x670   :  { %v11705_v56 = vadd.f32 %v8935_v10, %v8934_v2 }
 0x671   :  { %v8937_v53 = vpop.f32.mrf.mxu0 }
 0x673   :  { %v8938_v36 = vpop.f32.mrf.mxu0 }
 0x674   :  { %v11713_v61 = vadd.f32 %v8938_v36, %v8937_v53 }
 0x675   :  { %v8940_v0 = vpop.f32.mrf.mxu0  ;;  %6165 = vmatmul.mubr.bf16.gmra.mxu0 %v9959_v7 }
 0x676   :  { %6172 = vmatprep.mubr.bf16.mxu0 %v9964_v50 }
 0x677   :  { %v8941_v20 = vpop.f32.mrf.mxu0 }
 0x678   :  { %v11715_v41 = vadd.f32 %v8941_v20, %v8940_v0 }
 0x679   :  { %v8943_v33 = vpop.f32.mrf.mxu0 }
 0x67b   :  { %v8944_v32 = vpop.f32.mrf.mxu0 }
 0x67c   :  { %v11723_v39 = vadd.f32 %v8944_v32, %v8943_v33 }
 0x67d   :  { %v8946_v22 = vpop.f32.mrf.mxu0  ;;  %6173 = vmatmul.mubr.bf16.gmra.mxu0 %v9962_v13 }
 0x67e   :  { %6180 = vmatprep.mubr.bf16.mxu0 %v9967_v58 }
 0x67f   :  { %v8947_v5 = vpop.f32.mrf.mxu0 }
 0x680   :  { %v11725_v16 = vadd.f32 %v8947_v5, %v8946_v22 }
 0x681   :  { %v8949_v37 = vpop.f32.mrf.mxu0 }
 0x683   :  { %v8950_v48 = vpop.f32.mrf.mxu0 }
 0x684   :  { %v11730_v31 = vadd.f32 %v8950_v48, %v8949_v37 }
 0x685   :  { %v8952_v24 = vpop.f32.mrf.mxu0  ;;  %6181 = vmatmul.mubr.bf16.gmra.mxu0 %v9965_v35 }
 0x687   :  { %v8953_v46 = vpop.f32.mrf.mxu0 }
 0x688   :  { %v11732_v63 = vadd.f32 %v8953_v46, %v8952_v24 }
 0x689   :  { %v8955_v43 = vpop.f32.mrf.mxu0 }
 0x68b   :  { %v8956_v23 = vpop.f32.mrf.mxu0 }
 0x68c   :  { %v11734_v60 = vadd.f32 %v8956_v23, %v8955_v43 }
 0x68d   :  { %v8958_v1 = vpop.f32.mrf.mxu0  ;;  %v11736_v29 = vpop.f32.mrf.mxu1 }
 0x68e   :  { %12715 = vst [vmem:[#allocation15_spill] sm:$0xff] %v11734_v60 }
 0x68f   :  { %v8959_v12 = vpop.f32.mrf.mxu0  ;;  %v11738_v38 = vpop.f32.mrf.mxu1 }
 0x690   :  { %v11740_v42 = vadd.f32 %v8959_v12, %v8958_v1 }
 0x691   :  { %v8961_v57 = vpop.f32.mrf.mxu0  ;;  %v11742_v30 = vpop.f32.mrf.mxu1 }
 0x692   :  { %12716 = vst [vmem:[#allocation18_spill] sm:$0xff] %v11740_v42 }
 0x693   :  { %v8962_v55 = vpop.f32.mrf.mxu0  ;;  %v11744_v40 = vpop.f32.mrf.mxu1 }
 0x694   :  { %v11746_v14 = vadd.f32 %v8962_v55, %v8961_v57 }
 0x695   :  { %v8964_v59 = vpop.f32.mrf.mxu0  ;;  %v11748_v9 = vpop.f32.mrf.mxu1 }
 0x696   :  { %12717 = vst [vmem:[#allocation22_spill] sm:$0xff] %v11746_v14 }
 0x697   :  { %v8965_v18 = vpop.f32.mrf.mxu0  ;;  %v11750_v49 = vpop.f32.mrf.mxu1 }
 0x698   :  { %v11752_v26 = vadd.f32 %v8965_v18, %v8964_v59 }
 0x699   :  { %v8967_v21 = vpop.f32.mrf.mxu0  ;;  %v11754_v8 = vpop.f32.mrf.mxu1 }
 0x69a   :  { %12718 = vst [vmem:[#allocation23_spill] sm:$0xff] %v11752_v26 }
 0x69b   :  { %v8968_v25 = vpop.f32.mrf.mxu0  ;;  %v11756_v54 = vpop.f32.mrf.mxu1 }
 0x69c   :  { %v11758_v17 = vadd.f32 %v8968_v25, %v8967_v21 }
 0x69d   :  { %v8970_v11 = vpop.f32.mrf.mxu0  ;;  %v11760_v51 = vpop.f32.mrf.mxu1 }
 0x69e   :  { %12719 = vst [vmem:[#allocation21_spill] sm:$0xff] %v11758_v17 }
 0x69f   :  { %v8971_v45 = vpop.f32.mrf.mxu0  ;;  %v11762_v62 = vpop.f32.mrf.mxu1 }
 0x6a0   :  { %v11764_v3 = vadd.f32 %v8971_v45, %v8970_v11 }
 0x6a1   :  { %v8973_v34 = vpop.f32.mrf.mxu0  ;;  %v11766_v2 = vpop.f32.mrf.mxu1 }
 0x6a2   :  { %12720 = vst [vmem:[#allocation24_spill] sm:$0xff] %v11764_v3 }
 0x6a3   :  { %v8974_v10 = vpop.f32.mrf.mxu0  ;;  %v11768_v53 = vpop.f32.mrf.mxu1 }
 0x6a4   :  { %v11770_v7 = vadd.f32 %v8974_v10, %v8973_v34 }
 0x6a5   :  { %v8976_v50 = vpop.f32.mrf.mxu0  ;;  %v11772_v36 = vpop.f32.mrf.mxu1 }
 0x6a6   :  { %12721 = vst [vmem:[#allocation25_spill] sm:$0xff] %v11770_v7 }
 0x6a7   :  { %v8977_v0 = vpop.f32.mrf.mxu0  ;;  %v11774_v20 = vpop.f32.mrf.mxu1 }
 0x6a8   :  { %v11776_v33 = vadd.f32 %v8977_v0, %v8976_v50 }
 0x6a9   :  { %v8979_v13 = vpop.f32.mrf.mxu0  ;;  %v11778_v58 = vpop.f32.mrf.mxu1 }
 0x6aa   :  { %12722 = vst [vmem:[#allocation26_spill] sm:$0xff] %v11776_v33 }
 0x6ab   :  { %v8980_v32 = vpop.f32.mrf.mxu0  ;;  %v11780_v22 = vpop.f32.mrf.mxu1 }
 0x6ac   :  { %v11782_v5 = vadd.f32 %v8980_v32, %v8979_v13 }
 0x6ad   :  { %v8982_v37 = vpop.f32.mrf.mxu0  ;;  %v11784_v35 = vpop.f32.mrf.mxu1 }
 0x6ae   :  { %12723 = vst [vmem:[#allocation28_spill] sm:$0xff] %v11782_v5 }
 0x6af   :  { %v8983_v48 = vpop.f32.mrf.mxu0  ;;  %v11786_v24 = vpop.f32.mrf.mxu1 }
 0x6b0   :  { %v11788_v46 = vadd.f32 %v8983_v48, %v8982_v37 }
 0x6b1   :  { %v8985_v43 = vpop.f32.mrf.mxu0  ;;  %v11790_v23 = vpop.f32.mrf.mxu1 }
 0x6b2   :  { %12724 = vst [vmem:[#allocation29_spill] sm:$0xff] %v11788_v46 }
 0x6b3   :  { %v8986_v1 = vpop.f32.mrf.mxu0  ;;  %v11792_v12 = vpop.f32.mrf.mxu1 }
 0x6b4   :  { %v11794_v57 = vadd.f32 %v8986_v1, %v8985_v43 }
 0x6b5   :  { %v8988_v55 = vpop.f32.mrf.mxu0  ;;  %v11796_v59 = vpop.f32.mrf.mxu1 }
 0x6b6   :  { %12725 = vst [vmem:[#allocation31_spill] sm:$0xff] %v11794_v57 }
 0x6b7   :  { %v8989_v18 = vpop.f32.mrf.mxu0  ;;  %v11798_v21 = vpop.f32.mrf.mxu1 }
 0x6b8   :  { %v11800_v25 = vadd.f32 %v8989_v18, %v8988_v55 }
 0x6b9   :  { %v8991_v11 = vpop.f32.mrf.mxu0  ;;  %v11802_v45 = vpop.f32.mrf.mxu1 }
 0x6ba   :  { %12726 = vst [vmem:[#allocation32_spill] sm:$0xff] %v11800_v25 }
 0x6bb   :  { %v8992_v34 = vpop.f32.mrf.mxu0  ;;  %v11804_v10 = vpop.f32.mrf.mxu1 }
 0x6bc   :  { %v11806_v50 = vadd.f32 %v8992_v34, %v8991_v11 }
 0x6bd   :  { %v8994_v0 = vpop.f32.mrf.mxu0  ;;  %v11808_v13 = vpop.f32.mrf.mxu1 }
 0x6be   :  { %12727 = vst [vmem:[#allocation27_spill] sm:$0xff] %v11806_v50 }
 0x6bf   :  { %v8995_v32 = vpop.f32.mrf.mxu0  ;;  %v11810_v37 = vpop.f32.mrf.mxu1 }
 0x6c0   :  { %v11812_v48 = vadd.f32 %v8995_v32, %v8994_v0 }
 0x6c1   :  { %v8997_v43 = vpop.f32.mrf.mxu0  ;;  %v11814_v1 = vpop.f32.mrf.mxu1 }
 0x6c2   :  { %12728 = vst [vmem:[#allocation30_spill] sm:$0xff] %v11812_v48 }
 0x6c3   :  { %v8998_v55 = vpop.f32.mrf.mxu0  ;;  %v11816_v18 = vpop.f32.mrf.mxu1 }
 0x6c4   :  { %v11818_v25 = vadd.f32 %v8998_v55, %v8997_v43 }
 0x6c5   :  { %v9000_v46 = vpop.f32.mrf.mxu0  ;;  %v11820_v57 = vpop.f32.mrf.mxu1 }
 0x6c6   :  { %12729 = vst [vmem:[#allocation34_spill] sm:$0xff] %v11818_v25 }
 0x6c7   :  { %v9001_v11 = vpop.f32.mrf.mxu0  ;;  %v11822_v34 = vpop.f32.mrf.mxu1 }
 0x6c8   :  { %v11824_v50 = vadd.f32 %v9001_v11, %v9000_v46 }
 0x6c9   :  { %v9003_v5 = vpop.f32.mrf.mxu0  ;;  %v11826_v33 = vpop.f32.mrf.mxu1 }
 0x6ca   :  { %12730 = vst [vmem:[#allocation35_spill] sm:$0xff] %v11824_v50  ;;  %12731 = vst [vmem:[#allocation33_spill] sm:$0xff] %v11826_v33 }
 0x6cb   :  { %v9004_v0 = vpop.f32.mrf.mxu0  ;;  %v11828_v32 = vpop.f32.mrf.mxu1 }
 0x6cc   :  { %12732 = vst [vmem:[#allocation36_spill] sm:$0xff] %v11828_v32  ;;  %v11830_v48 = vadd.f32 %v9004_v0, %v9003_v5  ;;  %v9027_v5 = vadd.f32 %v11744_v40, %v11742_v30  ;;  %v9024_v0 = vadd.f32 %v11738_v38, %v11736_v29  ;;  %v9036_v38 = vadd.f32 %v11762_v62, %v11760_v51 }
 0x6cd   :  { %v11832_v7 = vpop.f32.mrf.mxu1  ;;  %v9134_v43 = vpop.f32.mrf.mxu0 }
 0x6ce   :  { %12733 = vst [vmem:[#allocation37_spill] sm:$0xff] %v11830_v48  ;;  %12734 = vst [vmem:[#allocation39_spill] sm:$0xff] %v11832_v7  ;;  %v5902_v30 = vadd.f32 %v9024_v0, %v11665_v52 }
 0x6cf   :  { %v11834_v55 = vpop.f32.mrf.mxu1  ;;  %v9135_v25 = vpop.f32.mrf.mxu0 }
 0x6d0   :  { %12735 = vst [vmem:[#allocation11_spill] sm:$0xff] %v11834_v55  ;;  %v9030_v55 = vadd.f32 %v11750_v49, %v11748_v9  ;;  %v9136_v32 = vadd.f32 %v9135_v25, %v9134_v43 }
 0x6d1   :  { %v11836_v3 = vpop.f32.mrf.mxu1  ;;  %v9137_v17 = vpop.f32.mrf.mxu0 }
 0x6d2   :  { %12736 = vst [vmem:[#allocation12_spill] sm:$0xff] %v11836_v3  ;;  %v9033_v3 = vadd.f32 %v11756_v54, %v11754_v8  ;;  %v5910_v29 = vadd.f32 %v9030_v55, %v11675_v44  ;;  %v9042_v44 = vadd.f32 %v11774_v20, %v11772_v36 }
 0x6d3   :  { %v9138_v26 = vpop.f32.mrf.mxu0  ;;  %v11838_v46 = vpop.f32.mrf.mxu1 }
 0x6d4   :  { %12737 = vst [vmem:[#allocation38_spill] sm:$0xff] %v11838_v46  ;;  %v9139_v7 = vadd.f32 %v9138_v26, %v9137_v17  ;;  %v5913_v26 = vadd.f32 %v9033_v3, %v11683_v4  ;;  %v11864_v17 = vadd.f32 %v9136_v32, %v5902_v30  ;;  %v5926_v36 = vadd.f32 %v9042_v44, %v11695_v47 }
 0x6d5   :  { %v9140_v11 = vpop.f32.mrf.mxu0  ;;  %v11840_v42 = vpop.f32.mrf.mxu1 }
 0x6d6   :  { %12738 = vst [vmem:[#allocation40_spill] sm:$0xff] %v11840_v42  ;;  %v5905_v42 = vadd.f32 %v9027_v5, %v11673_v15  ;;  %v9039_v15 = vadd.f32 %v11768_v53, %v11766_v2 }
 0x6d7   :  { %v9141_v50 = vpop.f32.mrf.mxu0  ;;  %v11850_v46 = vpop.f32.mrf.mxu1 }
 0x6d8   :  { %v9142_v33 = vadd.f32 %v9141_v50, %v9140_v11  ;;  %v11857_v9 = vadd.f32 %v9139_v7, %v5905_v42  ;;  %v5918_v42 = vadd.f32 %v9036_v38, %v11685_v28  ;;  %v5921_v53 = vadd.f32 %v9039_v15, %v11693_v6 }
 0x6d9   :  { %v9143_v14 = vpop.f32.mrf.mxu0  ;;  %v11860_v8 = vpop.f32.mrf.mxu1  ;;  %v9045_v28 = vadd.f32 %v11780_v22, %v11778_v58 }
 0x6da   :  { %v11866_v52 = vadd.f32 %v9142_v33, %v5910_v29  ;;  %v6229_v4 = vadd.f32 %v11857_v9, %v11864_v17 }
 0x6db   :  { %v9144_v48 = vpop.f32.mrf.mxu0  ;;  %v11875_v3 = vpop.f32.mrf.mxu1  ;;  %v5929_v5 = vadd.f32 %v9045_v28, %v11703_v27  ;;  %v9054_v28 = vadd.f32 %v11798_v21, %v11796_v59  ;;  %v9060_v21 = vadd.f32 %v11810_v37, %v11808_v13 }
 0x6dc   :  { %v9145_v49 = vadd.f32 %v9144_v48, %v9143_v14  ;;  %v6230_v7 = vadd.f32 %v6229_v4, %v11866_v52 }
 0x6dd   :  { %v9146_v60 = vpop.f32.mrf.mxu0  ;;  %v11887_v32 = vpop.f32.mrf.mxu1  ;;  %v5942_v59 = vadd.f32 %v9054_v28, %v11715_v41  ;;  %v9066_v41 = vadd.f32 %v11822_v34, %v11820_v57  ;;  %v5950_v37 = vadd.f32 %v9060_v21, %v11725_v16  ;;  %v12740_v16 = vld [vmem:[#allocation36_spill] sm:$0xff] }
 0x6de   :  { %v11873_v14 = vadd.f32 %v9145_v49, %v5913_v26 }
 0x6df   :  { %v9147_v40 = vpop.f32.mrf.mxu0  ;;  %v11894_v30 = vpop.f32.mrf.mxu1  ;;  %v5958_v57 = vadd.f32 %v9066_v41, %v11732_v63 }
 0x6e0   :  { %v9148_v25 = vadd.f32 %v9147_v40, %v9146_v60  ;;  %v6231_v33 = vadd.f32 %v6230_v7, %v11873_v14 }
 0x6e1   :  { %v9149_v54 = vpop.f32.mrf.mxu0  ;;  %v11900_v49 = vpop.f32.mrf.mxu1 }
 0x6e2   :  { %v11879_v60 = vadd.f32 %v9148_v25, %v5918_v42 }
 0x6e3   :  { %v9150_v51 = vpop.f32.mrf.mxu0  ;;  %v11902_v27 = vpop.f32.mrf.mxu1 }
 0x6e4   :  { %v9151_v62 = vadd.f32 %v9150_v51, %v9149_v54  ;;  %v6232_v6 = vadd.f32 %v6231_v33, %v11879_v60 }
 0x6e5   :  { %v9152_v2 = vpop.f32.mrf.mxu0 }
 0x6e6   :  { %v11885_v50 = vadd.f32 %v9151_v62, %v5921_v53  ;;  %v11904_v62 = vpop.f32.mrf.mxu1  ;;  %v9051_v53 = vadd.f32 %v11792_v12, %v11790_v23 }
 0x6e7   :  { %v9153_v20 = vpop.f32.mrf.mxu0 }
 0x6e8   :  { %v9154_v48 = vadd.f32 %v9153_v20, %v9152_v2  ;;  %v6233_v47 = vadd.f32 %v6232_v6, %v11885_v50  ;;  %v11914_v6 = vpop.f32.mrf.mxu1 }
 0x6e9   :  { %v9155_v43 = vpop.f32.mrf.mxu0 }
 0x6ea   :  { %v11890_v55 = vadd.f32 %v9154_v48, %v5926_v36  ;;  %v9048_v36 = vadd.f32 %v11786_v24, %v11784_v35 }
 0x6eb   :  { %v9156_v11 = vpop.f32.mrf.mxu0 }
 0x6ec   :  { %v9157_v0 = vadd.f32 %v9156_v11, %v9155_v43  ;;  %v6234_v22 = vadd.f32 %v6233_v47, %v11890_v55  ;;  %v9057_v43 = vadd.f32 %v11804_v10, %v11802_v45  ;;  %v5934_v24 = vadd.f32 %v9048_v36, %v11705_v56 }
 0x6ed   :  { %v9158_v58 = vpop.f32.mrf.mxu0 }
 0x6ee   :  { %v11897_v40 = vadd.f32 %v9157_v0, %v5929_v5  ;;  %v5937_v5 = vadd.f32 %v9051_v53, %v11713_v61  ;;  %v5945_v61 = vadd.f32 %v9057_v43, %v11723_v39  ;;  %v11926_v0 = vpop.f32.mrf.mxu1 }
 0x6ef   :  { %v9159_v29 = vpop.f32.mrf.mxu0 }
 0x6f0   :  { %v6235_v38 = vadd.f32 %v6234_v22, %v11897_v40  ;;  %v9160_v47 = vadd.f32 %v9159_v29, %v9158_v58  ;;  %v9063_v22 = vadd.f32 %v11816_v18, %v11814_v1 }
 0x6f1   :  { %v9161_v26 = vpop.f32.mrf.mxu0 }
 0x6f2   :  { %v6236_v54 = vrot.slane %v6235_v38, 4  ;;  %v11930_v29 = vadd.f32 %v9160_v47, %v5934_v24  ;;  %v5953_v18 = vadd.f32 %v9063_v22, %v11730_v31 }
 0x6f3   :  { %v9162_v15 = vpop.f32.mrf.mxu0 }
 0x6f4   :  { %v6237_v25 = vadd.f32 %v6236_v54, %v6235_v38  ;;  %v9163_v33 = vadd.f32 %v9162_v15, %v9161_v26  ;;  %v11941_v15 = vpop.f32.mrf.mxu1 }
 0x6f5   :  { %v9164_v44 = vpop.f32.mrf.mxu0 }
 0x6f6   :  { %v6238_v51 = vrot.slane %v6237_v25, 2  ;;  %v11923_v45 = vadd.f32 %v9163_v33, %v5937_v5  ;;  %v12741_v33 = vld [vmem:[#allocation15_spill] sm:$0xff] }
 0x6f7   :  { %v9165_v42 = vpop.f32.mrf.mxu0 }
 0x6f8   :  { %v6239_v4 = vadd.f32 %v6238_v51, %v6237_v25  ;;  %v9166_v23 = vadd.f32 %v9165_v42, %v9164_v44  ;;  %v6361_v39 = vadd.f32 %v11923_v45, %v11930_v29  ;;  %v12739_v51 = vld [vmem:[#allocation33_spill] sm:$0xff] }
 0x6f9   :  { %v9167_v2 = vpop.f32.mrf.mxu0  ;;  %v9069_v42 = vadd.f32 %v12740_v16, %v12739_v51 }
 0x6fa   :  { %v6240_v7 = vrot.slane %v6239_v4, 1  ;;  %v11932_v56 = vadd.f32 %v9166_v23, %v5942_v59 }
 0x6fb   :  { %v9168_v20 = vpop.f32.mrf.mxu0 }
 0x6fc   :  { %v6241_v48 = vadd.f32 %v6240_v7, %v6239_v4  ;;  %v9169_v10 = vadd.f32 %v9168_v20, %v9167_v2  ;;  %v6362_v25 = vadd.f32 %v6361_v39, %v11932_v56  ;;  %v11953_v7 = vpop.f32.mrf.mxu1 }
 0x6fd   :  { %v9170_v11 = vpop.f32.mrf.mxu0 }
 0x6fe   :  { %6245 = vadd.xlane.f32.xlu1 %v6241_v48  ;;  %v6242_v35 = vsel %vm62_vm0, %v6241_v48, 0.0  ;;  %v11939_v26 = vadd.f32 %v9169_v10, %v5945_v61  ;;  %v5961_v48 = vadd.f32 %v9069_v42, %v12741_v33  ;;  %v12746_v42 = vld [vmem:[#allocation40_spill] sm:$0xff] }
 0x6ff   :  { %v9171_v12 = vpop.f32.mrf.mxu0  ;;  %6243 = vadd.xlane.f32.xlu0 %v6242_v35 }
 0x700   :  { %v9172_v38 = vadd.f32 %v9171_v12, %v9170_v11  ;;  %v6363_v4 = vadd.f32 %v6362_v25, %v11939_v26  ;;  %v11960_v11 = vpop.f32.mrf.mxu1 }
 0x701   :  { %v9173_v58 = vpop.f32.mrf.mxu0 }
 0x702   :  { %v11945_v44 = vadd.f32 %v9172_v38, %v5950_v37  ;;  %v11966_v12 = vpop.f32.mrf.mxu1 }
 0x703   :  { %v9174_v13 = vpop.f32.mrf.mxu0 }
 0x704   :  { %v9175_v54 = vadd.f32 %v9174_v13, %v9173_v58  ;;  %v6364_v31 = vadd.f32 %v6363_v4, %v11945_v44  ;;  %v11968_v58 = vpop.f32.mrf.mxu1  ;;  %v9078_v4 = vadd.f32 %v11850_v46, %v12746_v42  ;;  %v12749_v46 = vld [vmem:[#allocation23_spill] sm:$0xff] }
 0x705   :  { %v9176_v1 = vpop.f32.mrf.mxu0 }
 0x706   :  { %v11951_v2 = vadd.f32 %v9175_v54, %v5953_v18  ;;  %v11970_v37 = vpop.f32.mrf.mxu1  ;;  %v12742_v54 = vld [vmem:[#allocation12_spill] sm:$0xff] }
 0x707   :  { %v9177_v34 = vpop.f32.mrf.mxu0 }
 0x708   :  { %v9178_v53 = vadd.f32 %v9177_v34, %v9176_v1  ;;  %v6365_v63 = vadd.f32 %v6364_v31, %v11951_v2  ;;  %v12743_v1 = vld [vmem:[#allocation38_spill] sm:$0xff]  ;;  %v12745_v34 = vld [vmem:[#allocation11_spill] sm:$0xff]  ;;  %v9081_v31 = vadd.f32 %v11875_v3, %v11860_v8  ;;  %v9084_v8 = vadd.f32 %v11894_v30, %v11887_v32  ;;  %v12751_v32 = vld [vmem:[#allocation24_spill] sm:$0xff] }
 0x709   :  { %v9179_v36 = vpop.f32.mrf.mxu0  ;;  %v9075_v18 = vadd.f32 %v12743_v1, %v12742_v54 }
 0x70a   :  { %v11956_v20 = vadd.f32 %v9178_v53, %v5958_v57  ;;  %v12744_v57 = vld [vmem:[#allocation39_spill] sm:$0xff]  ;;  %v5982_v30 = vadd.f32 %v9084_v8, %v12751_v32 }
 0x70b   :  { %v9180_v28 = vpop.f32.mrf.mxu0  ;;  %v9072_v51 = vadd.f32 %v12745_v34, %v12744_v57 }
 0x70c   :  { %v9181_v43 = vadd.f32 %v9180_v28, %v9179_v36  ;;  %v6366_v47 = vadd.f32 %v6365_v63, %v11956_v20  ;;  %v11980_v28 = vpop.f32.mrf.mxu1 }
 0x70d   :  { %v9182_v5 = vpop.f32.mrf.mxu0 }
 0x70e   :  { %v11963_v23 = vadd.f32 %v9181_v43, %v5961_v48  ;;  %v12747_v48 = vld [vmem:[#allocation22_spill] sm:$0xff] }
 0x70f   :  { %v9183_v35 = vpop.f32.mrf.mxu0  ;;  %v5969_v63 = vadd.f32 %v9075_v18, %v12747_v48 }
 0x710   :  { %v6367_v24 = vadd.f32 %v6366_v47, %v11963_v23  ;;  %v9184_v43 = vadd.f32 %v9183_v35, %v9182_v5  ;;  %v9103_v5 = vpop.f32.mrf.mxu1 }
 0x711   :  { %v9185_v59 = vpop.f32.mrf.mxu0 }
 0x712   :  { %v6368_v21 = vrot.slane %v6367_v24, 4 }
 0x713   :  { %v9186_v10 = vpop.f32.mrf.mxu0 }
 0x714   :  { %v6369_v61 = vadd.f32 %v6368_v21, %v6367_v24  ;;  %v9187_v53 = vadd.f32 %v9186_v10, %v9185_v59  ;;  %v12748_v21 = vld [vmem:[#allocation18_spill] sm:$0xff]  ;;  %v5974_v59 = vadd.f32 %v9078_v4, %v12749_v46 }
 0x715   :  { %v9188_v22 = vpop.f32.mrf.mxu0 }
 0x716   :  { %v6370_v38 = vrot.slane %v6369_v61, 2  ;;  %v11989_v3 = vadd.f32 %v9187_v53, %v5969_v63 }
 0x717   :  { %v9189_v41 = vpop.f32.mrf.mxu0 }
 0x718   :  { %v6371_v13 = vadd.f32 %v6370_v38, %v6369_v61  ;;  %v9190_v47 = vadd.f32 %v9189_v41, %v9188_v22  ;;  %v5966_v61 = vadd.f32 %v9072_v51, %v12748_v21  ;;  %v9087_v22 = vadd.f32 %v11902_v27, %v11900_v49  ;;  %v12752_v49 = vld [vmem:[#allocation25_spill] sm:$0xff] }
 0x719   :  { %v9191_v39 = vpop.f32.mrf.mxu0 }
 0x71a   :  { %v6372_v25 = vrot.slane %v6371_v13, 1  ;;  %v11994_v41 = vadd.f32 %v9184_v43, %v5966_v61  ;;  %v11996_v1 = vadd.f32 %v9190_v47, %v5974_v59  ;;  %v5985_v27 = vadd.f32 %v9087_v22, %v12752_v49 }
 0x71b   :  { %v9192_v16 = vpop.f32.mrf.mxu0 }
 0x71c   :  { %v6373_v36 = vadd.f32 %v6372_v25, %v6371_v13  ;;  %v9193_v10 = vadd.f32 %v9192_v16, %v9191_v39  ;;  %v12750_v13 = vld [vmem:[#allocation21_spill] sm:$0xff]  ;;  %v9090_v25 = vadd.f32 %v11914_v6, %v11904_v62  ;;  %v6493_v39 = vadd.f32 %v11989_v3, %v11994_v41  ;;  %v9104_v16 = vpop.f32.mrf.mxu1 }
 0x71d   :  { %v9194_v33 = vpop.f32.mrf.mxu0  ;;  %v5977_v54 = vadd.f32 %v9081_v31, %v12750_v13  ;;  %v9093_v6 = vadd.f32 %v11941_v15, %v11926_v0 }
 0x71e   :  { %6377 = vadd.xlane.f32.xlu1 %v6373_v36  ;;  %v6374_v24 = vsel %vm62_vm0, %v6373_v36, 0.0  ;;  %v6494_v4 = vadd.f32 %v6493_v39, %v11996_v1  ;;  %v12753_v36 = vld [vmem:[#allocation26_spill] sm:$0xff]  ;;  %v9106_v43 = vpop.f32.mrf.mxu1 }
 0x71f   :  { %v9195_v38 = vpop.f32.mrf.mxu0  ;;  %6375 = vadd.xlane.f32.xlu0 %v6374_v24  ;;  %v12003_v34 = vadd.f32 %v9193_v10, %v5977_v54  ;;  %v5990_v31 = vadd.f32 %v9090_v25, %v12753_v36  ;;  %v9099_v36 = vadd.f32 %v11968_v58, %v11966_v12  ;;  %v12756_v58 = vld [vmem:[#allocation29_spill] sm:$0xff] }
 0x720   :  { %v9196_v18 = vadd.f32 %v9195_v38, %v9194_v33  ;;  %v12754_v38 = vld [vmem:[#allocation28_spill] sm:$0xff]  ;;  %v9107_v10 = vpop.f32.mrf.mxu1 }
 0x721   :  { %v9197_v35 = vpop.f32.mrf.mxu0  ;;  %v6495_v33 = vadd.f32 %v6494_v4, %v12003_v34  ;;  %v5993_v46 = vadd.f32 %v9093_v6, %v12754_v38 }
 0x722   :  { %v12007_v53 = vadd.f32 %v9196_v18, %v5982_v30  ;;  %v9109_v22 = vpop.f32.mrf.mxu1 }
 0x723   :  { %v9198_v57 = vpop.f32.mrf.mxu0 }
 0x724   :  { %v9199_v51 = vadd.f32 %v9198_v57, %v9197_v35  ;;  %v6496_v24 = vadd.f32 %v6495_v33, %v12007_v53  ;;  %v9110_v30 = vpop.f32.mrf.mxu1  ;;  %v9102_v33 = vadd.f32 %v11980_v28, %v11970_v37  ;;  %v9108_v37 = vadd.f32 %v9107_v10, %v9106_v43 }
 0x725   :  { %v9200_v42 = vpop.f32.mrf.mxu0 }
 0x726   :  { %v12013_v48 = vadd.f32 %v9199_v51, %v5985_v27  ;;  %v9112_v27 = vpop.f32.mrf.mxu1 }
 0x727   :  { %v9201_v62 = vpop.f32.mrf.mxu0 }
 0x728   :  { %v9202_v63 = vadd.f32 %v9201_v62, %v9200_v42  ;;  %v6497_v59 = vadd.f32 %v6496_v24, %v12013_v48  ;;  %v9096_v62 = vadd.f32 %v11960_v11, %v11953_v7  ;;  %v9105_v24 = vadd.f32 %v9104_v16, %v9103_v5  ;;  %v12757_v11 = vld [vmem:[#allocation32_spill] sm:$0xff]  ;;  %v12758_v16 = vld [vmem:[#allocation27_spill] sm:$0xff] }
 0x729   :  { %v9203_v47 = vpop.f32.mrf.mxu0 }
 0x72a   :  { %v12016_v21 = vadd.f32 %v9202_v63, %v5990_v31 }
 0x72b   :  { %v9204_v61 = vpop.f32.mrf.mxu0 }
 0x72c   :  { %v9205_v8 = vadd.f32 %v9204_v61, %v9203_v47  ;;  %v6498_v0 = vadd.f32 %v6497_v59, %v12016_v21  ;;  %v9113_v61 = vpop.f32.mrf.mxu1 }
 0x72d   :  { %v9206_v13 = vpop.f32.mrf.mxu0 }
 0x72e   :  { %v12021_v15 = vadd.f32 %v9205_v8, %v5993_v46  ;;  %v12755_v46 = vld [vmem:[#allocation31_spill] sm:$0xff] }
 0x72f   :  { %v9207_v54 = vpop.f32.mrf.mxu0  ;;  %v6001_v59 = vadd.f32 %v9099_v36, %v12755_v46  ;;  %v12759_v36 = vld [vmem:[#allocation30_spill] sm:$0xff] }
 0x730   :  { %v6499_v35 = vadd.f32 %v6498_v0, %v12021_v15  ;;  %v9208_v8 = vadd.f32 %v9207_v54, %v9206_v13  ;;  %v9111_v13 = vadd.f32 %v9110_v30, %v9109_v22 }
 0x731   :  { %v9209_v18 = vpop.f32.mrf.mxu0 }
 0x732   :  { %v6500_v25 = vrot.slane %v6499_v35, 4 }
 0x733   :  { %v9210_v57 = vpop.f32.mrf.mxu0 }
 0x734   :  { %v6501_v32 = vadd.f32 %v6500_v25, %v6499_v35  ;;  %v9211_v63 = vadd.f32 %v9210_v57, %v9209_v18  ;;  %v5998_v35 = vadd.f32 %v9096_v62, %v12756_v58  ;;  %v6006_v25 = vadd.f32 %v9102_v33, %v12757_v11  ;;  %v9115_v57 = vpop.f32.mrf.mxu1  ;;  %v12760_v33 = vld [vmem:[#allocation34_spill] sm:$0xff] }
 0x735   :  { %v9212_v39 = vpop.f32.mrf.mxu0  ;;  %v6009_v18 = vadd.f32 %v9105_v24, %v12758_v16 }
 0x736   :  { %v6502_v51 = vrot.slane %v6501_v32, 2  ;;  %v12035_v28 = vadd.f32 %v9211_v63, %v6001_v59  ;;  %v12038_v54 = vadd.f32 %v9208_v8, %v5998_v35  ;;  %v9116_v62 = vpop.f32.mrf.mxu1  ;;  %v6017_v63 = vadd.f32 %v9111_v13, %v12760_v33  ;;  %v12762_v35 = vld [vmem:[#allocation37_spill] sm:$0xff] }
 0x737   :  { %v9213_v42 = vpop.f32.mrf.mxu0 }
 0x738   :  { %v6503_v49 = vadd.f32 %v6502_v51, %v6501_v32  ;;  %v9214_v0 = vadd.f32 %v9213_v42, %v9212_v39  ;;  %v9114_v42 = vadd.f32 %v9113_v61, %v9112_v27  ;;  %v6625_v43 = vadd.f32 %v12035_v28, %v12038_v54 }
 0x739   :  { %v9215_v4 = vpop.f32.mrf.mxu0  ;;  %v9117_v61 = vadd.f32 %v9116_v62, %v9115_v57 }
 0x73a   :  { %v6504_v31 = vrot.slane %v6503_v49, 1  ;;  %v12040_v39 = vadd.f32 %v9214_v0, %v6006_v25 }
 0x73b   :  { %v9216_v6 = vpop.f32.mrf.mxu0 }
 0x73c   :  { %v6505_v47 = vadd.f32 %v6504_v31, %v6503_v49  ;;  %v9217_v5 = vadd.f32 %v9216_v6, %v9215_v4  ;;  %v6014_v31 = vadd.f32 %v9108_v37, %v12759_v36  ;;  %v6626_v22 = vadd.f32 %v6625_v43, %v12040_v39 }
 0x73d   :  { %v9218_v38 = vpop.f32.mrf.mxu0 }
 0x73e   :  { %6509 = vadd.xlane.f32.xlu1 %v6505_v47  ;;  %v6506_v12 = vsel %vm62_vm0, %v6505_v47, 0.0  ;;  %v12045_v10 = vadd.f32 %v9217_v5, %v6009_v18  ;;  %v12761_v47 = vld [vmem:[#allocation35_spill] sm:$0xff] }
 0x73f   :  { %v9219_v7 = vpop.f32.mrf.mxu0  ;;  %6507 = vadd.xlane.f32.xlu0 %v6506_v12  ;;  %v6022_v24 = vadd.f32 %v9114_v42, %v12761_v47 }
 0x740   :  { %v9220_v51 = vadd.f32 %v9219_v7, %v9218_v38  ;;  %v6627_v38 = vadd.f32 %v6626_v22, %v12045_v10  ;;  %v6025_v7 = vadd.f32 %v9117_v61, %v12762_v35 }
 0x741   :  { %v9221_v32 = vpop.f32.mrf.mxu0 }
 0x742   :  { %v12049_v30 = vadd.f32 %v9220_v51, %v6014_v31 }
 0x743   :  { %v9222_v49 = vpop.f32.mrf.mxu0 }
 0x744   :  { %v9223_v4 = vadd.f32 %v9222_v49, %v9221_v32  ;;  %v6628_v0 = vadd.f32 %v6627_v38, %v12049_v30 }
 0x745   :  { %v9224_v6 = vpop.f32.mrf.mxu0 }
 0x746   :  { %v12053_v46 = vadd.f32 %v9223_v4, %v6017_v63 }
 0x747   :  { %v9225_v27 = vpop.f32.mrf.mxu0 }
 0x748   :  { %v9226_v59 = vadd.f32 %v9225_v27, %v9224_v6  ;;  %v6629_v11 = vadd.f32 %v6628_v0, %v12053_v46 }
 0x749   :  { %v9227_v8 = vpop.f32.mrf.mxu0 }
 0x74a   :  { %v12056_v12 = vadd.f32 %v9226_v59, %v6022_v24 }
 0x74b   :  { %v9228_v58 = vpop.f32.mrf.mxu0 }
 0x74c   :  { %v9229_v25 = vadd.f32 %v9228_v58, %v9227_v8  ;;  %v6630_v37 = vadd.f32 %v6629_v11, %v12056_v12 }
 0x74e   :  { %v12061_v5 = vadd.f32 %v9229_v25, %v6025_v7 }
 0x750   :  { %v6631_v16 = vadd.f32 %v6630_v37, %v12061_v5 }
 0x752   :  { %v6632_v18 = vrot.slane %v6631_v16, 4 }
 0x754   :  { %v6633_v57 = vadd.f32 %v6632_v18, %v6631_v16 }
 0x756   :  { %v6634_v32 = vrot.slane %v6633_v57, 2 }
 0x758   :  { %v6635_v13 = vadd.f32 %v6634_v32, %v6633_v57 }
 0x75a   :  { %v6636_v51 = vrot.slane %v6635_v13, 1 }
 0x75c   :  { %v6637_v42 = vadd.f32 %v6636_v51, %v6635_v13 }
 0x75e   :  { %6641 = vadd.xlane.f32.xlu1 %v6637_v42  ;;  %v6638_v49 = vsel %vm62_vm0, %v6637_v42, 0.0 }
 0x75f   :  { %6639 = vadd.xlane.f32.xlu0 %v6638_v49 }
 0x787   :  { %v6246_v36 = vpop.xlane.xlu1 %6245 }
 0x788   :  { %v6244_v31 = vpop.xlane.xlu0 %6243 }
 0x789   :  { %v6247_v43 = vsub.f32 %v6246_v36, %v6244_v31 }
 0x78b   :  { %v6248_v4 = vsel %vm62_vm0, %v6244_v31, %v6247_v43 }
 0x78c   :  { %v6249_v62 = vmul.f32 0.00024414063, %v6248_v4 }
 0x78e   :  { %v12069_v6 = vsub.f32 %v11864_v17, %v6249_v62  ;;  %v12072_v33 = vsub.f32 %v11857_v9, %v6249_v62  ;;  %v12075_v63 = vsub.f32 %v11866_v52, %v6249_v62  ;;  %v12078_v22 = vsub.f32 %v11873_v14, %v6249_v62 }
 0x78f   :  { %v12085_v27 = vsub.f32 %v11879_v60, %v6249_v62  ;;  %v12090_v61 = vsub.f32 %v11885_v50, %v6249_v62  ;;  %v12095_v38 = vsub.f32 %v11890_v55, %v6249_v62  ;;  %v12100_v60 = vsub.f32 %v11897_v40, %v6249_v62 }
 0x790   :  { %v6258_v47 = vmul.f32 %v12069_v6, %v12069_v6  ;;  %v6259_v24 = vmul.f32 %v12072_v33, %v12072_v33  ;;  %v6260_v17 = vmul.f32 %v12075_v63, %v12075_v63  ;;  %v6261_v52 = vmul.f32 %v12078_v22, %v12078_v22 }
 0x791   :  { %v6262_v59 = vmul.f32 %v12085_v27, %v12085_v27  ;;  %v6263_v0 = vmul.f32 %v12090_v61, %v12090_v61  ;;  %v6264_v50 = vmul.f32 %v12095_v38, %v12095_v38  ;;  %v6265_v7 = vmul.f32 %v12100_v60, %v12100_v60 }
 0x792   :  { %v6266_v9 = vadd.f32 %v6259_v24, %v6258_v47 }
 0x794   :  { %v6267_v14 = vadd.f32 %v6266_v9, %v6260_v17 }
 0x796   :  { %v6268_v8 = vadd.f32 %v6267_v14, %v6261_v52 }
 0x798   :  { %v6269_v58 = vadd.f32 %v6268_v8, %v6262_v59 }
 0x79a   :  { %v6270_v35 = vadd.f32 %v6269_v58, %v6263_v0 }
 0x79c   :  { %v6271_v55 = vadd.f32 %v6270_v35, %v6264_v50 }
 0x79e   :  { %v6272_v11 = vadd.f32 %v6271_v55, %v6265_v7 }
 0x7a0   :  { %v6273_v25 = vrot.slane %v6272_v11, 4 }
 0x7a2   :  { %v6274_v37 = vadd.f32 %v6273_v25, %v6272_v11 }
 0x7a4   :  { %v6275_v16 = vrot.slane %v6274_v37, 2 }
 0x7a6   :  { %v6276_v18 = vadd.f32 %v6275_v16, %v6274_v37 }
 0x7a7   :  { %v6378_v57 = vpop.xlane.xlu1 %6377 }
 0x7a8   :  { %v6376_v40 = vpop.xlane.xlu0 %6375  ;;  %v6277_v32 = vrot.slane %v6276_v18, 1 }
 0x7a9   :  { %v6379_v13 = vsub.f32 %v6378_v57, %v6376_v40 }
 0x7aa   :  { %v6278_v51 = vadd.f32 %v6277_v32, %v6276_v18 }
 0x7ab   :  { %v6380_v42 = vsel %vm62_vm0, %v6376_v40, %v6379_v13 }
 0x7ac   :  { %v6381_v49 = vmul.f32 0.00024414063, %v6380_v42  ;;  %6282 = vadd.xlane.f32.xlu1 %v6278_v51  ;;  %v6279_v36 = vsel %vm62_vm0, %v6278_v51, 0.0 }
 0x7ad   :  { %6280 = vadd.xlane.f32.xlu0 %v6279_v36 }
 0x7ae   :  { %v12113_v31 = vsub.f32 %v11930_v29, %v6381_v49  ;;  %v12116_v43 = vsub.f32 %v11923_v45, %v6381_v49  ;;  %v12119_v4 = vsub.f32 %v11932_v56, %v6381_v49  ;;  %v12122_v62 = vsub.f32 %v11939_v26, %v6381_v49 }
 0x7af   :  { %v12129_v17 = vsub.f32 %v11945_v44, %v6381_v49  ;;  %v12134_v9 = vsub.f32 %v11951_v2, %v6381_v49  ;;  %v12139_v52 = vsub.f32 %v11956_v20, %v6381_v49  ;;  %v12144_v44 = vsub.f32 %v11963_v23, %v6381_v49 }
 0x7b0   :  { %v6390_v47 = vmul.f32 %v12113_v31, %v12113_v31  ;;  %v6391_v24 = vmul.f32 %v12116_v43, %v12116_v43  ;;  %v6392_v29 = vmul.f32 %v12119_v4, %v12119_v4  ;;  %v6393_v56 = vmul.f32 %v12122_v62, %v12122_v62 }
 0x7b1   :  { %v6394_v14 = vmul.f32 %v12129_v17, %v12129_v17  ;;  %v6395_v8 = vmul.f32 %v12134_v9, %v12134_v9  ;;  %v6396_v2 = vmul.f32 %v12139_v52, %v12139_v52  ;;  %v6397_v50 = vmul.f32 %v12144_v44, %v12144_v44 }
 0x7b2   :  { %v6398_v45 = vadd.f32 %v6391_v24, %v6390_v47 }
 0x7b4   :  { %v6399_v26 = vadd.f32 %v6398_v45, %v6392_v29 }
 0x7b6   :  { %v6400_v59 = vadd.f32 %v6399_v26, %v6393_v56 }
 0x7b8   :  { %v6401_v0 = vadd.f32 %v6400_v59, %v6394_v14 }
 0x7ba   :  { %v6402_v58 = vadd.f32 %v6401_v0, %v6395_v8 }
 0x7bc   :  { %v6403_v20 = vadd.f32 %v6402_v58, %v6396_v2 }
 0x7be   :  { %v6404_v35 = vadd.f32 %v6403_v20, %v6397_v50 }
 0x7c0   :  { %v6405_v7 = vrot.slane %v6404_v35, 4 }
 0x7c2   :  { %v6406_v55 = vadd.f32 %v6405_v7, %v6404_v35 }
 0x7c4   :  { %v6407_v11 = vrot.slane %v6406_v55, 2 }
 0x7c6   :  { %v6408_v25 = vadd.f32 %v6407_v11, %v6406_v55 }
 0x7c7   :  { %v6510_v37 = vpop.xlane.xlu1 %6509 }
 0x7c8   :  { %v6508_v23 = vpop.xlane.xlu0 %6507  ;;  %v6409_v16 = vrot.slane %v6408_v25, 1 }
 0x7c9   :  { %v6511_v18 = vsub.f32 %v6510_v37, %v6508_v23 }
 0x7ca   :  { %v6410_v57 = vadd.f32 %v6409_v16, %v6408_v25 }
 0x7cb   :  { %v6512_v40 = vsel %vm62_vm0, %v6508_v23, %v6511_v18 }
 0x7cc   :  { %v6513_v32 = vmul.f32 0.00024414063, %v6512_v40  ;;  %6414 = vadd.xlane.f32.xlu1 %v6410_v57  ;;  %v6411_v13 = vsel %vm62_vm0, %v6410_v57, 0.0 }
 0x7cd   :  { %6412 = vadd.xlane.f32.xlu0 %v6411_v13 }
 0x7ce   :  { %v12157_v51 = vsub.f32 %v11994_v41, %v6513_v32  ;;  %v12160_v42 = vsub.f32 %v11989_v3, %v6513_v32  ;;  %v12163_v49 = vsub.f32 %v11996_v1, %v6513_v32  ;;  %v12166_v36 = vsub.f32 %v12003_v34, %v6513_v32 }
 0x7cf   :  { %v12173_v29 = vsub.f32 %v12007_v53, %v6513_v32  ;;  %v12178_v45 = vsub.f32 %v12013_v48, %v6513_v32  ;;  %v12183_v56 = vsub.f32 %v12016_v21, %v6513_v32  ;;  %v12188_v53 = vsub.f32 %v12021_v15, %v6513_v32 }
 0x7d0   :  { %12763 = vst [vmem:[#allocation13_spill] sm:$0xff] %v12163_v49  ;;  %12764 = vst [vmem:[#allocation14_spill] sm:$0xff] %v12166_v36  ;;  %v6522_v47 = vmul.f32 %v12157_v51, %v12157_v51  ;;  %v6523_v24 = vmul.f32 %v12160_v42, %v12160_v42  ;;  %v6524_v41 = vmul.f32 %v12163_v49, %v12163_v49 }
 0x7d1   :  { %12765 = vst [vmem:[#allocation43_spill] sm:$0xff] %v12173_v29  ;;  %12766 = vst [vmem:[#allocation44_spill] sm:$0xff] %v12178_v45  ;;  %v6525_v1 = vmul.f32 %v12166_v36, %v12166_v36  ;;  %v6526_v26 = vmul.f32 %v12173_v29, %v12173_v29  ;;  %v6527_v59 = vmul.f32 %v12178_v45, %v12178_v45 }
 0x7d2   :  { %v6530_v3 = vadd.f32 %v6523_v24, %v6522_v47  ;;  %12767 = vst [vmem:[#allocation41_spill] sm:$0xff] %v12183_v56  ;;  %12768 = vst [vmem:[#allocation42_spill] sm:$0xff] %v12188_v53  ;;  %v6528_v48 = vmul.f32 %v12183_v56, %v12183_v56  ;;  %v6529_v2 = vmul.f32 %v12188_v53, %v12188_v53 }
 0x7d4   :  { %v6531_v34 = vadd.f32 %v6530_v3, %v6524_v41 }
 0x7d6   :  { %v6532_v14 = vadd.f32 %v6531_v34, %v6525_v1 }
 0x7d8   :  { %v6533_v8 = vadd.f32 %v6532_v14, %v6526_v26 }
 0x7da   :  { %v6534_v0 = vadd.f32 %v6533_v8, %v6527_v59 }
 0x7dc   :  { %v6535_v21 = vadd.f32 %v6534_v0, %v6528_v48 }
 0x7de   :  { %v6536_v58 = vadd.f32 %v6535_v21, %v6529_v2 }
 0x7e0   :  { %v6537_v50 = vrot.slane %v6536_v58, 4 }
 0x7e2   :  { %v6538_v20 = vadd.f32 %v6537_v50, %v6536_v58 }
 0x7e4   :  { %v6539_v35 = vrot.slane %v6538_v20, 2 }
 0x7e6   :  { %v6540_v7 = vadd.f32 %v6539_v35, %v6538_v20 }
 0x7e7   :  { %v6642_v55 = vpop.xlane.xlu1 %6641 }
 0x7e8   :  { %v6640_v15 = vpop.xlane.xlu0 %6639  ;;  %v6541_v11 = vrot.slane %v6540_v7, 1 }
 0x7e9   :  { %v6643_v25 = vsub.f32 %v6642_v55, %v6640_v15 }
 0x7ea   :  { %v6542_v37 = vadd.f32 %v6541_v11, %v6540_v7 }
 0x7eb   :  { %v6644_v23 = vsel %vm62_vm0, %v6640_v15, %v6643_v25 }
 0x7ec   :  { %v6645_v16 = vmul.f32 0.00024414063, %v6644_v23  ;;  %6546 = vadd.xlane.f32.xlu1 %v6542_v37  ;;  %v6543_v18 = vsel %vm62_vm0, %v6542_v37, 0.0  ;;  %v6298_v23 = vstv %s6297_s4 }
 0x7ed   :  { %6544 = vadd.xlane.f32.xlu0 %v6543_v18  ;;  %v12247_v18 = vld [vmem:[%s12579_s1] sm:$0xff] }
 0x7ee   :  { %v12201_v57 = vsub.f32 %v12038_v54, %v6645_v16  ;;  %v12204_v40 = vsub.f32 %v12035_v28, %v6645_v16  ;;  %v12207_v32 = vsub.f32 %v12040_v39, %v6645_v16  ;;  %v12210_v13 = vsub.f32 %v12045_v10, %v6645_v16 }
 0x7ef   :  { %v12217_v41 = vsub.f32 %v12049_v30, %v6645_v16  ;;  %v12222_v3 = vsub.f32 %v12053_v46, %v6645_v16  ;;  %v12227_v1 = vsub.f32 %v12056_v12, %v6645_v16  ;;  %v12232_v30 = vsub.f32 %v12061_v5, %v6645_v16 }
 0x7f0   :  { %12769 = vst [vmem:[#allocation16_spill] sm:$0xff] %v12201_v57  ;;  %12770 = vst [vmem:[#allocation17_spill] sm:$0xff] %v12204_v40  ;;  %v6654_v47 = vmul.f32 %v12201_v57, %v12201_v57  ;;  %v6655_v24 = vmul.f32 %v12204_v40, %v12204_v40  ;;  %v6656_v54 = vmul.f32 %v12207_v32, %v12207_v32  ;;  %v6318_v16 = vstv %s7507_s16  ;;  %s7513_s16 = sld [smem:[#allocation7 + $0x2]] }
 0x7f1   :  { %12771 = vst [vmem:[#allocation45_spill] sm:$0xff] %v12207_v32  ;;  %12772 = vst [vmem:[#allocation19_spill] sm:$0xff] %v12210_v13  ;;  %v6657_v39 = vmul.f32 %v12210_v13, %v12210_v13  ;;  %v6658_v34 = vmul.f32 %v12217_v41, %v12217_v41  ;;  %v6659_v14 = vmul.f32 %v12222_v3, %v12222_v3 }
 0x7f2   :  { %12773 = vst [vmem:[#allocation20_spill] sm:$0xff] %v12217_v41  ;;  %v6662_v28 = vadd.f32 %v6655_v24, %v6654_v47  ;;  %12774 = vst [vmem:[#allocation33_spill] sm:$0xff] %v12222_v3  ;;  %v6660_v46 = vmul.f32 %v12227_v1, %v12227_v1  ;;  %v6661_v48 = vmul.f32 %v12232_v30, %v12232_v30  ;;  %v12253_v24 = vld [vmem:[%s12579_s1 + $0x8] sm:$0xff] }
 0x7f3   :  { %12775 = vst [vmem:[#allocation36_spill] sm:$0xff] %v12227_v1  ;;  %12776 = vst [vmem:[#allocation15_spill] sm:$0xff] %v12232_v30  ;;  %v6299_v47 = vmul.f32 %v12247_v18, %v6298_v23 }
 0x7f4   :  { %v6663_v10 = vadd.f32 %v6662_v28, %v6656_v54  ;;  %v6300_v54 = vmul.f32 %v12253_v24, %v6298_v23  ;;  %v6308_v28 = vstv %s7506_s17  ;;  %s7515_s17 = sld [smem:[#allocation7 + $0x102]] }
 0x7f6   :  { %v6664_v26 = vadd.f32 %v6663_v10, %v6657_v39  ;;  %v6319_v39 = vmul.f32 %v12247_v18, %v6318_v16  ;;  %v6320_v10 = vmul.f32 %v12253_v24, %v6318_v16 }
 0x7f8   :  { %v6665_v59 = vadd.f32 %v6664_v26, %v6658_v34  ;;  %v12261_v34 = vld [vmem:[%s12579_s1 + $0x10] sm:$0xff] }
 0x7f9   :  { %v6301_v26 = vmul.f32 %v12261_v34, %v6298_v23 }
 0x7fa   :  { %v6666_v8 = vadd.f32 %v6665_v59, %v6659_v14  ;;  %v6328_v14 = vstv %s7508_s18  ;;  %v12267_v59 = vld [vmem:[%s12579_s1 + $0x18] sm:$0xff]  ;;  %s7514_s18 = sld [smem:[#allocation7 + $0x82]] }
 0x7fb   :  { %v6330_v30 = vadd.f32 %v6328_v14, %v6320_v10  ;;  %v6311_v1 = vadd.f32 %v6308_v28, %v6301_v26 }
 0x7fc   :  { %v6667_v12 = vadd.f32 %v6666_v8, %v6660_v46  ;;  %v6302_v46 = vmul.f32 %v12267_v59, %v6298_v23  ;;  %v6321_v8 = vmul.f32 %v12261_v34, %v6318_v16 }
 0x7fe   :  { %v6668_v0 = vadd.f32 %v6667_v12, %v6661_v48  ;;  %v6322_v48 = vmul.f32 %v12267_v59, %v6318_v16  ;;  %v12275_v12 = vld [vmem:[%s12579_s1 + $0x20] sm:$0xff]  ;;  %v6312_v3 = vadd.f32 %v6308_v28, %v6302_v46  ;;  %v6331_v41 = vadd.f32 %v6328_v14, %v6321_v8 }
 0x800   :  { %v6669_v2 = vrot.slane %v6668_v0, 4  ;;  %v6332_v13 = vadd.f32 %v6328_v14, %v6322_v48 }
 0x802   :  { %v6670_v21 = vadd.f32 %v6669_v2, %v6668_v0  ;;  %v6303_v0 = vmul.f32 %v12275_v12, %v6298_v23  ;;  %v12281_v2 = vld [vmem:[%s12579_s1 + $0x28] sm:$0xff] }
 0x804   :  { %v6671_v58 = vrot.slane %v6670_v21, 2  ;;  %v6313_v32 = vadd.f32 %v6308_v28, %v6303_v0 }
 0x806   :  { %v6672_v50 = vadd.f32 %v6671_v58, %v6670_v21  ;;  %v6304_v21 = vmul.f32 %v12281_v2, %v6298_v23  ;;  %v6323_v58 = vmul.f32 %v12275_v12, %v6318_v16 }
 0x808   :  { %v6673_v20 = vrot.slane %v6672_v50, 1  ;;  %v6314_v40 = vadd.f32 %v6308_v28, %v6304_v21  ;;  %v6333_v57 = vadd.f32 %v6328_v14, %v6323_v58 }
 0x80a   :  { %v6674_v5 = vadd.f32 %v6673_v20, %v6672_v50  ;;  %v6324_v50 = vmul.f32 %v12281_v2, %v6318_v16  ;;  %v12289_v20 = vld [vmem:[%s12579_s1 + $0x30] sm:$0xff] }
 0x80c   :  { %6678 = vadd.xlane.f32.xlu1 %v6674_v5  ;;  %v6675_v35 = vsel %vm62_vm0, %v6674_v5, 0.0  ;;  %v6305_v5 = vmul.f32 %v12289_v20, %v6298_v23  ;;  %v6334_v53 = vadd.f32 %v6328_v14, %v6324_v50 }
 0x80d   :  { %6676 = vadd.xlane.f32.xlu0 %v6675_v35  ;;  %v12295_v35 = vld [vmem:[%s12579_s1 + $0x38] sm:$0xff] }
 0x80e   :  { %v6315_v45 = vadd.f32 %v6308_v28, %v6305_v5 }
 0x835   :  { %v6283_v7 = vpop.xlane.xlu1 %6282 }
 0x836   :  { %v6281_v55 = vpop.xlane.xlu0 %6280 }
 0x837   :  { %v6284_v15 = vsub.f32 %v6283_v7, %v6281_v55  ;;  %v6306_v7 = vmul.f32 %v12295_v35, %v6298_v23 }
 0x839   :  { %v6285_v11 = vsel %vm62_vm0, %v6281_v55, %v6284_v15  ;;  %v6325_v55 = vmul.f32 %v12289_v20, %v6318_v16  ;;  %v6326_v15 = vmul.f32 %v12295_v35, %v6318_v16  ;;  %v6316_v29 = vadd.f32 %v6308_v28, %v6306_v7 }
 0x83a   :  { %v6286_v25 = vmul.f32 0.00024414063, %v6285_v11  ;;  %v6309_v11 = vadd.f32 %v6308_v28, %v6299_v47 }
 0x83b   :  { %v6335_v23 = vadd.f32 %v6328_v14, %v6325_v55  ;;  %v6336_v36 = vadd.f32 %v6328_v14, %v6326_v15 }
 0x83c   :  { %v6287_v37 = vadd.f32 1e-05, %v6286_v25  ;;  %v6310_v25 = vadd.f32 %v6308_v28, %v6300_v54  ;;  %v6749_v28 = vld [vmem:[%s12578_s0] sm:$0xff] }
 0x83e   :  { %9976 = vrsqrt.f32 %v6287_v37  ;;  %v6329_v37 = vadd.f32 %v6328_v14, %v6319_v39 }
 0x84b   :  { %v9977_v56 = vpop.eup %9976 }
 0x84c   :  { %v6289_v49 = vmul.f32 %v9977_v56, %v12069_v6  ;;  %v6290_v16 = vmul.f32 %v9977_v56, %v12072_v33  ;;  %v6291_v47 = vmul.f32 %v9977_v56, %v12075_v63  ;;  %v6292_v54 = vmul.f32 %v9977_v56, %v12078_v22  ;;  %v6750_v6 = vld [vmem:[%s12578_s0 + $0x8] sm:$0xff] }
 0x84d   :  { %v6293_v39 = vmul.f32 %v9977_v56, %v12085_v27  ;;  %v6294_v10 = vmul.f32 %v9977_v56, %v12090_v61  ;;  %v6295_v26 = vmul.f32 %v9977_v56, %v12095_v38  ;;  %v6296_v46 = vmul.f32 %v9977_v56, %v12100_v60  ;;  %v6751_v27 = vld [vmem:[%s12578_s0 + $0x10] sm:$0xff]  ;;  %v6752_v61 = vld [vmem:[%s12578_s0 + $0x18] sm:$0xff]  ;;  %v6753_v38 = vld [vmem:[%s12578_s0 + $0x20] sm:$0xff] }
 0x84e   :  { %v6337_v33 = vmul.f32 %v6309_v11, %v6289_v49  ;;  %v6338_v63 = vmul.f32 %v6310_v25, %v6290_v16  ;;  %v6339_v14 = vmul.f32 %v6311_v1, %v6291_v47  ;;  %v6340_v22 = vmul.f32 %v6312_v3, %v6292_v54  ;;  %v6754_v49 = vld [vmem:[%s12578_s0 + $0x28] sm:$0xff]  ;;  %v6755_v3 = vld [vmem:[%s12578_s0 + $0x30] sm:$0xff]  ;;  %v6756_v1 = vld [vmem:[%s12578_s0 + $0x38] sm:$0xff] }
 0x84f   :  { %v6341_v60 = vmul.f32 %v6313_v32, %v6293_v39  ;;  %v6342_v56 = vmul.f32 %v6314_v40, %v6294_v10  ;;  %v6343_v8 = vmul.f32 %v6315_v45, %v6295_v26  ;;  %v6344_v48 = vmul.f32 %v6316_v29, %v6296_v46 }
 0x850   :  { %v6345_v0 = vadd.f32 %v6337_v33, %v6329_v37  ;;  %v6346_v21 = vadd.f32 %v6338_v63, %v6330_v30  ;;  %v6347_v58 = vadd.f32 %v6339_v14, %v6331_v41  ;;  %v6348_v50 = vadd.f32 %v6340_v22, %v6332_v13 }
 0x851   :  { %v6349_v32 = vadd.f32 %v6341_v60, %v6333_v57  ;;  %v6350_v40 = vadd.f32 %v6342_v56, %v6334_v53  ;;  %v6351_v45 = vadd.f32 %v6343_v8, %v6335_v23  ;;  %v6352_v29 = vadd.f32 %v6344_v48, %v6336_v36 }
 0x852   :  { %v6781_v5 = vadd.f32 %v6749_v28, %v6345_v0  ;;  %v6782_v7 = vadd.f32 %v6750_v6, %v6346_v21  ;;  %v6783_v55 = vadd.f32 %v6751_v27, %v6347_v58  ;;  %v6784_v15 = vadd.f32 %v6752_v61, %v6348_v50 }
 0x853   :  { %v6785_v11 = vadd.f32 %v6753_v38, %v6349_v32  ;;  %v6786_v25 = vadd.f32 %v6754_v49, %v6350_v40  ;;  %v6787_v16 = vadd.f32 %v6755_v3, %v6351_v45  ;;  %v6788_v47 = vadd.f32 %v6756_v1, %v6352_v29 }
 0x854   :  { %6813 = vst [vmem:[%s12585_s7] sm:$0xff] %v6781_v5  ;;  %6814 = vst [vmem:[%s12585_s7 + $0x8] sm:$0xff] %v6782_v7  ;;  %v6430_v37 = vstv %s7509_s11  ;;  %v6450_v23 = vstv %s7511_s12 }
 0x855   :  { %6815 = vst [vmem:[%s12585_s7 + $0x10] sm:$0xff] %v6783_v55  ;;  %6816 = vst [vmem:[%s12585_s7 + $0x18] sm:$0xff] %v6784_v15  ;;  %v6415_v36 = vpop.xlane.xlu1 %6414  ;;  %v6431_v54 = vmul.f32 %v12247_v18, %v6430_v37  ;;  %v6432_v39 = vmul.f32 %v12253_v24, %v6430_v37  ;;  %v6440_v10 = vstv %s7510_s2  ;;  %v6451_v26 = vmul.f32 %v12247_v18, %v6450_v23 }
 0x856   :  { %6817 = vst [vmem:[%s12585_s7 + $0x20] sm:$0xff] %v6785_v11  ;;  %6818 = vst [vmem:[%s12585_s7 + $0x28] sm:$0xff] %v6786_v25  ;;  %v6413_v53 = vpop.xlane.xlu0 %6412  ;;  %v6452_v46 = vmul.f32 %v12253_v24, %v6450_v23  ;;  %v6460_v28 = vstv %s7512_s13  ;;  %v6433_v6 = vmul.f32 %v12261_v34, %v6430_v37  ;;  %v6434_v33 = vmul.f32 %v12267_v59, %v6430_v37 }
 0x857   :  { %6819 = vst [vmem:[%s12585_s7 + $0x30] sm:$0xff] %v6787_v16  ;;  %6820 = vst [vmem:[%s12585_s7 + $0x38] sm:$0xff] %v6788_v47  ;;  %v6416_v57 = vsub.f32 %v6415_v36, %v6413_v53  ;;  %v6453_v63 = vmul.f32 %v12261_v34, %v6450_v23  ;;  %v6454_v14 = vmul.f32 %v12267_v59, %v6450_v23 }
 0x858   :  { %v6435_v22 = vmul.f32 %v12275_v12, %v6430_v37  ;;  %v6436_v27 = vmul.f32 %v12281_v2, %v6430_v37  ;;  %v6455_v61 = vmul.f32 %v12275_v12, %v6450_v23  ;;  %v6456_v38 = vmul.f32 %v12281_v2, %v6450_v23 }
 0x859   :  { %v6417_v13 = vsel %vm62_vm0, %v6413_v53, %v6416_v57  ;;  %v6437_v60 = vmul.f32 %v12289_v20, %v6430_v37  ;;  %v6438_v56 = vmul.f32 %v12295_v35, %v6430_v37  ;;  %v6457_v8 = vmul.f32 %v12289_v20, %v6450_v23  ;;  %v6757_v37 = vld [vmem:[%s12578_s0 + $0x40] sm:$0xff] }
 0x85a   :  { %v6418_v41 = vmul.f32 0.00024414063, %v6417_v13  ;;  %v6458_v48 = vmul.f32 %v12295_v35, %v6450_v23  ;;  %v6441_v49 = vadd.f32 %v6440_v10, %v6431_v54  ;;  %v6442_v3 = vadd.f32 %v6440_v10, %v6432_v39 }
 0x85b   :  { %v6461_v1 = vadd.f32 %v6460_v28, %v6451_v26  ;;  %v6462_v0 = vadd.f32 %v6460_v28, %v6452_v46  ;;  %v6443_v21 = vadd.f32 %v6440_v10, %v6433_v6  ;;  %v6444_v58 = vadd.f32 %v6440_v10, %v6434_v33  ;;  %v6762_v26 = vld [vmem:[%s12578_s0 + $0x68] sm:$0xff]  ;;  %v6763_v46 = vld [vmem:[%s12578_s0 + $0x70] sm:$0xff] }
 0x85c   :  { %v6419_v30 = vadd.f32 1e-05, %v6418_v41  ;;  %v6463_v50 = vadd.f32 %v6460_v28, %v6453_v63  ;;  %v6464_v32 = vadd.f32 %v6460_v28, %v6454_v14  ;;  %v6445_v40 = vadd.f32 %v6440_v10, %v6435_v22 }
 0x85d   :  { %v6446_v45 = vadd.f32 %v6440_v10, %v6436_v27  ;;  %v6465_v29 = vadd.f32 %v6460_v28, %v6455_v61  ;;  %v6466_v5 = vadd.f32 %v6460_v28, %v6456_v38  ;;  %v6447_v55 = vadd.f32 %v6440_v10, %v6437_v60 }
 0x85e   :  { %9978 = vrsqrt.f32 %v6419_v30  ;;  %v6448_v15 = vadd.f32 %v6440_v10, %v6438_v56  ;;  %v6467_v11 = vadd.f32 %v6460_v28, %v6457_v8  ;;  %v6468_v25 = vadd.f32 %v6460_v28, %v6458_v48  ;;  %v6764_v28 = vld [vmem:[%s12578_s0 + $0x78] sm:$0xff] }
 0x86b   :  { %v9979_v7 = vpop.eup %9978 }
 0x86c   :  { %v6421_v16 = vmul.f32 %v9979_v7, %v12113_v31  ;;  %v6422_v47 = vmul.f32 %v9979_v7, %v12116_v43  ;;  %v6423_v36 = vmul.f32 %v9979_v7, %v12119_v4  ;;  %v6424_v53 = vmul.f32 %v9979_v7, %v12122_v62  ;;  %v6758_v31 = vld [vmem:[%s12578_s0 + $0x48] sm:$0xff] }
 0x86d   :  { %v6425_v57 = vmul.f32 %v9979_v7, %v12129_v17  ;;  %v6426_v13 = vmul.f32 %v9979_v7, %v12134_v9  ;;  %v6427_v41 = vmul.f32 %v9979_v7, %v12139_v52  ;;  %v6428_v30 = vmul.f32 %v9979_v7, %v12144_v44  ;;  %v6759_v17 = vld [vmem:[%s12578_s0 + $0x50] sm:$0xff]  ;;  %v6760_v9 = vld [vmem:[%s12578_s0 + $0x58] sm:$0xff]  ;;  %v6761_v52 = vld [vmem:[%s12578_s0 + $0x60] sm:$0xff] }
 0x86e   :  { %v6469_v43 = vmul.f32 %v6441_v49, %v6421_v16  ;;  %v6470_v4 = vmul.f32 %v6442_v3, %v6422_v47  ;;  %v6471_v23 = vmul.f32 %v6443_v21, %v6423_v36  ;;  %v6472_v62 = vmul.f32 %v6444_v58, %v6424_v53 }
 0x86f   :  { %v6473_v44 = vmul.f32 %v6445_v40, %v6425_v57  ;;  %v6474_v54 = vmul.f32 %v6446_v45, %v6426_v13  ;;  %v6475_v39 = vmul.f32 %v6447_v55, %v6427_v41  ;;  %v6476_v10 = vmul.f32 %v6448_v15, %v6428_v30 }
 0x870   :  { %v6477_v6 = vadd.f32 %v6469_v43, %v6461_v1  ;;  %v6478_v33 = vadd.f32 %v6470_v4, %v6462_v0  ;;  %v6479_v63 = vadd.f32 %v6471_v23, %v6463_v50  ;;  %v6480_v14 = vadd.f32 %v6472_v62, %v6464_v32 }
 0x871   :  { %v6481_v22 = vadd.f32 %v6473_v44, %v6465_v29  ;;  %v6482_v27 = vadd.f32 %v6474_v54, %v6466_v5  ;;  %v6483_v61 = vadd.f32 %v6475_v39, %v6467_v11  ;;  %v6484_v38 = vadd.f32 %v6476_v10, %v6468_v25 }
 0x872   :  { %v6789_v60 = vadd.f32 %v6757_v37, %v6477_v6  ;;  %v6790_v56 = vadd.f32 %v6758_v31, %v6478_v33  ;;  %v6791_v8 = vadd.f32 %v6759_v17, %v6479_v63  ;;  %v6792_v48 = vadd.f32 %v6760_v9, %v6480_v14 }
 0x873   :  { %v6793_v49 = vadd.f32 %v6761_v52, %v6481_v22  ;;  %v6794_v3 = vadd.f32 %v6762_v26, %v6482_v27  ;;  %v6795_v21 = vadd.f32 %v6763_v46, %v6483_v61  ;;  %v6796_v58 = vadd.f32 %v6764_v28, %v6484_v38 }
 0x874   :  { %6821 = vst [vmem:[%s12585_s7 + $0x40] sm:$0xff] %v6789_v60  ;;  %6822 = vst [vmem:[%s12585_s7 + $0x48] sm:$0xff] %v6790_v56  ;;  %v6562_v29 = vstv %s7513_s16  ;;  %v6582_v5 = vstv %s7515_s17  ;;  %v12777_v60 = vld [vmem:[#allocation13_spill] sm:$0xff] }
 0x875   :  { %6823 = vst [vmem:[%s12585_s7 + $0x50] sm:$0xff] %v6791_v8  ;;  %6824 = vst [vmem:[%s12585_s7 + $0x58] sm:$0xff] %v6792_v48  ;;  %v6547_v1 = vpop.xlane.xlu1 %6546  ;;  %v6563_v7 = vmul.f32 %v12247_v18, %v6562_v29  ;;  %v6572_v55 = vstv %s7514_s18  ;;  %v6564_v15 = vmul.f32 %v12253_v24, %v6562_v29  ;;  %v6583_v11 = vmul.f32 %v12247_v18, %v6582_v5  ;;  %v12778_v8 = vld [vmem:[#allocation14_spill] sm:$0xff] }
 0x876   :  { %6825 = vst [vmem:[%s12585_s7 + $0x60] sm:$0xff] %v6793_v49  ;;  %6826 = vst [vmem:[%s12585_s7 + $0x68] sm:$0xff] %v6794_v3  ;;  %v6545_v0 = vpop.xlane.xlu0 %6544  ;;  %v6584_v25 = vmul.f32 %v12253_v24, %v6582_v5  ;;  %v6592_v16 = vstv %s7516_s19  ;;  %v6565_v47 = vmul.f32 %v12261_v34, %v6562_v29  ;;  %v6566_v36 = vmul.f32 %v12267_v59, %v6562_v29  ;;  %v12779_v49 = vld [vmem:[#allocation43_spill] sm:$0xff] }
 0x877   :  { %6827 = vst [vmem:[%s12585_s7 + $0x70] sm:$0xff] %v6795_v21  ;;  %6828 = vst [vmem:[%s12585_s7 + $0x78] sm:$0xff] %v6796_v58  ;;  %v6548_v50 = vsub.f32 %v6547_v1, %v6545_v0  ;;  %v6585_v53 = vmul.f32 %v12261_v34, %v6582_v5  ;;  %v6586_v57 = vmul.f32 %v12267_v59, %v6582_v5  ;;  %v12780_v21 = vld [vmem:[#allocation44_spill] sm:$0xff]  ;;  %v12781_v1 = vld [vmem:[#allocation41_spill] sm:$0xff] }
 0x878   :  { %v6567_v13 = vmul.f32 %v12275_v12, %v6562_v29  ;;  %v6568_v41 = vmul.f32 %v12281_v2, %v6562_v29  ;;  %v6587_v30 = vmul.f32 %v12275_v12, %v6582_v5  ;;  %v6588_v37 = vmul.f32 %v12281_v2, %v6582_v5 }
 0x879   :  { %v6549_v32 = vsel %vm62_vm0, %v6545_v0, %v6548_v50  ;;  %v6569_v31 = vmul.f32 %v12289_v20, %v6562_v29  ;;  %v6570_v43 = vmul.f32 %v12295_v35, %v6562_v29  ;;  %v6589_v4 = vmul.f32 %v12289_v20, %v6582_v5  ;;  %v12782_v50 = vld [vmem:[#allocation42_spill] sm:$0xff] }
 0x87a   :  { %v6550_v40 = vmul.f32 0.00024414063, %v6549_v32  ;;  %v6590_v23 = vmul.f32 %v12295_v35, %v6582_v5  ;;  %v6573_v62 = vadd.f32 %v6572_v55, %v6563_v7  ;;  %v6574_v17 = vadd.f32 %v6572_v55, %v6564_v15  ;;  %v6767_v7 = vld [vmem:[%s12578_s0 + $0x90] sm:$0xff]  ;;  %v6769_v15 = vld [vmem:[%s12578_s0 + $0xa0] sm:$0xff] }
 0x87b   :  { %v6593_v9 = vadd.f32 %v6592_v16, %v6583_v11  ;;  %v6594_v52 = vadd.f32 %v6592_v16, %v6584_v25  ;;  %v6575_v44 = vadd.f32 %v6572_v55, %v6565_v47  ;;  %v6576_v54 = vadd.f32 %v6572_v55, %v6566_v36  ;;  %v6770_v36 = vld [vmem:[%s12578_s0 + $0xa8] sm:$0xff] }
 0x87c   :  { %v6551_v45 = vadd.f32 1e-05, %v6550_v40  ;;  %v6595_v39 = vadd.f32 %v6592_v16, %v6585_v53  ;;  %v6596_v10 = vadd.f32 %v6592_v16, %v6586_v57  ;;  %v6577_v26 = vadd.f32 %v6572_v55, %v6567_v13  ;;  %v6765_v40 = vld [vmem:[%s12578_s0 + $0x80] sm:$0xff]  ;;  %v6771_v53 = vld [vmem:[%s12578_s0 + $0xb0] sm:$0xff]  ;;  %v6772_v57 = vld [vmem:[%s12578_s0 + $0xb8] sm:$0xff] }
 0x87d   :  { %v6578_v46 = vadd.f32 %v6572_v55, %v6568_v41  ;;  %v6597_v28 = vadd.f32 %v6592_v16, %v6587_v30  ;;  %v6598_v6 = vadd.f32 %v6592_v16, %v6588_v37  ;;  %v6579_v63 = vadd.f32 %v6572_v55, %v6569_v31 }
 0x87e   :  { %9980 = vrsqrt.f32 %v6551_v45  ;;  %v6580_v14 = vadd.f32 %v6572_v55, %v6570_v43  ;;  %v6599_v22 = vadd.f32 %v6592_v16, %v6589_v4  ;;  %v6600_v27 = vadd.f32 %v6592_v16, %v6590_v23  ;;  %v6768_v55 = vld [vmem:[%s12578_s0 + $0x98] sm:$0xff] }
 0x88b   :  { %v9981_v33 = vpop.eup %9980 }
 0x88c   :  { %v6553_v61 = vmul.f32 %v9981_v33, %v12157_v51  ;;  %v6554_v38 = vmul.f32 %v9981_v33, %v12160_v42  ;;  %v6555_v56 = vmul.f32 %v9981_v33, %v12777_v60  ;;  %v6556_v48 = vmul.f32 %v9981_v33, %v12778_v8  ;;  %v6766_v51 = vld [vmem:[%s12578_s0 + $0x88] sm:$0xff] }
 0x88d   :  { %v6557_v3 = vmul.f32 %v9981_v33, %v12779_v49  ;;  %v6558_v58 = vmul.f32 %v9981_v33, %v12780_v21  ;;  %v6559_v0 = vmul.f32 %v9981_v33, %v12781_v1  ;;  %v6560_v32 = vmul.f32 %v9981_v33, %v12782_v50 }
 0x88e   :  { %v6601_v42 = vmul.f32 %v6573_v62, %v6553_v61  ;;  %v6602_v45 = vmul.f32 %v6574_v17, %v6554_v38  ;;  %v6603_v29 = vmul.f32 %v6575_v44, %v6555_v56  ;;  %v6604_v5 = vmul.f32 %v6576_v54, %v6556_v48 }
 0x88f   :  { %v6605_v11 = vmul.f32 %v6577_v26, %v6557_v3  ;;  %v6606_v25 = vmul.f32 %v6578_v46, %v6558_v58  ;;  %v6607_v16 = vmul.f32 %v6579_v63, %v6559_v0  ;;  %v6608_v47 = vmul.f32 %v6580_v14, %v6560_v32 }
 0x890   :  { %v6609_v13 = vadd.f32 %v6601_v42, %v6593_v9  ;;  %v6610_v41 = vadd.f32 %v6602_v45, %v6594_v52  ;;  %v6611_v30 = vadd.f32 %v6603_v29, %v6595_v39  ;;  %v6612_v37 = vadd.f32 %v6604_v5, %v6596_v10 }
 0x891   :  { %v6613_v31 = vadd.f32 %v6605_v11, %v6597_v28  ;;  %v6614_v43 = vadd.f32 %v6606_v25, %v6598_v6  ;;  %v6615_v4 = vadd.f32 %v6607_v16, %v6599_v22  ;;  %v6616_v23 = vadd.f32 %v6608_v47, %v6600_v27 }
 0x892   :  { %v6797_v62 = vadd.f32 %v6765_v40, %v6609_v13  ;;  %v6798_v17 = vadd.f32 %v6766_v51, %v6610_v41  ;;  %v6799_v44 = vadd.f32 %v6767_v7, %v6611_v30  ;;  %v6800_v54 = vadd.f32 %v6768_v55, %v6612_v37  ;;  %v12786_v41 = vld [vmem:[#allocation19_spill] sm:$0xff]  ;;  %v12787_v37 = vld [vmem:[#allocation20_spill] sm:$0xff] }
 0x893   :  { %v6801_v26 = vadd.f32 %v6769_v15, %v6613_v31  ;;  %v6802_v46 = vadd.f32 %v6770_v36, %v6614_v43  ;;  %v6803_v33 = vadd.f32 %v6771_v53, %v6615_v4  ;;  %v6804_v63 = vadd.f32 %v6772_v57, %v6616_v23  ;;  %v12785_v57 = vld [vmem:[#allocation45_spill] sm:$0xff]  ;;  %v12789_v23 = vld [vmem:[#allocation36_spill] sm:$0xff] }
 0x894   :  { %6829 = vst [vmem:[%s12585_s7 + $0x80] sm:$0xff] %v6797_v62  ;;  %6830 = vst [vmem:[%s12585_s7 + $0x88] sm:$0xff] %v6798_v17  ;;  %v6694_v14 = vstv %s7517_s23  ;;  %v6714_v22 = vstv %s7519_s24  ;;  %v12788_v43 = vld [vmem:[#allocation33_spill] sm:$0xff]  ;;  %v12790_v17 = vld [vmem:[#allocation15_spill] sm:$0xff] }
 0x895   :  { %6831 = vst [vmem:[%s12585_s7 + $0x90] sm:$0xff] %v6799_v44  ;;  %6832 = vst [vmem:[%s12585_s7 + $0x98] sm:$0xff] %v6800_v54  ;;  %v6679_v9 = vpop.xlane.xlu1 %6678  ;;  %v6695_v27 = vmul.f32 %v12247_v18, %v6694_v14  ;;  %v6704_v61 = vstv %s7518_s25  ;;  %v6696_v38 = vmul.f32 %v12253_v24, %v6694_v14  ;;  %v6715_v60 = vmul.f32 %v12247_v18, %v6714_v22  ;;  %v6773_v54 = vld [vmem:[%s12578_s0 + $0xc0] sm:$0xff] }
 0x896   :  { %6833 = vst [vmem:[%s12585_s7 + $0xa0] sm:$0xff] %v6801_v26  ;;  %6834 = vst [vmem:[%s12585_s7 + $0xa8] sm:$0xff] %v6802_v46  ;;  %v6677_v52 = vpop.xlane.xlu0 %6676  ;;  %v6716_v56 = vmul.f32 %v12253_v24, %v6714_v22  ;;  %v6724_v8 = vstv %s7520_s26  ;;  %v6697_v19 = vmul.f32 %v12261_v34, %v6694_v14  ;;  %v6698_v48 = vmul.f32 %v12267_v59, %v6694_v14  ;;  %v6774_v26 = vld [vmem:[%s12578_s0 + $0xc8] sm:$0xff] }
 0x897   :  { %6835 = vst [vmem:[%s12585_s7 + $0xb0] sm:$0xff] %v6803_v33  ;;  %6836 = vst [vmem:[%s12585_s7 + $0xb8] sm:$0xff] %v6804_v63  ;;  %v6680_v39 = vsub.f32 %v6679_v9, %v6677_v52  ;;  %v6717_v49 = vmul.f32 %v12261_v34, %v6714_v22  ;;  %v6718_v3 = vmul.f32 %v12267_v59, %v6714_v22 }
 0x898   :  { %v6699_v21 = vmul.f32 %v12275_v12, %v6694_v14  ;;  %v6700_v58 = vmul.f32 %v12281_v2, %v6694_v14  ;;  %v6719_v1 = vmul.f32 %v12275_v12, %v6714_v22  ;;  %v6720_v0 = vmul.f32 %v12281_v2, %v6714_v22 }
 0x899   :  { %v6681_v10 = vsel %vm62_vm0, %v6677_v52, %v6680_v39  ;;  %v6701_v18 = vmul.f32 %v12289_v20, %v6694_v14  ;;  %v6702_v24 = vmul.f32 %v12295_v35, %v6694_v14  ;;  %v6721_v50 = vmul.f32 %v12289_v20, %v6714_v22  ;;  %v12783_v20 = vld [vmem:[#allocation16_spill] sm:$0xff]  ;;  %v6775_v52 = vld [vmem:[%s12578_s0 + $0xd0] sm:$0xff]  ;;  %v6776_v39 = vld [vmem:[%s12578_s0 + $0xd8] sm:$0xff] }
 0x89a   :  { %v6682_v28 = vmul.f32 0.00024414063, %v6681_v10  ;;  %v6722_v32 = vmul.f32 %v12295_v35, %v6714_v22  ;;  %v6705_v40 = vadd.f32 %v6704_v61, %v6695_v27  ;;  %v6706_v34 = vadd.f32 %v6704_v61, %v6696_v38  ;;  %v12784_v35 = vld [vmem:[#allocation17_spill] sm:$0xff]  ;;  %v6777_v10 = vld [vmem:[%s12578_s0 + $0xe0] sm:$0xff]  ;;  %v6778_v27 = vld [vmem:[%s12578_s0 + $0xe8] sm:$0xff] }
 0x89b   :  { %v6725_v51 = vadd.f32 %v6724_v8, %v6715_v60  ;;  %v6726_v59 = vadd.f32 %v6724_v8, %v6716_v56  ;;  %v6707_v42 = vadd.f32 %v6704_v61, %v6697_v19  ;;  %v6708_v45 = vadd.f32 %v6704_v61, %v6698_v48  ;;  %v6780_v38 = vld [vmem:[%s12578_s0 + $0xf8] sm:$0xff] }
 0x89c   :  { %v6683_v6 = vadd.f32 1e-05, %v6682_v28  ;;  %v6727_v29 = vadd.f32 %v6724_v8, %v6717_v49  ;;  %v6728_v5 = vadd.f32 %v6724_v8, %v6718_v3  ;;  %v6709_v7 = vadd.f32 %v6704_v61, %v6699_v21 }
 0x89d   :  { %v6710_v12 = vadd.f32 %v6704_v61, %v6700_v58  ;;  %v6729_v55 = vadd.f32 %v6724_v8, %v6719_v1  ;;  %v6730_v2 = vadd.f32 %v6724_v8, %v6720_v0  ;;  %v6711_v11 = vadd.f32 %v6704_v61, %v6701_v18 }
 0x89e   :  { %9982 = vrsqrt.f32 %v6683_v6  ;;  %v6712_v25 = vadd.f32 %v6704_v61, %v6702_v24  ;;  %v6731_v16 = vadd.f32 %v6724_v8, %v6721_v50  ;;  %v6732_v47 = vadd.f32 %v6724_v8, %v6722_v32  ;;  %v6779_v61 = vld [vmem:[%s12578_s0 + $0xf0] sm:$0xff] }
 0x8ab   :  { %v9983_v15 = vpop.eup %9982 }
 0x8ac   :  { %v6685_v36 = vmul.f32 %v9983_v15, %v12783_v20  ;;  %v6686_v53 = vmul.f32 %v9983_v15, %v12784_v35  ;;  %v6687_v13 = vmul.f32 %v9983_v15, %v12785_v57  ;;  %v6688_v30 = vmul.f32 %v9983_v15, %v12786_v41 }
 0x8ad   :  { %v6689_v31 = vmul.f32 %v9983_v15, %v12787_v37  ;;  %v6690_v4 = vmul.f32 %v9983_v15, %v12788_v43  ;;  %v6691_v62 = vmul.f32 %v9983_v15, %v12789_v23  ;;  %v6692_v44 = vmul.f32 %v9983_v15, %v12790_v17 }
 0x8ae   :  { %v6733_v46 = vmul.f32 %v6705_v40, %v6685_v36  ;;  %v6734_v33 = vmul.f32 %v6706_v34, %v6686_v53  ;;  %v6735_v63 = vmul.f32 %v6707_v42, %v6687_v13  ;;  %v6736_v9 = vmul.f32 %v6708_v45, %v6688_v30 }
 0x8af   :  { %v6737_v28 = vmul.f32 %v6709_v7, %v6689_v31  ;;  %v6738_v6 = vmul.f32 %v6710_v12, %v6690_v4  ;;  %v6739_v14 = vmul.f32 %v6711_v11, %v6691_v62  ;;  %v6740_v22 = vmul.f32 %v6712_v25, %v6692_v44 }
 0x8b0   :  { %v6741_v60 = vadd.f32 %v6733_v46, %v6725_v51  ;;  %v6742_v56 = vadd.f32 %v6734_v33, %v6726_v59  ;;  %v6743_v8 = vadd.f32 %v6735_v63, %v6727_v29  ;;  %v6744_v19 = vadd.f32 %v6736_v9, %v6728_v5 }
 0x8b1   :  { %v6745_v48 = vadd.f32 %v6737_v28, %v6729_v55  ;;  %v6746_v49 = vadd.f32 %v6738_v6, %v6730_v2  ;;  %v6747_v3 = vadd.f32 %v6739_v14, %v6731_v16  ;;  %v6748_v21 = vadd.f32 %v6740_v22, %v6732_v47 }
 0x8b2   :  { %v6805_v58 = vadd.f32 %v6773_v54, %v6741_v60  ;;  %v6806_v1 = vadd.f32 %v6774_v26, %v6742_v56  ;;  %v6807_v0 = vadd.f32 %v6775_v52, %v6743_v8  ;;  %v6808_v18 = vadd.f32 %v6776_v39, %v6744_v19 }
 0x8b3   :  { %v6809_v24 = vadd.f32 %v6777_v10, %v6745_v48  ;;  %v6810_v50 = vadd.f32 %v6778_v27, %v6746_v49  ;;  %v6811_v32 = vadd.f32 %v6779_v61, %v6747_v3  ;;  %v6812_v40 = vadd.f32 %v6780_v38, %v6748_v21 }
 0x8b4   :  { %6837 = vst [vmem:[%s12585_s7 + $0xc0] sm:$0xff] %v6805_v58  ;;  %6838 = vst [vmem:[%s12585_s7 + $0xc8] sm:$0xff] %v6806_v1 }
 0x8b5   :  { %6839 = vst [vmem:[%s12585_s7 + $0xd0] sm:$0xff] %v6807_v0  ;;  %6840 = vst [vmem:[%s12585_s7 + $0xd8] sm:$0xff] %v6808_v18 }
 0x8b6   :  { %6841 = vst [vmem:[%s12585_s7 + $0xe0] sm:$0xff] %v6809_v24  ;;  %6842 = vst [vmem:[%s12585_s7 + $0xe8] sm:$0xff] %v6810_v50 }
 0x8b7   :  { %6843 = vst [vmem:[%s12585_s7 + $0xf0] sm:$0xff] %v6811_v32  ;;  %6844 = vst [vmem:[%s12585_s7 + $0xf8] sm:$0xff] %v6812_v40 }
 0x8b8   :  { %6849 = vsyncpa [#allocation6], 1 }
 0x8b9   :  { %6850 = vsyncpa [#allocation8], 1 }

</bundles_post_ra>
